<compile_context>
chip_gen: v6e
topology: v6e:2x2x1
jax: 0.10.0
libtpu: 0.0.40
codegen_flags: <defaults>
</compile_context>

<pallas_src>
import functools
import numpy as np
import jax
import jax.numpy as jnp
from jax.experimental import pallas as pl
from jax.experimental.pallas import tpu as pltpu

_EPS = 1e-5


# ---------------------------------------------------------------------------
# numpy structural constants (trace-time, depend only on spatial sizes)
# ---------------------------------------------------------------------------

def _conv_masks_np(H, W):
    """(9, 1, H*W) validity masks for the 9 taps of a SAME 3x3 conv."""
    m = np.zeros((9, 1, H * W), np.float32)
    k = 0
    for dh in (-1, 0, 1):
        for dw in (-1, 0, 1):
            for h in range(H):
                for w in range(W):
                    if 0 <= h + dh < H and 0 <= w + dw < W:
                        m[k, 0, h * W + w] = 1.0
            k += 1
    return m


def _shift_mats_np(H, W):
    """(9, HW, HW) shift matrices: tap_k = x @ S[k]  (SAME zero padding baked in)."""
    HW = H * W
    S = np.zeros((9, HW, HW), np.float32)
    k = 0
    for dh in (-1, 0, 1):
        for dw in (-1, 0, 1):
            for h in range(H):
                for w in range(W):
                    hs, ws = h + dh, w + dw
                    if 0 <= hs < H and 0 <= ws < W:
                        S[k, hs * W + ws, h * W + w] = 1.0
            k += 1
    return S


def _convt_placement_np(Hi, Wi):
    """(4, Hi*Wi, 4*Hi*Wi) phase placement matrices for ConvTranspose2d(k=2, s=2)."""
    Ho, Wo = 2 * Hi, 2 * Wi
    P = np.zeros((4, Hi * Wi, Ho * Wo), np.float32)
    for a in range(2):
        for b in range(2):
            k = a * 2 + b
            for h in range(Hi):
                for w in range(Wi):
                    P[k, h * Wi + w, (2 * h + a) * Wo + (2 * w + b)] = 1.0
    return P


# ---------------------------------------------------------------------------
# fused kernel: full ENet2 forward for one batch element, entirely on-chip
# ---------------------------------------------------------------------------

def _enet2_kernel(*refs, H, W, n_img_bn, n_t, n_pre_se, n_msg_bn):
    it = iter(refs)
    nxt = lambda: next(it)

    img_ref = nxt()                      # (1, Cp, HW)
    msg_ref = nxt()                      # (1, Cp, mhw)
    mask_ref = nxt()                     # (9, 1, HW)
    smat_ref = nxt()                     # (9, mhw, mhw)
    p_refs = [nxt() for _ in range(n_t)]                       # ConvT placements
    pre_w, pre_b = nxt(), nxt()                                # image_pre
    img_bn = [tuple(nxt() for _ in range(8)) for _ in range(n_img_bn)]
    mpre_w, mpre_b = nxt(), nxt()                              # msg_pre conv
    t_prm = [(nxt(), nxt()) for _ in range(n_t)]               # ConvT (w4, shift)
    pse_bn = [tuple(nxt() for _ in range(8)) for _ in range(n_pre_se)]
    mfst_bn = [tuple(nxt() for _ in range(8)) for _ in range(n_msg_bn)]
    ac_w, ac_b = nxt(), nxt()                                  # after_concat
    f_wa, f_wb, f_b = nxt(), nxt(), nxt()                      # final 1x1
    out_ref = nxt()

    HW = H * W
    masks = [mask_ref[k] for k in range(9)]                    # each (1, HW), loaded once

    def taps_roll(x):
        """Stack the 9 shifted taps of x:(C,HW) -> (9C, HW) using XLU rolls + masks."""
        pieces = []
        k = 0
        for dh in (-1, 0, 1):
            for dw in (-1, 0, 1):
                d = dh * W + dw
                if d == 0:
                    pieces.append(x)
                else:
                    pieces.append(pltpu.roll(x, shift=(-d) % HW, axis=1) * masks[k])
                k += 1
        return jnp.concatenate(pieces, axis=0)

    def conv3x3(x, w_ref, b_ref):
        """SAME 3x3 conv (+ folded-BN shift), single MXU dot over stacked taps."""
        return jnp.dot(w_ref[...], taps_roll(x),
                       preferred_element_type=jnp.float32) + b_ref[...]

    def bottleneck(x, prm):
        w1, b1, w2, b2, w3, b3, fc1t, fc2 = prm
        h = jnp.maximum(
            jnp.dot(w1[...], x, preferred_element_type=jnp.float32) + b1[...], 0.0)
        h = jnp.maximum(conv3x3(h, w2, b2), 0.0)
        h = jnp.dot(w3[...], h, preferred_element_type=jnp.float32) + b3[...]
        # squeeze-excitation (GAP + 2 FC + sigmoid), all on-chip
        pooled = jnp.mean(h, axis=1, keepdims=True)                          # (C, 1)
        z = jnp.maximum(jnp.sum(fc1t[...] * pooled, axis=0, keepdims=True), 0.0)
        se = jax.nn.sigmoid(jnp.sum(fc2[...] * z, axis=1, keepdims=True))    # (C, 1)
        return jnp.maximum(h * se + x, 0.0)

    # ---------------- image branch ----------------
    x_img = img_ref[0]                                                       # (Cp, HW)
    a = jnp.maximum(conv3x3(x_img, pre_w, pre_b), 0.0)
    for prm in img_bn:
        a = bottleneck(a, prm)
    inter1 = a

    # ---------------- message branch ----------------
    m = msg_ref[0]                                                           # (Cp, mhw)
    # 3x3 conv at the small message resolution: precomputed shift matrices.
    mtaps = jnp.concatenate(
        [jnp.dot(m, smat_ref[k], preferred_element_type=jnp.float32) for k in range(9)],
        axis=0)
    m = jnp.maximum(
        jnp.dot(mpre_w[...], mtaps, preferred_element_type=jnp.float32) + mpre_b[...],
        0.0)
    # ConvT(k=2,s=2) expand layers: per-phase matmul + in-kernel placement interleave.
    for (w4_ref, bt_ref), p_ref in zip(t_prm, p_refs):
        acc = None
        for k in range(4):
            y = jnp.dot(w4_ref[k], m, preferred_element_type=jnp.float32)   # (C, HWi)
            y = jnp.dot(y, p_ref[k], preferred_element_type=jnp.float32)    # (C, HWo)
            acc = y if acc is None else acc + y
        m = jnp.maximum(acc + bt_ref[...], 0.0)                              # bias hoisted
    for prm in pse_bn:
        m = bottleneck(m, prm)
    for prm in mfst_bn:
        m = bottleneck(m, prm)
    inter2 = m

    # ---------------- fusion: concat -> 3x3 conv -> (concat) -> final 1x1 ----------------
    xcat = jnp.concatenate([inter1, inter2], axis=0)                         # (2C, HW)
    inter3 = jnp.maximum(conv3x3(xcat, ac_w, ac_b), 0.0)
    out = (jnp.dot(f_wa[...], inter3, preferred_element_type=jnp.float32)
           + jnp.dot(f_wb[...], x_img, preferred_element_type=jnp.float32)
           + f_b[...])
    out_ref[0] = out


# ---------------------------------------------------------------------------
# wrapper-side weight preparation (BN folding, tap stacking, padding)
# ---------------------------------------------------------------------------

def _bn_fold(bn, conv_bias=None):
    gamma, beta, mean, var = bn
    scale = gamma / jnp.sqrt(var + _EPS)
    bias = conv_bias if conv_bias is not None else 0.0
    shift = beta + (bias - mean) * scale
    return scale, shift


def _round8(n):
    return max(8, ((n + 7) // 8) * 8)


def _prep_conv3x3(w, scale, cin_pad):
    """PyTorch (Cout,Cin,3,3) -> (Cout, 9*cin_pad) stacked, BN scale folded."""
    cout, cin = w.shape[0], w.shape[1]
    if cin_pad != cin:
        w = jnp.pad(w, ((0, 0), (0, cin_pad - cin), (0, 0), (0, 0)))
    wst = jnp.transpose(w, (0, 2, 3, 1)).reshape(cout, 9 * cin_pad)
    return wst * scale[:, None]


def _prep_convbnrelu(p, cin_pad):
    scale, shift = _bn_fold(p["bn"], p["b"])
    return [_prep_conv3x3(p["w"], scale, cin_pad), shift[:, None]]


def _prep_bottleneck(p):
    c4, c = p["w1"].shape[0], p["w1"].shape[1]
    c4p = _round8(c4)                     # pad mid channels to a clean 8-sublane tile
    s1, b1 = _bn_fold(p["bn1"])
    s2, b2 = _bn_fold(p["bn2"])
    s3, b3 = _bn_fold(p["bn3"])
    w1 = jnp.pad(p["w1"].reshape(c4, c) * s1[:, None], ((0, c4p - c4), (0, 0)))
    b1p = jnp.pad(b1, (0, c4p - c4))[:, None]
    w2 = jnp.pad(p["w2"], ((0, c4p - c4), (0, c4p - c4), (0, 0), (0, 0)))
    s2p = jnp.pad(s2, (0, c4p - c4))
    w2s = jnp.transpose(w2, (0, 2, 3, 1)).reshape(c4p, 9 * c4p) * s2p[:, None]
    b2p = jnp.pad(b2, (0, c4p - c4))[:, None]
    w3 = jnp.pad(p["w3"].reshape(c, c4) * s3[:, None], ((0, 0), (0, c4p - c4)))
    return [w1, b1p, w2s, b2p, w3, b3[:, None], p["fc1"].T, p["fc2"]]


def _prep_convt(p):
    cin, cout = p["w"].shape[0], p["w"].shape[1]
    scale, shift = _bn_fold(p["bn"], p["b"])
    w4 = jnp.transpose(p["w"], (2, 3, 1, 0)).reshape(4, cout, cin) * scale[None, :, None]
    return [w4, shift[:, None]]


# ---------------------------------------------------------------------------
# ENet2 forward (one fused pallas_call)
# ---------------------------------------------------------------------------

def enet2_forward(params, image_nchw, message):
    n, cin_img, H, W = image_nchw.shape
    hw = H * W
    channels = params["image_pre"]["w"].shape[0]
    cp = _round8(cin_img)                 # padded external input channels (-> 8)

    size = int(np.sqrt(message.shape[1]))
    n_t = len(params["msg_expand"])

    # trace-time structural constants
    mask9 = jnp.asarray(_conv_masks_np(H, W))
    smat9 = jnp.asarray(_shift_mats_np(size, size))
    placements = []
    mh = size
    for _ in range(n_t):
        placements.append(jnp.asarray(_convt_placement_np(mh, mh)))
        mh *= 2

    # inputs: NCHW -> [N, Cpad, H*W]  (free reshape + zero channel pad)
    x_img = image_nchw.reshape(n, cin_img, hw)
    x_img = jnp.pad(x_img, ((0, 0), (0, cp - cin_img), (0, 0)))
    msg = message.reshape(n, 1, size * size)
    msg = jnp.pad(msg, ((0, 0), (0, cp - 1), (0, 0)))

    # fold BN into weights, stack 3x3 taps, pad to clean layouts
    consts = [mask9, smat9] + placements
    consts += _prep_convbnrelu(params["image_pre"], cp)
    for bp in params["image_first"]:
        consts += _prep_bottleneck(bp)
    consts += _prep_convbnrelu(params["msg_pre_conv"], cp)
    for tp in params["msg_expand"]:
        consts += _prep_convt(tp)
    for bp in params["msg_pre_se"]:
        consts += _prep_bottleneck(bp)
    for bp in params["msg_first"]:
        consts += _prep_bottleneck(bp)
    consts += _prep_convbnrelu(params["after_concat"], 2 * channels)
    wf = params["final"]["w"].reshape(3, channels + cin_img)
    f_wa = wf[:, :channels]
    f_wb = jnp.pad(wf[:, channels:], ((0, 0), (0, cp - cin_img)))
    consts += [f_wa, f_wb, params["final"]["b"][:, None]]

    def const_spec(a):
        nd = a.ndim
        return pl.BlockSpec(a.shape, lambda i, _nd=nd: (0,) * _nd)

    kern = functools.partial(
        _enet2_kernel, H=H, W=W,
        n_img_bn=len(params["image_first"]), n_t=n_t,
        n_pre_se=len(params["msg_pre_se"]), n_msg_bn=len(params["msg_first"]))

    out = pl.pallas_call(
        kern,
        out_shape=jax.ShapeDtypeStruct((n, 3, hw), jnp.float32),
        grid=(n,),
        in_specs=[pl.BlockSpec((1, cp, hw), lambda i: (i, 0, 0)),
                  pl.BlockSpec((1, cp, size * size), lambda i: (i, 0, 0))]
                 + [const_spec(a) for a in consts],
        out_specs=pl.BlockSpec((1, 3, hw), lambda i: (i, 0, 0)),
        compiler_params=pltpu.CompilerParams(dimension_semantics=("parallel",)),
    )(x_img, msg, *consts)

    return out.reshape(n, 3, H, W)


# ---------------------------------------------------------------------------
# parameter construction (matches the PyTorch module's structure)
# ---------------------------------------------------------------------------

class PInit:
    def __init__(self, key):
        self.key = key

    def _next(self):
        self.key, k = jax.random.split(self.key)
        return k

    def w(self, shape, s=0.1):
        return jax.random.normal(self._next(), shape, jnp.float32) * s

    def bn(self, c):
        gamma = jax.random.uniform(self._next(), (c,), jnp.float32, 0.5, 1.5)
        beta = self.w((c,))
        mean = self.w((c,))
        var = jax.random.uniform(self._next(), (c,), jnp.float32, 0.5, 1.5)
        return (gamma, beta, mean, var)


def make_params(key, channels=8, blocks=2, H=16, message_length=16, r=8):
    pi = PInit(key)

    def convbnrelu(cin, cout):
        return {"w": pi.w((cout, cin, 3, 3)), "b": pi.w((cout,)), "bn": pi.bn(cout)}

    def convtbnrelu(cin, cout):
        return {"w": pi.w((cin, cout, 2, 2)), "b": pi.w((cout,)), "bn": pi.bn(cout)}

    def bottleneck(cin, cout):
        c4 = max(cout // 4, 1)
        cr = max(cout // r, 1)
        return {"w1": pi.w((c4, cin, 1, 1)), "bn1": pi.bn(c4),
                "w2": pi.w((c4, c4, 3, 3)), "bn2": pi.bn(c4),
                "w3": pi.w((cout, c4, 1, 1)), "bn3": pi.bn(cout),
                "fc1": pi.w((cr, cout)), "fc2": pi.w((cout, cr))}

    message_convT_blocks = int(np.log2(H // int(np.sqrt(message_length))))
    message_se_blocks = max(blocks - message_convT_blocks, 1)

    return {
        "image_pre": convbnrelu(3, channels),
        "image_first": [bottleneck(channels, channels) for _ in range(blocks)],
        "msg_pre_conv": convbnrelu(1, channels),
        "msg_expand": [convtbnrelu(channels, channels) for _ in range(message_convT_blocks)],
        "msg_pre_se": [bottleneck(channels, channels) for _ in range(message_se_blocks)],
        "msg_first": [bottleneck(channels, channels) for _ in range(blocks)],
        "after_concat": convbnrelu(2 * channels, channels),
        "final": {"w": pi.w((3, channels + 3, 1, 1)), "b": pi.w((3,))},
    }


# ---------------------------------------------------------------------------
# main
# ---------------------------------------------------------------------------

if __name__ == "__main__":
    key = jax.random.PRNGKey(0)
    kp, ki, km = jax.random.split(key, 3)

    # Small shapes consistent with the module: H=W=16, message_length=16
    # (sqrt(msg)=4 -> 2 ConvT expand blocks), blocks=2, channels=8, batch=2.
    N, channels, blocks, H, W, msg_len = 2, 8, 2, 16, 16, 16

    params = make_params(kp, channels=channels, blocks=blocks, H=H, message_length=msg_len)
    image = jax.random.normal(ki, (N, 3, H, W), jnp.float32)
    message = jax.random.normal(km, (N, msg_len), jnp.float32)

    fwd = jax.jit(enet2_forward)
    out = fwd(params, image, message)
    jax.block_until_ready(out)
    assert out.shape == (N, 3, H, W), out.shape
    assert out.dtype == jnp.float32
    print("KERNEL_OK")
</pallas_src>

<mosaic_0001>
module attributes {stable_mosaic.version = 11 : i64} {
  func.func @_enet2_kernel(%arg0: i32, %arg1: memref<1x8x256xf32, #tpu.memory_space<vmem>>, %arg2: memref<1x8x16xf32, #tpu.memory_space<vmem>>, %arg3: memref<9x1x256xf32, #tpu.memory_space<vmem>>, %arg4: memref<9x16x16xf32, #tpu.memory_space<vmem>>, %arg5: memref<4x16x64xf32, #tpu.memory_space<vmem>>, %arg6: memref<4x64x256xf32, #tpu.memory_space<vmem>>, %arg7: memref<8x72xf32, #tpu.memory_space<vmem>>, %arg8: memref<8x1xf32, #tpu.memory_space<vmem>>, %arg9: memref<8x8xf32, #tpu.memory_space<vmem>>, %arg10: memref<8x1xf32, #tpu.memory_space<vmem>>, %arg11: memref<8x72xf32, #tpu.memory_space<vmem>>, %arg12: memref<8x1xf32, #tpu.memory_space<vmem>>, %arg13: memref<8x8xf32, #tpu.memory_space<vmem>>, %arg14: memref<8x1xf32, #tpu.memory_space<vmem>>, %arg15: memref<8x1xf32, #tpu.memory_space<vmem>>, %arg16: memref<8x1xf32, #tpu.memory_space<vmem>>, %arg17: memref<8x8xf32, #tpu.memory_space<vmem>>, %arg18: memref<8x1xf32, #tpu.memory_space<vmem>>, %arg19: memref<8x72xf32, #tpu.memory_space<vmem>>, %arg20: memref<8x1xf32, #tpu.memory_space<vmem>>, %arg21: memref<8x8xf32, #tpu.memory_space<vmem>>, %arg22: memref<8x1xf32, #tpu.memory_space<vmem>>, %arg23: memref<8x1xf32, #tpu.memory_space<vmem>>, %arg24: memref<8x1xf32, #tpu.memory_space<vmem>>, %arg25: memref<8x72xf32, #tpu.memory_space<vmem>>, %arg26: memref<8x1xf32, #tpu.memory_space<vmem>>, %arg27: memref<4x8x8xf32, #tpu.memory_space<vmem>>, %arg28: memref<8x1xf32, #tpu.memory_space<vmem>>, %arg29: memref<4x8x8xf32, #tpu.memory_space<vmem>>, %arg30: memref<8x1xf32, #tpu.memory_space<vmem>>, %arg31: memref<8x8xf32, #tpu.memory_space<vmem>>, %arg32: memref<8x1xf32, #tpu.memory_space<vmem>>, %arg33: memref<8x72xf32, #tpu.memory_space<vmem>>, %arg34: memref<8x1xf32, #tpu.memory_space<vmem>>, %arg35: memref<8x8xf32, #tpu.memory_space<vmem>>, %arg36: memref<8x1xf32, #tpu.memory_space<vmem>>, %arg37: memref<8x1xf32, #tpu.memory_space<vmem>>, %arg38: memref<8x1xf32, #tpu.memory_space<vmem>>, %arg39: memref<8x8xf32, #tpu.memory_space<vmem>>, %arg40: memref<8x1xf32, #tpu.memory_space<vmem>>, %arg41: memref<8x72xf32, #tpu.memory_space<vmem>>, %arg42: memref<8x1xf32, #tpu.memory_space<vmem>>, %arg43: memref<8x8xf32, #tpu.memory_space<vmem>>, %arg44: memref<8x1xf32, #tpu.memory_space<vmem>>, %arg45: memref<8x1xf32, #tpu.memory_space<vmem>>, %arg46: memref<8x1xf32, #tpu.memory_space<vmem>>, %arg47: memref<8x8xf32, #tpu.memory_space<vmem>>, %arg48: memref<8x1xf32, #tpu.memory_space<vmem>>, %arg49: memref<8x72xf32, #tpu.memory_space<vmem>>, %arg50: memref<8x1xf32, #tpu.memory_space<vmem>>, %arg51: memref<8x8xf32, #tpu.memory_space<vmem>>, %arg52: memref<8x1xf32, #tpu.memory_space<vmem>>, %arg53: memref<8x1xf32, #tpu.memory_space<vmem>>, %arg54: memref<8x1xf32, #tpu.memory_space<vmem>>, %arg55: memref<8x144xf32, #tpu.memory_space<vmem>>, %arg56: memref<8x1xf32, #tpu.memory_space<vmem>>, %arg57: memref<3x8xf32, #tpu.memory_space<vmem>>, %arg58: memref<3x8xf32, #tpu.memory_space<vmem>>, %arg59: memref<3x1xf32, #tpu.memory_space<vmem>>, %arg60: memref<1x3x256xf32, #tpu.memory_space<vmem>>) attributes {dimension_semantics = [#tpu.dimension_semantics<parallel>], iteration_bounds = array<i64: 2>, scalar_prefetch = 0 : i64, scratch_operands = 0 : i64, tpu.core_type = #tpu.core_type<tc>, window_params = [{transform_indices = @transform_0, window_bounds = array<i64: 1, 8, 256>}, {transform_indices = @transform_1, window_bounds = array<i64: 1, 8, 16>}, {pipeline_mode = #tpu.pipeline_mode<synchronous>, transform_indices = @transform_2, window_bounds = array<i64: 9, 1, 256>}, {pipeline_mode = #tpu.pipeline_mode<synchronous>, transform_indices = @transform_3, window_bounds = array<i64: 9, 16, 16>}, {pipeline_mode = #tpu.pipeline_mode<synchronous>, transform_indices = @transform_4, window_bounds = array<i64: 4, 16, 64>}, {pipeline_mode = #tpu.pipeline_mode<synchronous>, transform_indices = @transform_5, window_bounds = array<i64: 4, 64, 256>}, {pipeline_mode = #tpu.pipeline_mode<synchronous>, transform_indices = @transform_6, window_bounds = array<i64: 8, 72>}, {pipeline_mode = #tpu.pipeline_mode<synchronous>, transform_indices = @transform_7, window_bounds = array<i64: 8, 1>}, {pipeline_mode = #tpu.pipeline_mode<synchronous>, transform_indices = @transform_8, window_bounds = array<i64: 8, 8>}, {pipeline_mode = #tpu.pipeline_mode<synchronous>, transform_indices = @transform_9, window_bounds = array<i64: 8, 1>}, {pipeline_mode = #tpu.pipeline_mode<synchronous>, transform_indices = @transform_10, window_bounds = array<i64: 8, 72>}, {pipeline_mode = #tpu.pipeline_mode<synchronous>, transform_indices = @transform_11, window_bounds = array<i64: 8, 1>}, {pipeline_mode = #tpu.pipeline_mode<synchronous>, transform_indices = @transform_12, window_bounds = array<i64: 8, 8>}, {pipeline_mode = #tpu.pipeline_mode<synchronous>, transform_indices = @transform_13, window_bounds = array<i64: 8, 1>}, {pipeline_mode = #tpu.pipeline_mode<synchronous>, transform_indices = @transform_14, window_bounds = array<i64: 8, 1>}, {pipeline_mode = #tpu.pipeline_mode<synchronous>, transform_indices = @transform_15, window_bounds = array<i64: 8, 1>}, {pipeline_mode = #tpu.pipeline_mode<synchronous>, transform_indices = @transform_16, window_bounds = array<i64: 8, 8>}, {pipeline_mode = #tpu.pipeline_mode<synchronous>, transform_indices = @transform_17, window_bounds = array<i64: 8, 1>}, {pipeline_mode = #tpu.pipeline_mode<synchronous>, transform_indices = @transform_18, window_bounds = array<i64: 8, 72>}, {pipeline_mode = #tpu.pipeline_mode<synchronous>, transform_indices = @transform_19, window_bounds = array<i64: 8, 1>}, {pipeline_mode = #tpu.pipeline_mode<synchronous>, transform_indices = @transform_20, window_bounds = array<i64: 8, 8>}, {pipeline_mode = #tpu.pipeline_mode<synchronous>, transform_indices = @transform_21, window_bounds = array<i64: 8, 1>}, {pipeline_mode = #tpu.pipeline_mode<synchronous>, transform_indices = @transform_22, window_bounds = array<i64: 8, 1>}, {pipeline_mode = #tpu.pipeline_mode<synchronous>, transform_indices = @transform_23, window_bounds = array<i64: 8, 1>}, {pipeline_mode = #tpu.pipeline_mode<synchronous>, transform_indices = @transform_24, window_bounds = array<i64: 8, 72>}, {pipeline_mode = #tpu.pipeline_mode<synchronous>, transform_indices = @transform_25, window_bounds = array<i64: 8, 1>}, {pipeline_mode = #tpu.pipeline_mode<synchronous>, transform_indices = @transform_26, window_bounds = array<i64: 4, 8, 8>}, {pipeline_mode = #tpu.pipeline_mode<synchronous>, transform_indices = @transform_27, window_bounds = array<i64: 8, 1>}, {pipeline_mode = #tpu.pipeline_mode<synchronous>, transform_indices = @transform_28, window_bounds = array<i64: 4, 8, 8>}, {pipeline_mode = #tpu.pipeline_mode<synchronous>, transform_indices = @transform_29, window_bounds = array<i64: 8, 1>}, {pipeline_mode = #tpu.pipeline_mode<synchronous>, transform_indices = @transform_30, window_bounds = array<i64: 8, 8>}, {pipeline_mode = #tpu.pipeline_mode<synchronous>, transform_indices = @transform_31, window_bounds = array<i64: 8, 1>}, {pipeline_mode = #tpu.pipeline_mode<synchronous>, transform_indices = @transform_32, window_bounds = array<i64: 8, 72>}, {pipeline_mode = #tpu.pipeline_mode<synchronous>, transform_indices = @transform_33, window_bounds = array<i64: 8, 1>}, {pipeline_mode = #tpu.pipeline_mode<synchronous>, transform_indices = @transform_34, window_bounds = array<i64: 8, 8>}, {pipeline_mode = #tpu.pipeline_mode<synchronous>, transform_indices = @transform_35, window_bounds = array<i64: 8, 1>}, {pipeline_mode = #tpu.pipeline_mode<synchronous>, transform_indices = @transform_36, window_bounds = array<i64: 8, 1>}, {pipeline_mode = #tpu.pipeline_mode<synchronous>, transform_indices = @transform_37, window_bounds = array<i64: 8, 1>}, {pipeline_mode = #tpu.pipeline_mode<synchronous>, transform_indices = @transform_38, window_bounds = array<i64: 8, 8>}, {pipeline_mode = #tpu.pipeline_mode<synchronous>, transform_indices = @transform_39, window_bounds = array<i64: 8, 1>}, {pipeline_mode = #tpu.pipeline_mode<synchronous>, transform_indices = @transform_40, window_bounds = array<i64: 8, 72>}, {pipeline_mode = #tpu.pipeline_mode<synchronous>, transform_indices = @transform_41, window_bounds = array<i64: 8, 1>}, {pipeline_mode = #tpu.pipeline_mode<synchronous>, transform_indices = @transform_42, window_bounds = array<i64: 8, 8>}, {pipeline_mode = #tpu.pipeline_mode<synchronous>, transform_indices = @transform_43, window_bounds = array<i64: 8, 1>}, {pipeline_mode = #tpu.pipeline_mode<synchronous>, transform_indices = @transform_44, window_bounds = array<i64: 8, 1>}, {pipeline_mode = #tpu.pipeline_mode<synchronous>, transform_indices = @transform_45, window_bounds = array<i64: 8, 1>}, {pipeline_mode = #tpu.pipeline_mode<synchronous>, transform_indices = @transform_46, window_bounds = array<i64: 8, 8>}, {pipeline_mode = #tpu.pipeline_mode<synchronous>, transform_indices = @transform_47, window_bounds = array<i64: 8, 1>}, {pipeline_mode = #tpu.pipeline_mode<synchronous>, transform_indices = @transform_48, window_bounds = array<i64: 8, 72>}, {pipeline_mode = #tpu.pipeline_mode<synchronous>, transform_indices = @transform_49, window_bounds = array<i64: 8, 1>}, {pipeline_mode = #tpu.pipeline_mode<synchronous>, transform_indices = @transform_50, window_bounds = array<i64: 8, 8>}, {pipeline_mode = #tpu.pipeline_mode<synchronous>, transform_indices = @transform_51, window_bounds = array<i64: 8, 1>}, {pipeline_mode = #tpu.pipeline_mode<synchronous>, transform_indices = @transform_52, window_bounds = array<i64: 8, 1>}, {pipeline_mode = #tpu.pipeline_mode<synchronous>, transform_indices = @transform_53, window_bounds = array<i64: 8, 1>}, {pipeline_mode = #tpu.pipeline_mode<synchronous>, transform_indices = @transform_54, window_bounds = array<i64: 8, 144>}, {pipeline_mode = #tpu.pipeline_mode<synchronous>, transform_indices = @transform_55, window_bounds = array<i64: 8, 1>}, {pipeline_mode = #tpu.pipeline_mode<synchronous>, transform_indices = @transform_56, window_bounds = array<i64: 3, 8>}, {pipeline_mode = #tpu.pipeline_mode<synchronous>, transform_indices = @transform_57, window_bounds = array<i64: 3, 8>}, {pipeline_mode = #tpu.pipeline_mode<synchronous>, transform_indices = @transform_58, window_bounds = array<i64: 3, 1>}, {transform_indices = @transform_59, window_bounds = array<i64: 1, 3, 256>}]} {
    %c0 = arith.constant 0 : index
    %c0_0 = arith.constant 0 : index
    %c0_1 = arith.constant 0 : index
    %0 = vector.load %arg3[%c0, %c0_0, %c0_1] : memref<9x1x256xf32, #tpu.memory_space<vmem>>, vector<1x1x256xf32>
    %1 = vector.shape_cast %0 : vector<1x1x256xf32> to vector<1x256xf32>
    %c1 = arith.constant 1 : index
    %c0_2 = arith.constant 0 : index
    %c0_3 = arith.constant 0 : index
    %2 = vector.load %arg3[%c1, %c0_2, %c0_3] : memref<9x1x256xf32, #tpu.memory_space<vmem>>, vector<1x1x256xf32>
    %3 = vector.shape_cast %2 : vector<1x1x256xf32> to vector<1x256xf32>
    %c2 = arith.constant 2 : index
    %c0_4 = arith.constant 0 : index
    %c0_5 = arith.constant 0 : index
    %4 = vector.load %arg3[%c2, %c0_4, %c0_5] : memref<9x1x256xf32, #tpu.memory_space<vmem>>, vector<1x1x256xf32>
    %5 = vector.shape_cast %4 : vector<1x1x256xf32> to vector<1x256xf32>
    %c3 = arith.constant 3 : index
    %c0_6 = arith.constant 0 : index
    %c0_7 = arith.constant 0 : index
    %6 = vector.load %arg3[%c3, %c0_6, %c0_7] : memref<9x1x256xf32, #tpu.memory_space<vmem>>, vector<1x1x256xf32>
    %7 = vector.shape_cast %6 : vector<1x1x256xf32> to vector<1x256xf32>
    %c5 = arith.constant 5 : index
    %c0_8 = arith.constant 0 : index
    %c0_9 = arith.constant 0 : index
    %8 = vector.load %arg3[%c5, %c0_8, %c0_9] : memref<9x1x256xf32, #tpu.memory_space<vmem>>, vector<1x1x256xf32>
    %9 = vector.shape_cast %8 : vector<1x1x256xf32> to vector<1x256xf32>
    %c6 = arith.constant 6 : index
    %c0_10 = arith.constant 0 : index
    %c0_11 = arith.constant 0 : index
    %10 = vector.load %arg3[%c6, %c0_10, %c0_11] : memref<9x1x256xf32, #tpu.memory_space<vmem>>, vector<1x1x256xf32>
    %11 = vector.shape_cast %10 : vector<1x1x256xf32> to vector<1x256xf32>
    %c7 = arith.constant 7 : index
    %c0_12 = arith.constant 0 : index
    %c0_13 = arith.constant 0 : index
    %12 = vector.load %arg3[%c7, %c0_12, %c0_13] : memref<9x1x256xf32, #tpu.memory_space<vmem>>, vector<1x1x256xf32>
    %13 = vector.shape_cast %12 : vector<1x1x256xf32> to vector<1x256xf32>
    %c8 = arith.constant 8 : index
    %c0_14 = arith.constant 0 : index
    %c0_15 = arith.constant 0 : index
    %14 = vector.load %arg3[%c8, %c0_14, %c0_15] : memref<9x1x256xf32, #tpu.memory_space<vmem>>, vector<1x1x256xf32>
    %15 = vector.shape_cast %14 : vector<1x1x256xf32> to vector<1x256xf32>
    %c0_16 = arith.constant 0 : index
    %c0_17 = arith.constant 0 : index
    %c0_18 = arith.constant 0 : index
    %16 = vector.load %arg1[%c0_16, %c0_17, %c0_18] : memref<1x8x256xf32, #tpu.memory_space<vmem>>, vector<1x8x256xf32>
    %17 = vector.shape_cast %16 : vector<1x8x256xf32> to vector<8x256xf32>
    %c0_19 = arith.constant 0 : index
    %c0_20 = arith.constant 0 : index
    %18 = vector.load %arg7[%c0_19, %c0_20] : memref<8x72xf32, #tpu.memory_space<vmem>>, vector<8x72xf32>
    %c17_i32 = arith.constant 17 : i32
    %19 = tpu.dynamic_rotate %17 by %c17_i32 dim 1 : vector<8x256xf32>, i32 -> vector<8x256xf32>
    %20 = vector.broadcast %1 : vector<1x256xf32> to vector<8x256xf32>
    %21 = arith.mulf %19, %20 : vector<8x256xf32>
    %c16_i32 = arith.constant 16 : i32
    %22 = tpu.dynamic_rotate %17 by %c16_i32 dim 1 : vector<8x256xf32>, i32 -> vector<8x256xf32>
    %23 = vector.broadcast %3 : vector<1x256xf32> to vector<8x256xf32>
    %24 = arith.mulf %22, %23 : vector<8x256xf32>
    %c15_i32 = arith.constant 15 : i32
    %25 = tpu.dynamic_rotate %17 by %c15_i32 dim 1 : vector<8x256xf32>, i32 -> vector<8x256xf32>
    %26 = vector.broadcast %5 : vector<1x256xf32> to vector<8x256xf32>
    %27 = arith.mulf %25, %26 : vector<8x256xf32>
    %c1_i32 = arith.constant 1 : i32
    %28 = tpu.dynamic_rotate %17 by %c1_i32 dim 1 : vector<8x256xf32>, i32 -> vector<8x256xf32>
    %29 = vector.broadcast %7 : vector<1x256xf32> to vector<8x256xf32>
    %30 = arith.mulf %28, %29 : vector<8x256xf32>
    %c255_i32 = arith.constant 255 : i32
    %31 = tpu.dynamic_rotate %17 by %c255_i32 dim 1 : vector<8x256xf32>, i32 -> vector<8x256xf32>
    %32 = vector.broadcast %9 : vector<1x256xf32> to vector<8x256xf32>
    %33 = arith.mulf %31, %32 : vector<8x256xf32>
    %c241_i32 = arith.constant 241 : i32
    %34 = tpu.dynamic_rotate %17 by %c241_i32 dim 1 : vector<8x256xf32>, i32 -> vector<8x256xf32>
    %35 = vector.broadcast %11 : vector<1x256xf32> to vector<8x256xf32>
    %36 = arith.mulf %34, %35 : vector<8x256xf32>
    %c240_i32 = arith.constant 240 : i32
    %37 = tpu.dynamic_rotate %17 by %c240_i32 dim 1 : vector<8x256xf32>, i32 -> vector<8x256xf32>
    %38 = vector.broadcast %13 : vector<1x256xf32> to vector<8x256xf32>
    %39 = arith.mulf %37, %38 : vector<8x256xf32>
    %c239_i32 = arith.constant 239 : i32
    %40 = tpu.dynamic_rotate %17 by %c239_i32 dim 1 : vector<8x256xf32>, i32 -> vector<8x256xf32>
    %41 = vector.broadcast %15 : vector<1x256xf32> to vector<8x256xf32>
    %42 = arith.mulf %40, %41 : vector<8x256xf32>
    %43 = tpu.concatenate %21, %24, %27, %30, %17, %33, %36, %39, %42 in 0 : vector<8x256xf32>, vector<8x256xf32>, vector<8x256xf32>, vector<8x256xf32>, vector<8x256xf32>, vector<8x256xf32>, vector<8x256xf32>, vector<8x256xf32>, vector<8x256xf32> -> vector<72x256xf32>
    %cst = arith.constant dense<0.000000e+00> : vector<8x256xf32>
    %44 = tpu.matmul %18, %43, %cst {dimension_numbers = #tpu.dot_dimension_numbers<[1], [0], [0], [1], [0, 0, 1, 1], [], []>} : vector<8x72xf32>, vector<72x256xf32>, vector<8x256xf32> -> vector<8x256xf32>
    %c0_21 = arith.constant 0 : index
    %c0_22 = arith.constant 0 : index
    %45 = vector.load %arg8[%c0_21, %c0_22] : memref<8x1xf32, #tpu.memory_space<vmem>>, vector<8x1xf32>
    %46 = vector.broadcast %45 : vector<8x1xf32> to vector<8x256xf32>
    %47 = arith.addf %44, %46 : vector<8x256xf32>
    %cst_23 = arith.constant 0.000000e+00 : f32
    %48 = vector.broadcast %cst_23 : f32 to vector<8x256xf32>
    %49 = arith.maximumf %47, %48 : vector<8x256xf32>
    %c0_24 = arith.constant 0 : index
    %c0_25 = arith.constant 0 : index
    %50 = vector.load %arg9[%c0_24, %c0_25] : memref<8x8xf32, #tpu.memory_space<vmem>>, vector<8x8xf32>
    %cst_26 = arith.constant dense<0.000000e+00> : vector<8x256xf32>
    %51 = tpu.matmul %50, %49, %cst_26 {dimension_numbers = #tpu.dot_dimension_numbers<[1], [0], [0], [1], [0, 0, 1, 1], [], []>} : vector<8x8xf32>, vector<8x256xf32>, vector<8x256xf32> -> vector<8x256xf32>
    %c0_27 = arith.constant 0 : index
    %c0_28 = arith.constant 0 : index
    %52 = vector.load %arg10[%c0_27, %c0_28] : memref<8x1xf32, #tpu.memory_space<vmem>>, vector<8x1xf32>
    %53 = vector.broadcast %52 : vector<8x1xf32> to vector<8x256xf32>
    %54 = arith.addf %51, %53 : vector<8x256xf32>
    %cst_29 = arith.constant 0.000000e+00 : f32
    %55 = vector.broadcast %cst_29 : f32 to vector<8x256xf32>
    %56 = arith.maximumf %54, %55 : vector<8x256xf32>
    %c0_30 = arith.constant 0 : index
    %c0_31 = arith.constant 0 : index
    %57 = vector.load %arg11[%c0_30, %c0_31] : memref<8x72xf32, #tpu.memory_space<vmem>>, vector<8x72xf32>
    %c17_i32_32 = arith.constant 17 : i32
    %58 = tpu.dynamic_rotate %56 by %c17_i32_32 dim 1 : vector<8x256xf32>, i32 -> vector<8x256xf32>
    %59 = vector.broadcast %1 : vector<1x256xf32> to vector<8x256xf32>
    %60 = arith.mulf %58, %59 : vector<8x256xf32>
    %c16_i32_33 = arith.constant 16 : i32
    %61 = tpu.dynamic_rotate %56 by %c16_i32_33 dim 1 : vector<8x256xf32>, i32 -> vector<8x256xf32>
    %62 = vector.broadcast %3 : vector<1x256xf32> to vector<8x256xf32>
    %63 = arith.mulf %61, %62 : vector<8x256xf32>
    %c15_i32_34 = arith.constant 15 : i32
    %64 = tpu.dynamic_rotate %56 by %c15_i32_34 dim 1 : vector<8x256xf32>, i32 -> vector<8x256xf32>
    %65 = vector.broadcast %5 : vector<1x256xf32> to vector<8x256xf32>
    %66 = arith.mulf %64, %65 : vector<8x256xf32>
    %c1_i32_35 = arith.constant 1 : i32
    %67 = tpu.dynamic_rotate %56 by %c1_i32_35 dim 1 : vector<8x256xf32>, i32 -> vector<8x256xf32>
    %68 = vector.broadcast %7 : vector<1x256xf32> to vector<8x256xf32>
    %69 = arith.mulf %67, %68 : vector<8x256xf32>
    %c255_i32_36 = arith.constant 255 : i32
    %70 = tpu.dynamic_rotate %56 by %c255_i32_36 dim 1 : vector<8x256xf32>, i32 -> vector<8x256xf32>
    %71 = vector.broadcast %9 : vector<1x256xf32> to vector<8x256xf32>
    %72 = arith.mulf %70, %71 : vector<8x256xf32>
    %c241_i32_37 = arith.constant 241 : i32
    %73 = tpu.dynamic_rotate %56 by %c241_i32_37 dim 1 : vector<8x256xf32>, i32 -> vector<8x256xf32>
    %74 = vector.broadcast %11 : vector<1x256xf32> to vector<8x256xf32>
    %75 = arith.mulf %73, %74 : vector<8x256xf32>
    %c240_i32_38 = arith.constant 240 : i32
    %76 = tpu.dynamic_rotate %56 by %c240_i32_38 dim 1 : vector<8x256xf32>, i32 -> vector<8x256xf32>
    %77 = vector.broadcast %13 : vector<1x256xf32> to vector<8x256xf32>
    %78 = arith.mulf %76, %77 : vector<8x256xf32>
    %c239_i32_39 = arith.constant 239 : i32
    %79 = tpu.dynamic_rotate %56 by %c239_i32_39 dim 1 : vector<8x256xf32>, i32 -> vector<8x256xf32>
    %80 = vector.broadcast %15 : vector<1x256xf32> to vector<8x256xf32>
    %81 = arith.mulf %79, %80 : vector<8x256xf32>
    %82 = tpu.concatenate %60, %63, %66, %69, %56, %72, %75, %78, %81 in 0 : vector<8x256xf32>, vector<8x256xf32>, vector<8x256xf32>, vector<8x256xf32>, vector<8x256xf32>, vector<8x256xf32>, vector<8x256xf32>, vector<8x256xf32>, vector<8x256xf32> -> vector<72x256xf32>
    %cst_40 = arith.constant dense<0.000000e+00> : vector<8x256xf32>
    %83 = tpu.matmul %57, %82, %cst_40 {dimension_numbers = #tpu.dot_dimension_numbers<[1], [0], [0], [1], [0, 0, 1, 1], [], []>} : vector<8x72xf32>, vector<72x256xf32>, vector<8x256xf32> -> vector<8x256xf32>
    %c0_41 = arith.constant 0 : index
    %c0_42 = arith.constant 0 : index
    %84 = vector.load %arg12[%c0_41, %c0_42] : memref<8x1xf32, #tpu.memory_space<vmem>>, vector<8x1xf32>
    %85 = vector.broadcast %84 : vector<8x1xf32> to vector<8x256xf32>
    %86 = arith.addf %83, %85 : vector<8x256xf32>
    %cst_43 = arith.constant 0.000000e+00 : f32
    %87 = vector.broadcast %cst_43 : f32 to vector<8x256xf32>
    %88 = arith.maximumf %86, %87 : vector<8x256xf32>
    %c0_44 = arith.constant 0 : index
    %c0_45 = arith.constant 0 : index
    %89 = vector.load %arg13[%c0_44, %c0_45] : memref<8x8xf32, #tpu.memory_space<vmem>>, vector<8x8xf32>
    %cst_46 = arith.constant dense<0.000000e+00> : vector<8x256xf32>
    %90 = tpu.matmul %89, %88, %cst_46 {dimension_numbers = #tpu.dot_dimension_numbers<[1], [0], [0], [1], [0, 0, 1, 1], [], []>} : vector<8x8xf32>, vector<8x256xf32>, vector<8x256xf32> -> vector<8x256xf32>
    %c0_47 = arith.constant 0 : index
    %c0_48 = arith.constant 0 : index
    %91 = vector.load %arg14[%c0_47, %c0_48] : memref<8x1xf32, #tpu.memory_space<vmem>>, vector<8x1xf32>
    %92 = vector.broadcast %91 : vector<8x1xf32> to vector<8x256xf32>
    %93 = arith.addf %90, %92 : vector<8x256xf32>
    %cst_49 = arith.constant dense<0.000000e+00> : vector<8xf32>
    %94 = vector.multi_reduction <add>, %93, %cst_49 [1] : vector<8x256xf32> to vector<8xf32>
    %95 = vector.shape_cast %94 : vector<8xf32> to vector<8x1xf32>
    %cst_50 = arith.constant 2.560000e+02 : f32
    %96 = vector.broadcast %cst_50 : f32 to vector<8x1xf32>
    %97 = arith.divf %95, %96 : vector<8x1xf32>
    %c0_51 = arith.constant 0 : index
    %c0_52 = arith.constant 0 : index
    %98 = vector.load %arg15[%c0_51, %c0_52] : memref<8x1xf32, #tpu.memory_space<vmem>>, vector<8x1xf32>
    %99 = arith.mulf %98, %97 : vector<8x1xf32>
    %cst_53 = arith.constant dense<0.000000e+00> : vector<1xf32>
    %100 = vector.multi_reduction <add>, %99, %cst_53 [0] : vector<8x1xf32> to vector<1xf32>
    %101 = vector.shape_cast %100 : vector<1xf32> to vector<1x1xf32>
    %cst_54 = arith.constant 0.000000e+00 : f32
    %102 = vector.broadcast %cst_54 : f32 to vector<1x1xf32>
    %103 = arith.maximumf %101, %102 : vector<1x1xf32>
    %c0_55 = arith.constant 0 : index
    %c0_56 = arith.constant 0 : index
    %104 = vector.load %arg16[%c0_55, %c0_56] : memref<8x1xf32, #tpu.memory_space<vmem>>, vector<8x1xf32>
    %105 = vector.broadcast %103 : vector<1x1xf32> to vector<8x1xf32>
    %106 = arith.mulf %104, %105 : vector<8x1xf32>
    %cst_57 = arith.constant dense<0.000000e+00> : vector<8xf32>
    %107 = vector.multi_reduction <add>, %106, %cst_57 [1] : vector<8x1xf32> to vector<8xf32>
    %108 = vector.shape_cast %107 : vector<8xf32> to vector<8x1xf32>
    %109 = arith.negf %108 : vector<8x1xf32>
    %110 = math.exp %109 : vector<8x1xf32>
    %cst_58 = arith.constant 1.000000e+00 : f32
    %111 = vector.broadcast %cst_58 : f32 to vector<8x1xf32>
    %112 = arith.addf %111, %110 : vector<8x1xf32>
    %113 = arith.divf %111, %112 : vector<8x1xf32>
    %114 = vector.broadcast %113 : vector<8x1xf32> to vector<8x256xf32>
    %115 = arith.mulf %93, %114 : vector<8x256xf32>
    %116 = arith.addf %115, %49 : vector<8x256xf32>
    %cst_59 = arith.constant 0.000000e+00 : f32
    %117 = vector.broadcast %cst_59 : f32 to vector<8x256xf32>
    %118 = arith.maximumf %116, %117 : vector<8x256xf32>
    %c0_60 = arith.constant 0 : index
    %c0_61 = arith.constant 0 : index
    %119 = vector.load %arg17[%c0_60, %c0_61] : memref<8x8xf32, #tpu.memory_space<vmem>>, vector<8x8xf32>
    %cst_62 = arith.constant dense<0.000000e+00> : vector<8x256xf32>
    %120 = tpu.matmul %119, %118, %cst_62 {dimension_numbers = #tpu.dot_dimension_numbers<[1], [0], [0], [1], [0, 0, 1, 1], [], []>} : vector<8x8xf32>, vector<8x256xf32>, vector<8x256xf32> -> vector<8x256xf32>
    %c0_63 = arith.constant 0 : index
    %c0_64 = arith.constant 0 : index
    %121 = vector.load %arg18[%c0_63, %c0_64] : memref<8x1xf32, #tpu.memory_space<vmem>>, vector<8x1xf32>
    %122 = vector.broadcast %121 : vector<8x1xf32> to vector<8x256xf32>
    %123 = arith.addf %120, %122 : vector<8x256xf32>
    %cst_65 = arith.constant 0.000000e+00 : f32
    %124 = vector.broadcast %cst_65 : f32 to vector<8x256xf32>
    %125 = arith.maximumf %123, %124 : vector<8x256xf32>
    %c0_66 = arith.constant 0 : index
    %c0_67 = arith.constant 0 : index
    %126 = vector.load %arg19[%c0_66, %c0_67] : memref<8x72xf32, #tpu.memory_space<vmem>>, vector<8x72xf32>
    %c17_i32_68 = arith.constant 17 : i32
    %127 = tpu.dynamic_rotate %125 by %c17_i32_68 dim 1 : vector<8x256xf32>, i32 -> vector<8x256xf32>
    %128 = vector.broadcast %1 : vector<1x256xf32> to vector<8x256xf32>
    %129 = arith.mulf %127, %128 : vector<8x256xf32>
    %c16_i32_69 = arith.constant 16 : i32
    %130 = tpu.dynamic_rotate %125 by %c16_i32_69 dim 1 : vector<8x256xf32>, i32 -> vector<8x256xf32>
    %131 = vector.broadcast %3 : vector<1x256xf32> to vector<8x256xf32>
    %132 = arith.mulf %130, %131 : vector<8x256xf32>
    %c15_i32_70 = arith.constant 15 : i32
    %133 = tpu.dynamic_rotate %125 by %c15_i32_70 dim 1 : vector<8x256xf32>, i32 -> vector<8x256xf32>
    %134 = vector.broadcast %5 : vector<1x256xf32> to vector<8x256xf32>
    %135 = arith.mulf %133, %134 : vector<8x256xf32>
    %c1_i32_71 = arith.constant 1 : i32
    %136 = tpu.dynamic_rotate %125 by %c1_i32_71 dim 1 : vector<8x256xf32>, i32 -> vector<8x256xf32>
    %137 = vector.broadcast %7 : vector<1x256xf32> to vector<8x256xf32>
    %138 = arith.mulf %136, %137 : vector<8x256xf32>
    %c255_i32_72 = arith.constant 255 : i32
    %139 = tpu.dynamic_rotate %125 by %c255_i32_72 dim 1 : vector<8x256xf32>, i32 -> vector<8x256xf32>
    %140 = vector.broadcast %9 : vector<1x256xf32> to vector<8x256xf32>
    %141 = arith.mulf %139, %140 : vector<8x256xf32>
    %c241_i32_73 = arith.constant 241 : i32
    %142 = tpu.dynamic_rotate %125 by %c241_i32_73 dim 1 : vector<8x256xf32>, i32 -> vector<8x256xf32>
    %143 = vector.broadcast %11 : vector<1x256xf32> to vector<8x256xf32>
    %144 = arith.mulf %142, %143 : vector<8x256xf32>
    %c240_i32_74 = arith.constant 240 : i32
    %145 = tpu.dynamic_rotate %125 by %c240_i32_74 dim 1 : vector<8x256xf32>, i32 -> vector<8x256xf32>
    %146 = vector.broadcast %13 : vector<1x256xf32> to vector<8x256xf32>
    %147 = arith.mulf %145, %146 : vector<8x256xf32>
    %c239_i32_75 = arith.constant 239 : i32
    %148 = tpu.dynamic_rotate %125 by %c239_i32_75 dim 1 : vector<8x256xf32>, i32 -> vector<8x256xf32>
    %149 = vector.broadcast %15 : vector<1x256xf32> to vector<8x256xf32>
    %150 = arith.mulf %148, %149 : vector<8x256xf32>
    %151 = tpu.concatenate %129, %132, %135, %138, %125, %141, %144, %147, %150 in 0 : vector<8x256xf32>, vector<8x256xf32>, vector<8x256xf32>, vector<8x256xf32>, vector<8x256xf32>, vector<8x256xf32>, vector<8x256xf32>, vector<8x256xf32>, vector<8x256xf32> -> vector<72x256xf32>
    %cst_76 = arith.constant dense<0.000000e+00> : vector<8x256xf32>
    %152 = tpu.matmul %126, %151, %cst_76 {dimension_numbers = #tpu.dot_dimension_numbers<[1], [0], [0], [1], [0, 0, 1, 1], [], []>} : vector<8x72xf32>, vector<72x256xf32>, vector<8x256xf32> -> vector<8x256xf32>
    %c0_77 = arith.constant 0 : index
    %c0_78 = arith.constant 0 : index
    %153 = vector.load %arg20[%c0_77, %c0_78] : memref<8x1xf32, #tpu.memory_space<vmem>>, vector<8x1xf32>
    %154 = vector.broadcast %153 : vector<8x1xf32> to vector<8x256xf32>
    %155 = arith.addf %152, %154 : vector<8x256xf32>
    %cst_79 = arith.constant 0.000000e+00 : f32
    %156 = vector.broadcast %cst_79 : f32 to vector<8x256xf32>
    %157 = arith.maximumf %155, %156 : vector<8x256xf32>
    %c0_80 = arith.constant 0 : index
    %c0_81 = arith.constant 0 : index
    %158 = vector.load %arg21[%c0_80, %c0_81] : memref<8x8xf32, #tpu.memory_space<vmem>>, vector<8x8xf32>
    %cst_82 = arith.constant dense<0.000000e+00> : vector<8x256xf32>
    %159 = tpu.matmul %158, %157, %cst_82 {dimension_numbers = #tpu.dot_dimension_numbers<[1], [0], [0], [1], [0, 0, 1, 1], [], []>} : vector<8x8xf32>, vector<8x256xf32>, vector<8x256xf32> -> vector<8x256xf32>
    %c0_83 = arith.constant 0 : index
    %c0_84 = arith.constant 0 : index
    %160 = vector.load %arg22[%c0_83, %c0_84] : memref<8x1xf32, #tpu.memory_space<vmem>>, vector<8x1xf32>
    %161 = vector.broadcast %160 : vector<8x1xf32> to vector<8x256xf32>
    %162 = arith.addf %159, %161 : vector<8x256xf32>
    %cst_85 = arith.constant dense<0.000000e+00> : vector<8xf32>
    %163 = vector.multi_reduction <add>, %162, %cst_85 [1] : vector<8x256xf32> to vector<8xf32>
    %164 = vector.shape_cast %163 : vector<8xf32> to vector<8x1xf32>
    %cst_86 = arith.constant 2.560000e+02 : f32
    %165 = vector.broadcast %cst_86 : f32 to vector<8x1xf32>
    %166 = arith.divf %164, %165 : vector<8x1xf32>
    %c0_87 = arith.constant 0 : index
    %c0_88 = arith.constant 0 : index
    %167 = vector.load %arg23[%c0_87, %c0_88] : memref<8x1xf32, #tpu.memory_space<vmem>>, vector<8x1xf32>
    %168 = arith.mulf %167, %166 : vector<8x1xf32>
    %cst_89 = arith.constant dense<0.000000e+00> : vector<1xf32>
    %169 = vector.multi_reduction <add>, %168, %cst_89 [0] : vector<8x1xf32> to vector<1xf32>
    %170 = vector.shape_cast %169 : vector<1xf32> to vector<1x1xf32>
    %cst_90 = arith.constant 0.000000e+00 : f32
    %171 = vector.broadcast %cst_90 : f32 to vector<1x1xf32>
    %172 = arith.maximumf %170, %171 : vector<1x1xf32>
    %c0_91 = arith.constant 0 : index
    %c0_92 = arith.constant 0 : index
    %173 = vector.load %arg24[%c0_91, %c0_92] : memref<8x1xf32, #tpu.memory_space<vmem>>, vector<8x1xf32>
    %174 = vector.broadcast %172 : vector<1x1xf32> to vector<8x1xf32>
    %175 = arith.mulf %173, %174 : vector<8x1xf32>
    %cst_93 = arith.constant dense<0.000000e+00> : vector<8xf32>
    %176 = vector.multi_reduction <add>, %175, %cst_93 [1] : vector<8x1xf32> to vector<8xf32>
    %177 = vector.shape_cast %176 : vector<8xf32> to vector<8x1xf32>
    %178 = arith.negf %177 : vector<8x1xf32>
    %179 = math.exp %178 : vector<8x1xf32>
    %cst_94 = arith.constant 1.000000e+00 : f32
    %180 = vector.broadcast %cst_94 : f32 to vector<8x1xf32>
    %181 = arith.addf %180, %179 : vector<8x1xf32>
    %182 = arith.divf %180, %181 : vector<8x1xf32>
    %183 = vector.broadcast %182 : vector<8x1xf32> to vector<8x256xf32>
    %184 = arith.mulf %162, %183 : vector<8x256xf32>
    %185 = arith.addf %184, %118 : vector<8x256xf32>
    %cst_95 = arith.constant 0.000000e+00 : f32
    %186 = vector.broadcast %cst_95 : f32 to vector<8x256xf32>
    %187 = arith.maximumf %185, %186 : vector<8x256xf32>
    %c0_96 = arith.constant 0 : index
    %c0_97 = arith.constant 0 : index
    %c0_98 = arith.constant 0 : index
    %188 = vector.load %arg2[%c0_96, %c0_97, %c0_98] : memref<1x8x16xf32, #tpu.memory_space<vmem>>, vector<1x8x16xf32>
    %189 = vector.shape_cast %188 : vector<1x8x16xf32> to vector<8x16xf32>
    %c0_99 = arith.constant 0 : index
    %c0_100 = arith.constant 0 : index
    %c0_101 = arith.constant 0 : index
    %190 = vector.load %arg4[%c0_99, %c0_100, %c0_101] : memref<9x16x16xf32, #tpu.memory_space<vmem>>, vector<1x16x16xf32>
    %191 = vector.shape_cast %190 : vector<1x16x16xf32> to vector<16x16xf32>
    %cst_102 = arith.constant dense<0.000000e+00> : vector<8x16xf32>
    %192 = tpu.matmul %189, %191, %cst_102 {dimension_numbers = #tpu.dot_dimension_numbers<[1], [0], [0], [1], [0, 0, 1, 1], [], []>} : vector<8x16xf32>, vector<16x16xf32>, vector<8x16xf32> -> vector<8x16xf32>
    %c1_103 = arith.constant 1 : index
    %c0_104 = arith.constant 0 : index
    %c0_105 = arith.constant 0 : index
    %193 = vector.load %arg4[%c1_103, %c0_104, %c0_105] : memref<9x16x16xf32, #tpu.memory_space<vmem>>, vector<1x16x16xf32>
    %194 = vector.shape_cast %193 : vector<1x16x16xf32> to vector<16x16xf32>
    %cst_106 = arith.constant dense<0.000000e+00> : vector<8x16xf32>
    %195 = tpu.matmul %189, %194, %cst_106 {dimension_numbers = #tpu.dot_dimension_numbers<[1], [0], [0], [1], [0, 0, 1, 1], [], []>} : vector<8x16xf32>, vector<16x16xf32>, vector<8x16xf32> -> vector<8x16xf32>
    %c2_107 = arith.constant 2 : index
    %c0_108 = arith.constant 0 : index
    %c0_109 = arith.constant 0 : index
    %196 = vector.load %arg4[%c2_107, %c0_108, %c0_109] : memref<9x16x16xf32, #tpu.memory_space<vmem>>, vector<1x16x16xf32>
    %197 = vector.shape_cast %196 : vector<1x16x16xf32> to vector<16x16xf32>
    %cst_110 = arith.constant dense<0.000000e+00> : vector<8x16xf32>
    %198 = tpu.matmul %189, %197, %cst_110 {dimension_numbers = #tpu.dot_dimension_numbers<[1], [0], [0], [1], [0, 0, 1, 1], [], []>} : vector<8x16xf32>, vector<16x16xf32>, vector<8x16xf32> -> vector<8x16xf32>
    %c3_111 = arith.constant 3 : index
    %c0_112 = arith.constant 0 : index
    %c0_113 = arith.constant 0 : index
    %199 = vector.load %arg4[%c3_111, %c0_112, %c0_113] : memref<9x16x16xf32, #tpu.memory_space<vmem>>, vector<1x16x16xf32>
    %200 = vector.shape_cast %199 : vector<1x16x16xf32> to vector<16x16xf32>
    %cst_114 = arith.constant dense<0.000000e+00> : vector<8x16xf32>
    %201 = tpu.matmul %189, %200, %cst_114 {dimension_numbers = #tpu.dot_dimension_numbers<[1], [0], [0], [1], [0, 0, 1, 1], [], []>} : vector<8x16xf32>, vector<16x16xf32>, vector<8x16xf32> -> vector<8x16xf32>
    %c4 = arith.constant 4 : index
    %c0_115 = arith.constant 0 : index
    %c0_116 = arith.constant 0 : index
    %202 = vector.load %arg4[%c4, %c0_115, %c0_116] : memref<9x16x16xf32, #tpu.memory_space<vmem>>, vector<1x16x16xf32>
    %203 = vector.shape_cast %202 : vector<1x16x16xf32> to vector<16x16xf32>
    %cst_117 = arith.constant dense<0.000000e+00> : vector<8x16xf32>
    %204 = tpu.matmul %189, %203, %cst_117 {dimension_numbers = #tpu.dot_dimension_numbers<[1], [0], [0], [1], [0, 0, 1, 1], [], []>} : vector<8x16xf32>, vector<16x16xf32>, vector<8x16xf32> -> vector<8x16xf32>
    %c5_118 = arith.constant 5 : index
    %c0_119 = arith.constant 0 : index
    %c0_120 = arith.constant 0 : index
    %205 = vector.load %arg4[%c5_118, %c0_119, %c0_120] : memref<9x16x16xf32, #tpu.memory_space<vmem>>, vector<1x16x16xf32>
    %206 = vector.shape_cast %205 : vector<1x16x16xf32> to vector<16x16xf32>
    %cst_121 = arith.constant dense<0.000000e+00> : vector<8x16xf32>
    %207 = tpu.matmul %189, %206, %cst_121 {dimension_numbers = #tpu.dot_dimension_numbers<[1], [0], [0], [1], [0, 0, 1, 1], [], []>} : vector<8x16xf32>, vector<16x16xf32>, vector<8x16xf32> -> vector<8x16xf32>
    %c6_122 = arith.constant 6 : index
    %c0_123 = arith.constant 0 : index
    %c0_124 = arith.constant 0 : index
    %208 = vector.load %arg4[%c6_122, %c0_123, %c0_124] : memref<9x16x16xf32, #tpu.memory_space<vmem>>, vector<1x16x16xf32>
    %209 = vector.shape_cast %208 : vector<1x16x16xf32> to vector<16x16xf32>
    %cst_125 = arith.constant dense<0.000000e+00> : vector<8x16xf32>
    %210 = tpu.matmul %189, %209, %cst_125 {dimension_numbers = #tpu.dot_dimension_numbers<[1], [0], [0], [1], [0, 0, 1, 1], [], []>} : vector<8x16xf32>, vector<16x16xf32>, vector<8x16xf32> -> vector<8x16xf32>
    %c7_126 = arith.constant 7 : index
    %c0_127 = arith.constant 0 : index
    %c0_128 = arith.constant 0 : index
    %211 = vector.load %arg4[%c7_126, %c0_127, %c0_128] : memref<9x16x16xf32, #tpu.memory_space<vmem>>, vector<1x16x16xf32>
    %212 = vector.shape_cast %211 : vector<1x16x16xf32> to vector<16x16xf32>
    %cst_129 = arith.constant dense<0.000000e+00> : vector<8x16xf32>
    %213 = tpu.matmul %189, %212, %cst_129 {dimension_numbers = #tpu.dot_dimension_numbers<[1], [0], [0], [1], [0, 0, 1, 1], [], []>} : vector<8x16xf32>, vector<16x16xf32>, vector<8x16xf32> -> vector<8x16xf32>
    %c8_130 = arith.constant 8 : index
    %c0_131 = arith.constant 0 : index
    %c0_132 = arith.constant 0 : index
    %214 = vector.load %arg4[%c8_130, %c0_131, %c0_132] : memref<9x16x16xf32, #tpu.memory_space<vmem>>, vector<1x16x16xf32>
    %215 = vector.shape_cast %214 : vector<1x16x16xf32> to vector<16x16xf32>
    %cst_133 = arith.constant dense<0.000000e+00> : vector<8x16xf32>
    %216 = tpu.matmul %189, %215, %cst_133 {dimension_numbers = #tpu.dot_dimension_numbers<[1], [0], [0], [1], [0, 0, 1, 1], [], []>} : vector<8x16xf32>, vector<16x16xf32>, vector<8x16xf32> -> vector<8x16xf32>
    %217 = tpu.concatenate %192, %195, %198, %201, %204, %207, %210, %213, %216 in 0 : vector<8x16xf32>, vector<8x16xf32>, vector<8x16xf32>, vector<8x16xf32>, vector<8x16xf32>, vector<8x16xf32>, vector<8x16xf32>, vector<8x16xf32>, vector<8x16xf32> -> vector<72x16xf32>
    %c0_134 = arith.constant 0 : index
    %c0_135 = arith.constant 0 : index
    %218 = vector.load %arg25[%c0_134, %c0_135] : memref<8x72xf32, #tpu.memory_space<vmem>>, vector<8x72xf32>
    %cst_136 = arith.constant dense<0.000000e+00> : vector<8x16xf32>
    %219 = tpu.matmul %218, %217, %cst_136 {dimension_numbers = #tpu.dot_dimension_numbers<[1], [0], [0], [1], [0, 0, 1, 1], [], []>} : vector<8x72xf32>, vector<72x16xf32>, vector<8x16xf32> -> vector<8x16xf32>
    %c0_137 = arith.constant 0 : index
    %c0_138 = arith.constant 0 : index
    %220 = vector.load %arg26[%c0_137, %c0_138] : memref<8x1xf32, #tpu.memory_space<vmem>>, vector<8x1xf32>
    %221 = vector.broadcast %220 : vector<8x1xf32> to vector<8x16xf32>
    %222 = arith.addf %219, %221 : vector<8x16xf32>
    %cst_139 = arith.constant 0.000000e+00 : f32
    %223 = vector.broadcast %cst_139 : f32 to vector<8x16xf32>
    %224 = arith.maximumf %222, %223 : vector<8x16xf32>
    %c0_140 = arith.constant 0 : index
    %c0_141 = arith.constant 0 : index
    %c0_142 = arith.constant 0 : index
    %225 = vector.load %arg27[%c0_140, %c0_141, %c0_142] : memref<4x8x8xf32, #tpu.memory_space<vmem>>, vector<1x8x8xf32>
    %226 = vector.shape_cast %225 : vector<1x8x8xf32> to vector<8x8xf32>
    %cst_143 = arith.constant dense<0.000000e+00> : vector<8x16xf32>
    %227 = tpu.matmul %226, %224, %cst_143 {dimension_numbers = #tpu.dot_dimension_numbers<[1], [0], [0], [1], [0, 0, 1, 1], [], []>} : vector<8x8xf32>, vector<8x16xf32>, vector<8x16xf32> -> vector<8x16xf32>
    %c0_144 = arith.constant 0 : index
    %c0_145 = arith.constant 0 : index
    %c0_146 = arith.constant 0 : index
    %228 = vector.load %arg5[%c0_144, %c0_145, %c0_146] : memref<4x16x64xf32, #tpu.memory_space<vmem>>, vector<1x16x64xf32>
    %229 = vector.shape_cast %228 : vector<1x16x64xf32> to vector<16x64xf32>
    %cst_147 = arith.constant dense<0.000000e+00> : vector<8x64xf32>
    %230 = tpu.matmul %227, %229, %cst_147 {dimension_numbers = #tpu.dot_dimension_numbers<[1], [0], [0], [1], [0, 0, 1, 1], [], []>} : vector<8x16xf32>, vector<16x64xf32>, vector<8x64xf32> -> vector<8x64xf32>
    %c1_148 = arith.constant 1 : index
    %c0_149 = arith.constant 0 : index
    %c0_150 = arith.constant 0 : index
    %231 = vector.load %arg27[%c1_148, %c0_149, %c0_150] : memref<4x8x8xf32, #tpu.memory_space<vmem>>, vector<1x8x8xf32>
    %232 = vector.shape_cast %231 : vector<1x8x8xf32> to vector<8x8xf32>
    %cst_151 = arith.constant dense<0.000000e+00> : vector<8x16xf32>
    %233 = tpu.matmul %232, %224, %cst_151 {dimension_numbers = #tpu.dot_dimension_numbers<[1], [0], [0], [1], [0, 0, 1, 1], [], []>} : vector<8x8xf32>, vector<8x16xf32>, vector<8x16xf32> -> vector<8x16xf32>
    %c1_152 = arith.constant 1 : index
    %c0_153 = arith.constant 0 : index
    %c0_154 = arith.constant 0 : index
    %234 = vector.load %arg5[%c1_152, %c0_153, %c0_154] : memref<4x16x64xf32, #tpu.memory_space<vmem>>, vector<1x16x64xf32>
    %235 = vector.shape_cast %234 : vector<1x16x64xf32> to vector<16x64xf32>
    %cst_155 = arith.constant dense<0.000000e+00> : vector<8x64xf32>
    %236 = tpu.matmul %233, %235, %cst_155 {dimension_numbers = #tpu.dot_dimension_numbers<[1], [0], [0], [1], [0, 0, 1, 1], [], []>} : vector<8x16xf32>, vector<16x64xf32>, vector<8x64xf32> -> vector<8x64xf32>
    %237 = arith.addf %230, %236 : vector<8x64xf32>
    %c2_156 = arith.constant 2 : index
    %c0_157 = arith.constant 0 : index
    %c0_158 = arith.constant 0 : index
    %238 = vector.load %arg27[%c2_156, %c0_157, %c0_158] : memref<4x8x8xf32, #tpu.memory_space<vmem>>, vector<1x8x8xf32>
    %239 = vector.shape_cast %238 : vector<1x8x8xf32> to vector<8x8xf32>
    %cst_159 = arith.constant dense<0.000000e+00> : vector<8x16xf32>
    %240 = tpu.matmul %239, %224, %cst_159 {dimension_numbers = #tpu.dot_dimension_numbers<[1], [0], [0], [1], [0, 0, 1, 1], [], []>} : vector<8x8xf32>, vector<8x16xf32>, vector<8x16xf32> -> vector<8x16xf32>
    %c2_160 = arith.constant 2 : index
    %c0_161 = arith.constant 0 : index
    %c0_162 = arith.constant 0 : index
    %241 = vector.load %arg5[%c2_160, %c0_161, %c0_162] : memref<4x16x64xf32, #tpu.memory_space<vmem>>, vector<1x16x64xf32>
    %242 = vector.shape_cast %241 : vector<1x16x64xf32> to vector<16x64xf32>
    %cst_163 = arith.constant dense<0.000000e+00> : vector<8x64xf32>
    %243 = tpu.matmul %240, %242, %cst_163 {dimension_numbers = #tpu.dot_dimension_numbers<[1], [0], [0], [1], [0, 0, 1, 1], [], []>} : vector<8x16xf32>, vector<16x64xf32>, vector<8x64xf32> -> vector<8x64xf32>
    %244 = arith.addf %237, %243 : vector<8x64xf32>
    %c3_164 = arith.constant 3 : index
    %c0_165 = arith.constant 0 : index
    %c0_166 = arith.constant 0 : index
    %245 = vector.load %arg27[%c3_164, %c0_165, %c0_166] : memref<4x8x8xf32, #tpu.memory_space<vmem>>, vector<1x8x8xf32>
    %246 = vector.shape_cast %245 : vector<1x8x8xf32> to vector<8x8xf32>
    %cst_167 = arith.constant dense<0.000000e+00> : vector<8x16xf32>
    %247 = tpu.matmul %246, %224, %cst_167 {dimension_numbers = #tpu.dot_dimension_numbers<[1], [0], [0], [1], [0, 0, 1, 1], [], []>} : vector<8x8xf32>, vector<8x16xf32>, vector<8x16xf32> -> vector<8x16xf32>
    %c3_168 = arith.constant 3 : index
    %c0_169 = arith.constant 0 : index
    %c0_170 = arith.constant 0 : index
    %248 = vector.load %arg5[%c3_168, %c0_169, %c0_170] : memref<4x16x64xf32, #tpu.memory_space<vmem>>, vector<1x16x64xf32>
    %249 = vector.shape_cast %248 : vector<1x16x64xf32> to vector<16x64xf32>
    %cst_171 = arith.constant dense<0.000000e+00> : vector<8x64xf32>
    %250 = tpu.matmul %247, %249, %cst_171 {dimension_numbers = #tpu.dot_dimension_numbers<[1], [0], [0], [1], [0, 0, 1, 1], [], []>} : vector<8x16xf32>, vector<16x64xf32>, vector<8x64xf32> -> vector<8x64xf32>
    %251 = arith.addf %244, %250 : vector<8x64xf32>
    %c0_172 = arith.constant 0 : index
    %c0_173 = arith.constant 0 : index
    %252 = vector.load %arg28[%c0_172, %c0_173] : memref<8x1xf32, #tpu.memory_space<vmem>>, vector<8x1xf32>
    %253 = vector.broadcast %252 : vector<8x1xf32> to vector<8x64xf32>
    %254 = arith.addf %251, %253 : vector<8x64xf32>
    %cst_174 = arith.constant 0.000000e+00 : f32
    %255 = vector.broadcast %cst_174 : f32 to vector<8x64xf32>
    %256 = arith.maximumf %254, %255 : vector<8x64xf32>
    %c0_175 = arith.constant 0 : index
    %c0_176 = arith.constant 0 : index
    %c0_177 = arith.constant 0 : index
    %257 = vector.load %arg29[%c0_175, %c0_176, %c0_177] : memref<4x8x8xf32, #tpu.memory_space<vmem>>, vector<1x8x8xf32>
    %258 = vector.shape_cast %257 : vector<1x8x8xf32> to vector<8x8xf32>
    %cst_178 = arith.constant dense<0.000000e+00> : vector<8x64xf32>
    %259 = tpu.matmul %258, %256, %cst_178 {dimension_numbers = #tpu.dot_dimension_numbers<[1], [0], [0], [1], [0, 0, 1, 1], [], []>} : vector<8x8xf32>, vector<8x64xf32>, vector<8x64xf32> -> vector<8x64xf32>
    %c0_179 = arith.constant 0 : index
    %c0_180 = arith.constant 0 : index
    %c0_181 = arith.constant 0 : index
    %260 = vector.load %arg6[%c0_179, %c0_180, %c0_181] : memref<4x64x256xf32, #tpu.memory_space<vmem>>, vector<1x64x256xf32>
    %261 = vector.shape_cast %260 : vector<1x64x256xf32> to vector<64x256xf32>
    %cst_182 = arith.constant dense<0.000000e+00> : vector<8x256xf32>
    %262 = tpu.matmul %259, %261, %cst_182 {dimension_numbers = #tpu.dot_dimension_numbers<[1], [0], [0], [1], [0, 0, 1, 1], [], []>} : vector<8x64xf32>, vector<64x256xf32>, vector<8x256xf32> -> vector<8x256xf32>
    %c1_183 = arith.constant 1 : index
    %c0_184 = arith.constant 0 : index
    %c0_185 = arith.constant 0 : index
    %263 = vector.load %arg29[%c1_183, %c0_184, %c0_185] : memref<4x8x8xf32, #tpu.memory_space<vmem>>, vector<1x8x8xf32>
    %264 = vector.shape_cast %263 : vector<1x8x8xf32> to vector<8x8xf32>
    %cst_186 = arith.constant dense<0.000000e+00> : vector<8x64xf32>
    %265 = tpu.matmul %264, %256, %cst_186 {dimension_numbers = #tpu.dot_dimension_numbers<[1], [0], [0], [1], [0, 0, 1, 1], [], []>} : vector<8x8xf32>, vector<8x64xf32>, vector<8x64xf32> -> vector<8x64xf32>
    %c1_187 = arith.constant 1 : index
    %c0_188 = arith.constant 0 : index
    %c0_189 = arith.constant 0 : index
    %266 = vector.load %arg6[%c1_187, %c0_188, %c0_189] : memref<4x64x256xf32, #tpu.memory_space<vmem>>, vector<1x64x256xf32>
    %267 = vector.shape_cast %266 : vector<1x64x256xf32> to vector<64x256xf32>
    %cst_190 = arith.constant dense<0.000000e+00> : vector<8x256xf32>
    %268 = tpu.matmul %265, %267, %cst_190 {dimension_numbers = #tpu.dot_dimension_numbers<[1], [0], [0], [1], [0, 0, 1, 1], [], []>} : vector<8x64xf32>, vector<64x256xf32>, vector<8x256xf32> -> vector<8x256xf32>
    %269 = arith.addf %262, %268 : vector<8x256xf32>
    %c2_191 = arith.constant 2 : index
    %c0_192 = arith.constant 0 : index
    %c0_193 = arith.constant 0 : index
    %270 = vector.load %arg29[%c2_191, %c0_192, %c0_193] : memref<4x8x8xf32, #tpu.memory_space<vmem>>, vector<1x8x8xf32>
    %271 = vector.shape_cast %270 : vector<1x8x8xf32> to vector<8x8xf32>
    %cst_194 = arith.constant dense<0.000000e+00> : vector<8x64xf32>
    %272 = tpu.matmul %271, %256, %cst_194 {dimension_numbers = #tpu.dot_dimension_numbers<[1], [0], [0], [1], [0, 0, 1, 1], [], []>} : vector<8x8xf32>, vector<8x64xf32>, vector<8x64xf32> -> vector<8x64xf32>
    %c2_195 = arith.constant 2 : index
    %c0_196 = arith.constant 0 : index
    %c0_197 = arith.constant 0 : index
    %273 = vector.load %arg6[%c2_195, %c0_196, %c0_197] : memref<4x64x256xf32, #tpu.memory_space<vmem>>, vector<1x64x256xf32>
    %274 = vector.shape_cast %273 : vector<1x64x256xf32> to vector<64x256xf32>
    %cst_198 = arith.constant dense<0.000000e+00> : vector<8x256xf32>
    %275 = tpu.matmul %272, %274, %cst_198 {dimension_numbers = #tpu.dot_dimension_numbers<[1], [0], [0], [1], [0, 0, 1, 1], [], []>} : vector<8x64xf32>, vector<64x256xf32>, vector<8x256xf32> -> vector<8x256xf32>
    %276 = arith.addf %269, %275 : vector<8x256xf32>
    %c3_199 = arith.constant 3 : index
    %c0_200 = arith.constant 0 : index
    %c0_201 = arith.constant 0 : index
    %277 = vector.load %arg29[%c3_199, %c0_200, %c0_201] : memref<4x8x8xf32, #tpu.memory_space<vmem>>, vector<1x8x8xf32>
    %278 = vector.shape_cast %277 : vector<1x8x8xf32> to vector<8x8xf32>
    %cst_202 = arith.constant dense<0.000000e+00> : vector<8x64xf32>
    %279 = tpu.matmul %278, %256, %cst_202 {dimension_numbers = #tpu.dot_dimension_numbers<[1], [0], [0], [1], [0, 0, 1, 1], [], []>} : vector<8x8xf32>, vector<8x64xf32>, vector<8x64xf32> -> vector<8x64xf32>
    %c3_203 = arith.constant 3 : index
    %c0_204 = arith.constant 0 : index
    %c0_205 = arith.constant 0 : index
    %280 = vector.load %arg6[%c3_203, %c0_204, %c0_205] : memref<4x64x256xf32, #tpu.memory_space<vmem>>, vector<1x64x256xf32>
    %281 = vector.shape_cast %280 : vector<1x64x256xf32> to vector<64x256xf32>
    %cst_206 = arith.constant dense<0.000000e+00> : vector<8x256xf32>
    %282 = tpu.matmul %279, %281, %cst_206 {dimension_numbers = #tpu.dot_dimension_numbers<[1], [0], [0], [1], [0, 0, 1, 1], [], []>} : vector<8x64xf32>, vector<64x256xf32>, vector<8x256xf32> -> vector<8x256xf32>
    %283 = arith.addf %276, %282 : vector<8x256xf32>
    %c0_207 = arith.constant 0 : index
    %c0_208 = arith.constant 0 : index
    %284 = vector.load %arg30[%c0_207, %c0_208] : memref<8x1xf32, #tpu.memory_space<vmem>>, vector<8x1xf32>
    %285 = vector.broadcast %284 : vector<8x1xf32> to vector<8x256xf32>
    %286 = arith.addf %283, %285 : vector<8x256xf32>
    %cst_209 = arith.constant 0.000000e+00 : f32
    %287 = vector.broadcast %cst_209 : f32 to vector<8x256xf32>
    %288 = arith.maximumf %286, %287 : vector<8x256xf32>
    %c0_210 = arith.constant 0 : index
    %c0_211 = arith.constant 0 : index
    %289 = vector.load %arg31[%c0_210, %c0_211] : memref<8x8xf32, #tpu.memory_space<vmem>>, vector<8x8xf32>
    %cst_212 = arith.constant dense<0.000000e+00> : vector<8x256xf32>
    %290 = tpu.matmul %289, %288, %cst_212 {dimension_numbers = #tpu.dot_dimension_numbers<[1], [0], [0], [1], [0, 0, 1, 1], [], []>} : vector<8x8xf32>, vector<8x256xf32>, vector<8x256xf32> -> vector<8x256xf32>
    %c0_213 = arith.constant 0 : index
    %c0_214 = arith.constant 0 : index
    %291 = vector.load %arg32[%c0_213, %c0_214] : memref<8x1xf32, #tpu.memory_space<vmem>>, vector<8x1xf32>
    %292 = vector.broadcast %291 : vector<8x1xf32> to vector<8x256xf32>
    %293 = arith.addf %290, %292 : vector<8x256xf32>
    %cst_215 = arith.constant 0.000000e+00 : f32
    %294 = vector.broadcast %cst_215 : f32 to vector<8x256xf32>
    %295 = arith.maximumf %293, %294 : vector<8x256xf32>
    %c0_216 = arith.constant 0 : index
    %c0_217 = arith.constant 0 : index
    %296 = vector.load %arg33[%c0_216, %c0_217] : memref<8x72xf32, #tpu.memory_space<vmem>>, vector<8x72xf32>
    %c17_i32_218 = arith.constant 17 : i32
    %297 = tpu.dynamic_rotate %295 by %c17_i32_218 dim 1 : vector<8x256xf32>, i32 -> vector<8x256xf32>
    %298 = vector.broadcast %1 : vector<1x256xf32> to vector<8x256xf32>
    %299 = arith.mulf %297, %298 : vector<8x256xf32>
    %c16_i32_219 = arith.constant 16 : i32
    %300 = tpu.dynamic_rotate %295 by %c16_i32_219 dim 1 : vector<8x256xf32>, i32 -> vector<8x256xf32>
    %301 = vector.broadcast %3 : vector<1x256xf32> to vector<8x256xf32>
    %302 = arith.mulf %300, %301 : vector<8x256xf32>
    %c15_i32_220 = arith.constant 15 : i32
    %303 = tpu.dynamic_rotate %295 by %c15_i32_220 dim 1 : vector<8x256xf32>, i32 -> vector<8x256xf32>
    %304 = vector.broadcast %5 : vector<1x256xf32> to vector<8x256xf32>
    %305 = arith.mulf %303, %304 : vector<8x256xf32>
    %c1_i32_221 = arith.constant 1 : i32
    %306 = tpu.dynamic_rotate %295 by %c1_i32_221 dim 1 : vector<8x256xf32>, i32 -> vector<8x256xf32>
    %307 = vector.broadcast %7 : vector<1x256xf32> to vector<8x256xf32>
    %308 = arith.mulf %306, %307 : vector<8x256xf32>
    %c255_i32_222 = arith.constant 255 : i32
    %309 = tpu.dynamic_rotate %295 by %c255_i32_222 dim 1 : vector<8x256xf32>, i32 -> vector<8x256xf32>
    %310 = vector.broadcast %9 : vector<1x256xf32> to vector<8x256xf32>
    %311 = arith.mulf %309, %310 : vector<8x256xf32>
    %c241_i32_223 = arith.constant 241 : i32
    %312 = tpu.dynamic_rotate %295 by %c241_i32_223 dim 1 : vector<8x256xf32>, i32 -> vector<8x256xf32>
    %313 = vector.broadcast %11 : vector<1x256xf32> to vector<8x256xf32>
    %314 = arith.mulf %312, %313 : vector<8x256xf32>
    %c240_i32_224 = arith.constant 240 : i32
    %315 = tpu.dynamic_rotate %295 by %c240_i32_224 dim 1 : vector<8x256xf32>, i32 -> vector<8x256xf32>
    %316 = vector.broadcast %13 : vector<1x256xf32> to vector<8x256xf32>
    %317 = arith.mulf %315, %316 : vector<8x256xf32>
    %c239_i32_225 = arith.constant 239 : i32
    %318 = tpu.dynamic_rotate %295 by %c239_i32_225 dim 1 : vector<8x256xf32>, i32 -> vector<8x256xf32>
    %319 = vector.broadcast %15 : vector<1x256xf32> to vector<8x256xf32>
    %320 = arith.mulf %318, %319 : vector<8x256xf32>
    %321 = tpu.concatenate %299, %302, %305, %308, %295, %311, %314, %317, %320 in 0 : vector<8x256xf32>, vector<8x256xf32>, vector<8x256xf32>, vector<8x256xf32>, vector<8x256xf32>, vector<8x256xf32>, vector<8x256xf32>, vector<8x256xf32>, vector<8x256xf32> -> vector<72x256xf32>
    %cst_226 = arith.constant dense<0.000000e+00> : vector<8x256xf32>
    %322 = tpu.matmul %296, %321, %cst_226 {dimension_numbers = #tpu.dot_dimension_numbers<[1], [0], [0], [1], [0, 0, 1, 1], [], []>} : vector<8x72xf32>, vector<72x256xf32>, vector<8x256xf32> -> vector<8x256xf32>
    %c0_227 = arith.constant 0 : index
    %c0_228 = arith.constant 0 : index
    %323 = vector.load %arg34[%c0_227, %c0_228] : memref<8x1xf32, #tpu.memory_space<vmem>>, vector<8x1xf32>
    %324 = vector.broadcast %323 : vector<8x1xf32> to vector<8x256xf32>
    %325 = arith.addf %322, %324 : vector<8x256xf32>
    %cst_229 = arith.constant 0.000000e+00 : f32
    %326 = vector.broadcast %cst_229 : f32 to vector<8x256xf32>
    %327 = arith.maximumf %325, %326 : vector<8x256xf32>
    %c0_230 = arith.constant 0 : index
    %c0_231 = arith.constant 0 : index
    %328 = vector.load %arg35[%c0_230, %c0_231] : memref<8x8xf32, #tpu.memory_space<vmem>>, vector<8x8xf32>
    %cst_232 = arith.constant dense<0.000000e+00> : vector<8x256xf32>
    %329 = tpu.matmul %328, %327, %cst_232 {dimension_numbers = #tpu.dot_dimension_numbers<[1], [0], [0], [1], [0, 0, 1, 1], [], []>} : vector<8x8xf32>, vector<8x256xf32>, vector<8x256xf32> -> vector<8x256xf32>
    %c0_233 = arith.constant 0 : index
    %c0_234 = arith.constant 0 : index
    %330 = vector.load %arg36[%c0_233, %c0_234] : memref<8x1xf32, #tpu.memory_space<vmem>>, vector<8x1xf32>
    %331 = vector.broadcast %330 : vector<8x1xf32> to vector<8x256xf32>
    %332 = arith.addf %329, %331 : vector<8x256xf32>
    %cst_235 = arith.constant dense<0.000000e+00> : vector<8xf32>
    %333 = vector.multi_reduction <add>, %332, %cst_235 [1] : vector<8x256xf32> to vector<8xf32>
    %334 = vector.shape_cast %333 : vector<8xf32> to vector<8x1xf32>
    %cst_236 = arith.constant 2.560000e+02 : f32
    %335 = vector.broadcast %cst_236 : f32 to vector<8x1xf32>
    %336 = arith.divf %334, %335 : vector<8x1xf32>
    %c0_237 = arith.constant 0 : index
    %c0_238 = arith.constant 0 : index
    %337 = vector.load %arg37[%c0_237, %c0_238] : memref<8x1xf32, #tpu.memory_space<vmem>>, vector<8x1xf32>
    %338 = arith.mulf %337, %336 : vector<8x1xf32>
    %cst_239 = arith.constant dense<0.000000e+00> : vector<1xf32>
    %339 = vector.multi_reduction <add>, %338, %cst_239 [0] : vector<8x1xf32> to vector<1xf32>
    %340 = vector.shape_cast %339 : vector<1xf32> to vector<1x1xf32>
    %cst_240 = arith.constant 0.000000e+00 : f32
    %341 = vector.broadcast %cst_240 : f32 to vector<1x1xf32>
    %342 = arith.maximumf %340, %341 : vector<1x1xf32>
    %c0_241 = arith.constant 0 : index
    %c0_242 = arith.constant 0 : index
    %343 = vector.load %arg38[%c0_241, %c0_242] : memref<8x1xf32, #tpu.memory_space<vmem>>, vector<8x1xf32>
    %344 = vector.broadcast %342 : vector<1x1xf32> to vector<8x1xf32>
    %345 = arith.mulf %343, %344 : vector<8x1xf32>
    %cst_243 = arith.constant dense<0.000000e+00> : vector<8xf32>
    %346 = vector.multi_reduction <add>, %345, %cst_243 [1] : vector<8x1xf32> to vector<8xf32>
    %347 = vector.shape_cast %346 : vector<8xf32> to vector<8x1xf32>
    %348 = arith.negf %347 : vector<8x1xf32>
    %349 = math.exp %348 : vector<8x1xf32>
    %cst_244 = arith.constant 1.000000e+00 : f32
    %350 = vector.broadcast %cst_244 : f32 to vector<8x1xf32>
    %351 = arith.addf %350, %349 : vector<8x1xf32>
    %352 = arith.divf %350, %351 : vector<8x1xf32>
    %353 = vector.broadcast %352 : vector<8x1xf32> to vector<8x256xf32>
    %354 = arith.mulf %332, %353 : vector<8x256xf32>
    %355 = arith.addf %354, %288 : vector<8x256xf32>
    %cst_245 = arith.constant 0.000000e+00 : f32
    %356 = vector.broadcast %cst_245 : f32 to vector<8x256xf32>
    %357 = arith.maximumf %355, %356 : vector<8x256xf32>
    %c0_246 = arith.constant 0 : index
    %c0_247 = arith.constant 0 : index
    %358 = vector.load %arg39[%c0_246, %c0_247] : memref<8x8xf32, #tpu.memory_space<vmem>>, vector<8x8xf32>
    %cst_248 = arith.constant dense<0.000000e+00> : vector<8x256xf32>
    %359 = tpu.matmul %358, %357, %cst_248 {dimension_numbers = #tpu.dot_dimension_numbers<[1], [0], [0], [1], [0, 0, 1, 1], [], []>} : vector<8x8xf32>, vector<8x256xf32>, vector<8x256xf32> -> vector<8x256xf32>
    %c0_249 = arith.constant 0 : index
    %c0_250 = arith.constant 0 : index
    %360 = vector.load %arg40[%c0_249, %c0_250] : memref<8x1xf32, #tpu.memory_space<vmem>>, vector<8x1xf32>
    %361 = vector.broadcast %360 : vector<8x1xf32> to vector<8x256xf32>
    %362 = arith.addf %359, %361 : vector<8x256xf32>
    %cst_251 = arith.constant 0.000000e+00 : f32
    %363 = vector.broadcast %cst_251 : f32 to vector<8x256xf32>
    %364 = arith.maximumf %362, %363 : vector<8x256xf32>
    %c0_252 = arith.constant 0 : index
    %c0_253 = arith.constant 0 : index
    %365 = vector.load %arg41[%c0_252, %c0_253] : memref<8x72xf32, #tpu.memory_space<vmem>>, vector<8x72xf32>
    %c17_i32_254 = arith.constant 17 : i32
    %366 = tpu.dynamic_rotate %364 by %c17_i32_254 dim 1 : vector<8x256xf32>, i32 -> vector<8x256xf32>
    %367 = vector.broadcast %1 : vector<1x256xf32> to vector<8x256xf32>
    %368 = arith.mulf %366, %367 : vector<8x256xf32>
    %c16_i32_255 = arith.constant 16 : i32
    %369 = tpu.dynamic_rotate %364 by %c16_i32_255 dim 1 : vector<8x256xf32>, i32 -> vector<8x256xf32>
    %370 = vector.broadcast %3 : vector<1x256xf32> to vector<8x256xf32>
    %371 = arith.mulf %369, %370 : vector<8x256xf32>
    %c15_i32_256 = arith.constant 15 : i32
    %372 = tpu.dynamic_rotate %364 by %c15_i32_256 dim 1 : vector<8x256xf32>, i32 -> vector<8x256xf32>
    %373 = vector.broadcast %5 : vector<1x256xf32> to vector<8x256xf32>
    %374 = arith.mulf %372, %373 : vector<8x256xf32>
    %c1_i32_257 = arith.constant 1 : i32
    %375 = tpu.dynamic_rotate %364 by %c1_i32_257 dim 1 : vector<8x256xf32>, i32 -> vector<8x256xf32>
    %376 = vector.broadcast %7 : vector<1x256xf32> to vector<8x256xf32>
    %377 = arith.mulf %375, %376 : vector<8x256xf32>
    %c255_i32_258 = arith.constant 255 : i32
    %378 = tpu.dynamic_rotate %364 by %c255_i32_258 dim 1 : vector<8x256xf32>, i32 -> vector<8x256xf32>
    %379 = vector.broadcast %9 : vector<1x256xf32> to vector<8x256xf32>
    %380 = arith.mulf %378, %379 : vector<8x256xf32>
    %c241_i32_259 = arith.constant 241 : i32
    %381 = tpu.dynamic_rotate %364 by %c241_i32_259 dim 1 : vector<8x256xf32>, i32 -> vector<8x256xf32>
    %382 = vector.broadcast %11 : vector<1x256xf32> to vector<8x256xf32>
    %383 = arith.mulf %381, %382 : vector<8x256xf32>
    %c240_i32_260 = arith.constant 240 : i32
    %384 = tpu.dynamic_rotate %364 by %c240_i32_260 dim 1 : vector<8x256xf32>, i32 -> vector<8x256xf32>
    %385 = vector.broadcast %13 : vector<1x256xf32> to vector<8x256xf32>
    %386 = arith.mulf %384, %385 : vector<8x256xf32>
    %c239_i32_261 = arith.constant 239 : i32
    %387 = tpu.dynamic_rotate %364 by %c239_i32_261 dim 1 : vector<8x256xf32>, i32 -> vector<8x256xf32>
    %388 = vector.broadcast %15 : vector<1x256xf32> to vector<8x256xf32>
    %389 = arith.mulf %387, %388 : vector<8x256xf32>
    %390 = tpu.concatenate %368, %371, %374, %377, %364, %380, %383, %386, %389 in 0 : vector<8x256xf32>, vector<8x256xf32>, vector<8x256xf32>, vector<8x256xf32>, vector<8x256xf32>, vector<8x256xf32>, vector<8x256xf32>, vector<8x256xf32>, vector<8x256xf32> -> vector<72x256xf32>
    %cst_262 = arith.constant dense<0.000000e+00> : vector<8x256xf32>
    %391 = tpu.matmul %365, %390, %cst_262 {dimension_numbers = #tpu.dot_dimension_numbers<[1], [0], [0], [1], [0, 0, 1, 1], [], []>} : vector<8x72xf32>, vector<72x256xf32>, vector<8x256xf32> -> vector<8x256xf32>
    %c0_263 = arith.constant 0 : index
    %c0_264 = arith.constant 0 : index
    %392 = vector.load %arg42[%c0_263, %c0_264] : memref<8x1xf32, #tpu.memory_space<vmem>>, vector<8x1xf32>
    %393 = vector.broadcast %392 : vector<8x1xf32> to vector<8x256xf32>
    %394 = arith.addf %391, %393 : vector<8x256xf32>
    %cst_265 = arith.constant 0.000000e+00 : f32
    %395 = vector.broadcast %cst_265 : f32 to vector<8x256xf32>
    %396 = arith.maximumf %394, %395 : vector<8x256xf32>
    %c0_266 = arith.constant 0 : index
    %c0_267 = arith.constant 0 : index
    %397 = vector.load %arg43[%c0_266, %c0_267] : memref<8x8xf32, #tpu.memory_space<vmem>>, vector<8x8xf32>
    %cst_268 = arith.constant dense<0.000000e+00> : vector<8x256xf32>
    %398 = tpu.matmul %397, %396, %cst_268 {dimension_numbers = #tpu.dot_dimension_numbers<[1], [0], [0], [1], [0, 0, 1, 1], [], []>} : vector<8x8xf32>, vector<8x256xf32>, vector<8x256xf32> -> vector<8x256xf32>
    %c0_269 = arith.constant 0 : index
    %c0_270 = arith.constant 0 : index
    %399 = vector.load %arg44[%c0_269, %c0_270] : memref<8x1xf32, #tpu.memory_space<vmem>>, vector<8x1xf32>
    %400 = vector.broadcast %399 : vector<8x1xf32> to vector<8x256xf32>
    %401 = arith.addf %398, %400 : vector<8x256xf32>
    %cst_271 = arith.constant dense<0.000000e+00> : vector<8xf32>
    %402 = vector.multi_reduction <add>, %401, %cst_271 [1] : vector<8x256xf32> to vector<8xf32>
    %403 = vector.shape_cast %402 : vector<8xf32> to vector<8x1xf32>
    %cst_272 = arith.constant 2.560000e+02 : f32
    %404 = vector.broadcast %cst_272 : f32 to vector<8x1xf32>
    %405 = arith.divf %403, %404 : vector<8x1xf32>
    %c0_273 = arith.constant 0 : index
    %c0_274 = arith.constant 0 : index
    %406 = vector.load %arg45[%c0_273, %c0_274] : memref<8x1xf32, #tpu.memory_space<vmem>>, vector<8x1xf32>
    %407 = arith.mulf %406, %405 : vector<8x1xf32>
    %cst_275 = arith.constant dense<0.000000e+00> : vector<1xf32>
    %408 = vector.multi_reduction <add>, %407, %cst_275 [0] : vector<8x1xf32> to vector<1xf32>
    %409 = vector.shape_cast %408 : vector<1xf32> to vector<1x1xf32>
    %cst_276 = arith.constant 0.000000e+00 : f32
    %410 = vector.broadcast %cst_276 : f32 to vector<1x1xf32>
    %411 = arith.maximumf %409, %410 : vector<1x1xf32>
    %c0_277 = arith.constant 0 : index
    %c0_278 = arith.constant 0 : index
    %412 = vector.load %arg46[%c0_277, %c0_278] : memref<8x1xf32, #tpu.memory_space<vmem>>, vector<8x1xf32>
    %413 = vector.broadcast %411 : vector<1x1xf32> to vector<8x1xf32>
    %414 = arith.mulf %412, %413 : vector<8x1xf32>
    %cst_279 = arith.constant dense<0.000000e+00> : vector<8xf32>
    %415 = vector.multi_reduction <add>, %414, %cst_279 [1] : vector<8x1xf32> to vector<8xf32>
    %416 = vector.shape_cast %415 : vector<8xf32> to vector<8x1xf32>
    %417 = arith.negf %416 : vector<8x1xf32>
    %418 = math.exp %417 : vector<8x1xf32>
    %cst_280 = arith.constant 1.000000e+00 : f32
    %419 = vector.broadcast %cst_280 : f32 to vector<8x1xf32>
    %420 = arith.addf %419, %418 : vector<8x1xf32>
    %421 = arith.divf %419, %420 : vector<8x1xf32>
    %422 = vector.broadcast %421 : vector<8x1xf32> to vector<8x256xf32>
    %423 = arith.mulf %401, %422 : vector<8x256xf32>
    %424 = arith.addf %423, %357 : vector<8x256xf32>
    %cst_281 = arith.constant 0.000000e+00 : f32
    %425 = vector.broadcast %cst_281 : f32 to vector<8x256xf32>
    %426 = arith.maximumf %424, %425 : vector<8x256xf32>
    %c0_282 = arith.constant 0 : index
    %c0_283 = arith.constant 0 : index
    %427 = vector.load %arg47[%c0_282, %c0_283] : memref<8x8xf32, #tpu.memory_space<vmem>>, vector<8x8xf32>
    %cst_284 = arith.constant dense<0.000000e+00> : vector<8x256xf32>
    %428 = tpu.matmul %427, %426, %cst_284 {dimension_numbers = #tpu.dot_dimension_numbers<[1], [0], [0], [1], [0, 0, 1, 1], [], []>} : vector<8x8xf32>, vector<8x256xf32>, vector<8x256xf32> -> vector<8x256xf32>
    %c0_285 = arith.constant 0 : index
    %c0_286 = arith.constant 0 : index
    %429 = vector.load %arg48[%c0_285, %c0_286] : memref<8x1xf32, #tpu.memory_space<vmem>>, vector<8x1xf32>
    %430 = vector.broadcast %429 : vector<8x1xf32> to vector<8x256xf32>
    %431 = arith.addf %428, %430 : vector<8x256xf32>
    %cst_287 = arith.constant 0.000000e+00 : f32
    %432 = vector.broadcast %cst_287 : f32 to vector<8x256xf32>
    %433 = arith.maximumf %431, %432 : vector<8x256xf32>
    %c0_288 = arith.constant 0 : index
    %c0_289 = arith.constant 0 : index
    %434 = vector.load %arg49[%c0_288, %c0_289] : memref<8x72xf32, #tpu.memory_space<vmem>>, vector<8x72xf32>
    %c17_i32_290 = arith.constant 17 : i32
    %435 = tpu.dynamic_rotate %433 by %c17_i32_290 dim 1 : vector<8x256xf32>, i32 -> vector<8x256xf32>
    %436 = vector.broadcast %1 : vector<1x256xf32> to vector<8x256xf32>
    %437 = arith.mulf %435, %436 : vector<8x256xf32>
    %c16_i32_291 = arith.constant 16 : i32
    %438 = tpu.dynamic_rotate %433 by %c16_i32_291 dim 1 : vector<8x256xf32>, i32 -> vector<8x256xf32>
    %439 = vector.broadcast %3 : vector<1x256xf32> to vector<8x256xf32>
    %440 = arith.mulf %438, %439 : vector<8x256xf32>
    %c15_i32_292 = arith.constant 15 : i32
    %441 = tpu.dynamic_rotate %433 by %c15_i32_292 dim 1 : vector<8x256xf32>, i32 -> vector<8x256xf32>
    %442 = vector.broadcast %5 : vector<1x256xf32> to vector<8x256xf32>
    %443 = arith.mulf %441, %442 : vector<8x256xf32>
    %c1_i32_293 = arith.constant 1 : i32
    %444 = tpu.dynamic_rotate %433 by %c1_i32_293 dim 1 : vector<8x256xf32>, i32 -> vector<8x256xf32>
    %445 = vector.broadcast %7 : vector<1x256xf32> to vector<8x256xf32>
    %446 = arith.mulf %444, %445 : vector<8x256xf32>
    %c255_i32_294 = arith.constant 255 : i32
    %447 = tpu.dynamic_rotate %433 by %c255_i32_294 dim 1 : vector<8x256xf32>, i32 -> vector<8x256xf32>
    %448 = vector.broadcast %9 : vector<1x256xf32> to vector<8x256xf32>
    %449 = arith.mulf %447, %448 : vector<8x256xf32>
    %c241_i32_295 = arith.constant 241 : i32
    %450 = tpu.dynamic_rotate %433 by %c241_i32_295 dim 1 : vector<8x256xf32>, i32 -> vector<8x256xf32>
    %451 = vector.broadcast %11 : vector<1x256xf32> to vector<8x256xf32>
    %452 = arith.mulf %450, %451 : vector<8x256xf32>
    %c240_i32_296 = arith.constant 240 : i32
    %453 = tpu.dynamic_rotate %433 by %c240_i32_296 dim 1 : vector<8x256xf32>, i32 -> vector<8x256xf32>
    %454 = vector.broadcast %13 : vector<1x256xf32> to vector<8x256xf32>
    %455 = arith.mulf %453, %454 : vector<8x256xf32>
    %c239_i32_297 = arith.constant 239 : i32
    %456 = tpu.dynamic_rotate %433 by %c239_i32_297 dim 1 : vector<8x256xf32>, i32 -> vector<8x256xf32>
    %457 = vector.broadcast %15 : vector<1x256xf32> to vector<8x256xf32>
    %458 = arith.mulf %456, %457 : vector<8x256xf32>
    %459 = tpu.concatenate %437, %440, %443, %446, %433, %449, %452, %455, %458 in 0 : vector<8x256xf32>, vector<8x256xf32>, vector<8x256xf32>, vector<8x256xf32>, vector<8x256xf32>, vector<8x256xf32>, vector<8x256xf32>, vector<8x256xf32>, vector<8x256xf32> -> vector<72x256xf32>
    %cst_298 = arith.constant dense<0.000000e+00> : vector<8x256xf32>
    %460 = tpu.matmul %434, %459, %cst_298 {dimension_numbers = #tpu.dot_dimension_numbers<[1], [0], [0], [1], [0, 0, 1, 1], [], []>} : vector<8x72xf32>, vector<72x256xf32>, vector<8x256xf32> -> vector<8x256xf32>
    %c0_299 = arith.constant 0 : index
    %c0_300 = arith.constant 0 : index
    %461 = vector.load %arg50[%c0_299, %c0_300] : memref<8x1xf32, #tpu.memory_space<vmem>>, vector<8x1xf32>
    %462 = vector.broadcast %461 : vector<8x1xf32> to vector<8x256xf32>
    %463 = arith.addf %460, %462 : vector<8x256xf32>
    %cst_301 = arith.constant 0.000000e+00 : f32
    %464 = vector.broadcast %cst_301 : f32 to vector<8x256xf32>
    %465 = arith.maximumf %463, %464 : vector<8x256xf32>
    %c0_302 = arith.constant 0 : index
    %c0_303 = arith.constant 0 : index
    %466 = vector.load %arg51[%c0_302, %c0_303] : memref<8x8xf32, #tpu.memory_space<vmem>>, vector<8x8xf32>
    %cst_304 = arith.constant dense<0.000000e+00> : vector<8x256xf32>
    %467 = tpu.matmul %466, %465, %cst_304 {dimension_numbers = #tpu.dot_dimension_numbers<[1], [0], [0], [1], [0, 0, 1, 1], [], []>} : vector<8x8xf32>, vector<8x256xf32>, vector<8x256xf32> -> vector<8x256xf32>
    %c0_305 = arith.constant 0 : index
    %c0_306 = arith.constant 0 : index
    %468 = vector.load %arg52[%c0_305, %c0_306] : memref<8x1xf32, #tpu.memory_space<vmem>>, vector<8x1xf32>
    %469 = vector.broadcast %468 : vector<8x1xf32> to vector<8x256xf32>
    %470 = arith.addf %467, %469 : vector<8x256xf32>
    %cst_307 = arith.constant dense<0.000000e+00> : vector<8xf32>
    %471 = vector.multi_reduction <add>, %470, %cst_307 [1] : vector<8x256xf32> to vector<8xf32>
    %472 = vector.shape_cast %471 : vector<8xf32> to vector<8x1xf32>
    %cst_308 = arith.constant 2.560000e+02 : f32
    %473 = vector.broadcast %cst_308 : f32 to vector<8x1xf32>
    %474 = arith.divf %472, %473 : vector<8x1xf32>
    %c0_309 = arith.constant 0 : index
    %c0_310 = arith.constant 0 : index
    %475 = vector.load %arg53[%c0_309, %c0_310] : memref<8x1xf32, #tpu.memory_space<vmem>>, vector<8x1xf32>
    %476 = arith.mulf %475, %474 : vector<8x1xf32>
    %cst_311 = arith.constant dense<0.000000e+00> : vector<1xf32>
    %477 = vector.multi_reduction <add>, %476, %cst_311 [0] : vector<8x1xf32> to vector<1xf32>
    %478 = vector.shape_cast %477 : vector<1xf32> to vector<1x1xf32>
    %cst_312 = arith.constant 0.000000e+00 : f32
    %479 = vector.broadcast %cst_312 : f32 to vector<1x1xf32>
    %480 = arith.maximumf %478, %479 : vector<1x1xf32>
    %c0_313 = arith.constant 0 : index
    %c0_314 = arith.constant 0 : index
    %481 = vector.load %arg54[%c0_313, %c0_314] : memref<8x1xf32, #tpu.memory_space<vmem>>, vector<8x1xf32>
    %482 = vector.broadcast %480 : vector<1x1xf32> to vector<8x1xf32>
    %483 = arith.mulf %481, %482 : vector<8x1xf32>
    %cst_315 = arith.constant dense<0.000000e+00> : vector<8xf32>
    %484 = vector.multi_reduction <add>, %483, %cst_315 [1] : vector<8x1xf32> to vector<8xf32>
    %485 = vector.shape_cast %484 : vector<8xf32> to vector<8x1xf32>
    %486 = arith.negf %485 : vector<8x1xf32>
    %487 = math.exp %486 : vector<8x1xf32>
    %cst_316 = arith.constant 1.000000e+00 : f32
    %488 = vector.broadcast %cst_316 : f32 to vector<8x1xf32>
    %489 = arith.addf %488, %487 : vector<8x1xf32>
    %490 = arith.divf %488, %489 : vector<8x1xf32>
    %491 = vector.broadcast %490 : vector<8x1xf32> to vector<8x256xf32>
    %492 = arith.mulf %470, %491 : vector<8x256xf32>
    %493 = arith.addf %492, %426 : vector<8x256xf32>
    %cst_317 = arith.constant 0.000000e+00 : f32
    %494 = vector.broadcast %cst_317 : f32 to vector<8x256xf32>
    %495 = arith.maximumf %493, %494 : vector<8x256xf32>
    %496 = tpu.concatenate %187, %495 in 0 : vector<8x256xf32>, vector<8x256xf32> -> vector<16x256xf32>
    %c0_318 = arith.constant 0 : index
    %c0_319 = arith.constant 0 : index
    %497 = vector.load %arg55[%c0_318, %c0_319] : memref<8x144xf32, #tpu.memory_space<vmem>>, vector<8x144xf32>
    %c17_i32_320 = arith.constant 17 : i32
    %498 = tpu.dynamic_rotate %496 by %c17_i32_320 dim 1 : vector<16x256xf32>, i32 -> vector<16x256xf32>
    %499 = vector.broadcast %1 : vector<1x256xf32> to vector<16x256xf32>
    %500 = arith.mulf %498, %499 : vector<16x256xf32>
    %c16_i32_321 = arith.constant 16 : i32
    %501 = tpu.dynamic_rotate %496 by %c16_i32_321 dim 1 : vector<16x256xf32>, i32 -> vector<16x256xf32>
    %502 = vector.broadcast %3 : vector<1x256xf32> to vector<16x256xf32>
    %503 = arith.mulf %501, %502 : vector<16x256xf32>
    %c15_i32_322 = arith.constant 15 : i32
    %504 = tpu.dynamic_rotate %496 by %c15_i32_322 dim 1 : vector<16x256xf32>, i32 -> vector<16x256xf32>
    %505 = vector.broadcast %5 : vector<1x256xf32> to vector<16x256xf32>
    %506 = arith.mulf %504, %505 : vector<16x256xf32>
    %c1_i32_323 = arith.constant 1 : i32
    %507 = tpu.dynamic_rotate %496 by %c1_i32_323 dim 1 : vector<16x256xf32>, i32 -> vector<16x256xf32>
    %508 = vector.broadcast %7 : vector<1x256xf32> to vector<16x256xf32>
    %509 = arith.mulf %507, %508 : vector<16x256xf32>
    %c255_i32_324 = arith.constant 255 : i32
    %510 = tpu.dynamic_rotate %496 by %c255_i32_324 dim 1 : vector<16x256xf32>, i32 -> vector<16x256xf32>
    %511 = vector.broadcast %9 : vector<1x256xf32> to vector<16x256xf32>
    %512 = arith.mulf %510, %511 : vector<16x256xf32>
    %c241_i32_325 = arith.constant 241 : i32
    %513 = tpu.dynamic_rotate %496 by %c241_i32_325 dim 1 : vector<16x256xf32>, i32 -> vector<16x256xf32>
    %514 = vector.broadcast %11 : vector<1x256xf32> to vector<16x256xf32>
    %515 = arith.mulf %513, %514 : vector<16x256xf32>
    %c240_i32_326 = arith.constant 240 : i32
    %516 = tpu.dynamic_rotate %496 by %c240_i32_326 dim 1 : vector<16x256xf32>, i32 -> vector<16x256xf32>
    %517 = vector.broadcast %13 : vector<1x256xf32> to vector<16x256xf32>
    %518 = arith.mulf %516, %517 : vector<16x256xf32>
    %c239_i32_327 = arith.constant 239 : i32
    %519 = tpu.dynamic_rotate %496 by %c239_i32_327 dim 1 : vector<16x256xf32>, i32 -> vector<16x256xf32>
    %520 = vector.broadcast %15 : vector<1x256xf32> to vector<16x256xf32>
    %521 = arith.mulf %519, %520 : vector<16x256xf32>
    %522 = tpu.concatenate %500, %503, %506, %509, %496, %512, %515, %518, %521 in 0 : vector<16x256xf32>, vector<16x256xf32>, vector<16x256xf32>, vector<16x256xf32>, vector<16x256xf32>, vector<16x256xf32>, vector<16x256xf32>, vector<16x256xf32>, vector<16x256xf32> -> vector<144x256xf32>
    %cst_328 = arith.constant dense<0.000000e+00> : vector<8x256xf32>
    %523 = tpu.matmul %497, %522, %cst_328 {dimension_numbers = #tpu.dot_dimension_numbers<[1], [0], [0], [1], [0, 0, 1, 1], [], []>} : vector<8x144xf32>, vector<144x256xf32>, vector<8x256xf32> -> vector<8x256xf32>
    %c0_329 = arith.constant 0 : index
    %c0_330 = arith.constant 0 : index
    %524 = vector.load %arg56[%c0_329, %c0_330] : memref<8x1xf32, #tpu.memory_space<vmem>>, vector<8x1xf32>
    %525 = vector.broadcast %524 : vector<8x1xf32> to vector<8x256xf32>
    %526 = arith.addf %523, %525 : vector<8x256xf32>
    %cst_331 = arith.constant 0.000000e+00 : f32
    %527 = vector.broadcast %cst_331 : f32 to vector<8x256xf32>
    %528 = arith.maximumf %526, %527 : vector<8x256xf32>
    %c0_332 = arith.constant 0 : index
    %c0_333 = arith.constant 0 : index
    %529 = vector.load %arg57[%c0_332, %c0_333] : memref<3x8xf32, #tpu.memory_space<vmem>>, vector<3x8xf32>
    %cst_334 = arith.constant dense<0.000000e+00> : vector<3x256xf32>
    %530 = tpu.matmul %529, %528, %cst_334 {dimension_numbers = #tpu.dot_dimension_numbers<[1], [0], [0], [1], [0, 0, 1, 1], [], []>} : vector<3x8xf32>, vector<8x256xf32>, vector<3x256xf32> -> vector<3x256xf32>
    %c0_335 = arith.constant 0 : index
    %c0_336 = arith.constant 0 : index
    %531 = vector.load %arg58[%c0_335, %c0_336] : memref<3x8xf32, #tpu.memory_space<vmem>>, vector<3x8xf32>
    %cst_337 = arith.constant dense<0.000000e+00> : vector<3x256xf32>
    %532 = tpu.matmul %531, %17, %cst_337 {dimension_numbers = #tpu.dot_dimension_numbers<[1], [0], [0], [1], [0, 0, 1, 1], [], []>} : vector<3x8xf32>, vector<8x256xf32>, vector<3x256xf32> -> vector<3x256xf32>
    %533 = arith.addf %530, %532 : vector<3x256xf32>
    %c0_338 = arith.constant 0 : index
    %c0_339 = arith.constant 0 : index
    %534 = vector.load %arg59[%c0_338, %c0_339] : memref<3x1xf32, #tpu.memory_space<vmem>>, vector<3x1xf32>
    %535 = vector.broadcast %534 : vector<3x1xf32> to vector<3x256xf32>
    %536 = arith.addf %533, %535 : vector<3x256xf32>
    %c0_340 = arith.constant 0 : index
    %c0_341 = arith.constant 0 : index
    %c0_342 = arith.constant 0 : index
    %537 = vector.load %arg60[%c0_340, %c0_341, %c0_342] : memref<1x3x256xf32, #tpu.memory_space<vmem>>, vector<1x3x256xf32>
    %538 = vector.shape_cast %537 : vector<1x3x256xf32> to vector<3x256xf32>
    %539 = vector.shape_cast %536 : vector<3x256xf32> to vector<1x3x256xf32>
    tpu.vector_store %arg60[%c0_340, %c0_341, %c0_342], %539 {strides = array<i32>} : memref<1x3x256xf32, #tpu.memory_space<vmem>>, vector<1x3x256xf32>,
    return
  }
  func.func @transform_0(%arg0: i32) -> (i32, i32, i32) {
    %c0_i32 = arith.constant 0 : i32
    %c0_i32_0 = arith.constant 0 : i32
    %c0_i32_1 = arith.constant 0 : i32
    return %arg0, %c0_i32, %c0_i32_0 : i32, i32, i32
  }
  func.func @transform_1(%arg0: i32) -> (i32, i32, i32) {
    %c0_i32 = arith.constant 0 : i32
    %c0_i32_0 = arith.constant 0 : i32
    %c0_i32_1 = arith.constant 0 : i32
    return %arg0, %c0_i32, %c0_i32_0 : i32, i32, i32
  }
  func.func @transform_2(%arg0: i32) -> (i32, i32, i32) {
    %c0_i32 = arith.constant 0 : i32
    %c0_i32_0 = arith.constant 0 : i32
    %c0_i32_1 = arith.constant 0 : i32
    %c0_i32_2 = arith.constant 0 : i32
    return %c0_i32, %c0_i32_0, %c0_i32_1 : i32, i32, i32
  }
  func.func @transform_3(%arg0: i32) -> (i32, i32, i32) {
    %c0_i32 = arith.constant 0 : i32
    %c0_i32_0 = arith.constant 0 : i32
    %c0_i32_1 = arith.constant 0 : i32
    %c0_i32_2 = arith.constant 0 : i32
    return %c0_i32, %c0_i32_0, %c0_i32_1 : i32, i32, i32
  }
  func.func @transform_4(%arg0: i32) -> (i32, i32, i32) {
    %c0_i32 = arith.constant 0 : i32
    %c0_i32_0 = arith.constant 0 : i32
    %c0_i32_1 = arith.constant 0 : i32
    %c0_i32_2 = arith.constant 0 : i32
    return %c0_i32, %c0_i32_0, %c0_i32_1 : i32, i32, i32
  }
  func.func @transform_5(%arg0: i32) -> (i32, i32, i32) {
    %c0_i32 = arith.constant 0 : i32
    %c0_i32_0 = arith.constant 0 : i32
    %c0_i32_1 = arith.constant 0 : i32
    %c0_i32_2 = arith.constant 0 : i32
    return %c0_i32, %c0_i32_0, %c0_i32_1 : i32, i32, i32
  }
  func.func @transform_6(%arg0: i32) -> (i32, i32) {
    %c0_i32 = arith.constant 0 : i32
    %c0_i32_0 = arith.constant 0 : i32
    %c0_i32_1 = arith.constant 0 : i32
    return %c0_i32, %c0_i32_0 : i32, i32
  }
  func.func @transform_7(%arg0: i32) -> (i32, i32) {
    %c0_i32 = arith.constant 0 : i32
    %c0_i32_0 = arith.constant 0 : i32
    %c0_i32_1 = arith.constant 0 : i32
    return %c0_i32, %c0_i32_0 : i32, i32
  }
  func.func @transform_8(%arg0: i32) -> (i32, i32) {
    %c0_i32 = arith.constant 0 : i32
    %c0_i32_0 = arith.constant 0 : i32
    %c0_i32_1 = arith.constant 0 : i32
    return %c0_i32, %c0_i32_0 : i32, i32
  }
  func.func @transform_9(%arg0: i32) -> (i32, i32) {
    %c0_i32 = arith.constant 0 : i32
    %c0_i32_0 = arith.constant 0 : i32
    %c0_i32_1 = arith.constant 0 : i32
    return %c0_i32, %c0_i32_0 : i32, i32
  }
  func.func @transform_10(%arg0: i32) -> (i32, i32) {
    %c0_i32 = arith.constant 0 : i32
    %c0_i32_0 = arith.constant 0 : i32
    %c0_i32_1 = arith.constant 0 : i32
    return %c0_i32, %c0_i32_0 : i32, i32
  }
  func.func @transform_11(%arg0: i32) -> (i32, i32) {
    %c0_i32 = arith.constant 0 : i32
    %c0_i32_0 = arith.constant 0 : i32
    %c0_i32_1 = arith.constant 0 : i32
    return %c0_i32, %c0_i32_0 : i32, i32
  }
  func.func @transform_12(%arg0: i32) -> (i32, i32) {
    %c0_i32 = arith.constant 0 : i32
    %c0_i32_0 = arith.constant 0 : i32
    %c0_i32_1 = arith.constant 0 : i32
    return %c0_i32, %c0_i32_0 : i32, i32
  }
  func.func @transform_13(%arg0: i32) -> (i32, i32) {
    %c0_i32 = arith.constant 0 : i32
    %c0_i32_0 = arith.constant 0 : i32
    %c0_i32_1 = arith.constant 0 : i32
    return %c0_i32, %c0_i32_0 : i32, i32
  }
  func.func @transform_14(%arg0: i32) -> (i32, i32) {
    %c0_i32 = arith.constant 0 : i32
    %c0_i32_0 = arith.constant 0 : i32
    %c0_i32_1 = arith.constant 0 : i32
    return %c0_i32, %c0_i32_0 : i32, i32
  }
  func.func @transform_15(%arg0: i32) -> (i32, i32) {
    %c0_i32 = arith.constant 0 : i32
    %c0_i32_0 = arith.constant 0 : i32
    %c0_i32_1 = arith.constant 0 : i32
    return %c0_i32, %c0_i32_0 : i32, i32
  }
  func.func @transform_16(%arg0: i32) -> (i32, i32) {
    %c0_i32 = arith.constant 0 : i32
    %c0_i32_0 = arith.constant 0 : i32
    %c0_i32_1 = arith.constant 0 : i32
    return %c0_i32, %c0_i32_0 : i32, i32
  }
  func.func @transform_17(%arg0: i32) -> (i32, i32) {
    %c0_i32 = arith.constant 0 : i32
    %c0_i32_0 = arith.constant 0 : i32
    %c0_i32_1 = arith.constant 0 : i32
    return %c0_i32, %c0_i32_0 : i32, i32
  }
  func.func @transform_18(%arg0: i32) -> (i32, i32) {
    %c0_i32 = arith.constant 0 : i32
    %c0_i32_0 = arith.constant 0 : i32
    %c0_i32_1 = arith.constant 0 : i32
    return %c0_i32, %c0_i32_0 : i32, i32
  }
  func.func @transform_19(%arg0: i32) -> (i32, i32) {
    %c0_i32 = arith.constant 0 : i32
    %c0_i32_0 = arith.constant 0 : i32
    %c0_i32_1 = arith.constant 0 : i32
    return %c0_i32, %c0_i32_0 : i32, i32
  }
  func.func @transform_20(%arg0: i32) -> (i32, i32) {
    %c0_i32 = arith.constant 0 : i32
    %c0_i32_0 = arith.constant 0 : i32
    %c0_i32_1 = arith.constant 0 : i32
    return %c0_i32, %c0_i32_0 : i32, i32
  }
  func.func @transform_21(%arg0: i32) -> (i32, i32) {
    %c0_i32 = arith.constant 0 : i32
    %c0_i32_0 = arith.constant 0 : i32
    %c0_i32_1 = arith.constant 0 : i32
    return %c0_i32, %c0_i32_0 : i32, i32
  }
  func.func @transform_22(%arg0: i32) -> (i32, i32) {
    %c0_i32 = arith.constant 0 : i32
    %c0_i32_0 = arith.constant 0 : i32
    %c0_i32_1 = arith.constant 0 : i32
    return %c0_i32, %c0_i32_0 : i32, i32
  }
  func.func @transform_23(%arg0: i32) -> (i32, i32) {
    %c0_i32 = arith.constant 0 : i32
    %c0_i32_0 = arith.constant 0 : i32
    %c0_i32_1 = arith.constant 0 : i32
    return %c0_i32, %c0_i32_0 : i32, i32
  }
  func.func @transform_24(%arg0: i32) -> (i32, i32) {
    %c0_i32 = arith.constant 0 : i32
    %c0_i32_0 = arith.constant 0 : i32
    %c0_i32_1 = arith.constant 0 : i32
    return %c0_i32, %c0_i32_0 : i32, i32
  }
  func.func @transform_25(%arg0: i32) -> (i32, i32) {
    %c0_i32 = arith.constant 0 : i32
    %c0_i32_0 = arith.constant 0 : i32
    %c0_i32_1 = arith.constant 0 : i32
    return %c0_i32, %c0_i32_0 : i32, i32
  }
  func.func @transform_26(%arg0: i32) -> (i32, i32, i32) {
    %c0_i32 = arith.constant 0 : i32
    %c0_i32_0 = arith.constant 0 : i32
    %c0_i32_1 = arith.constant 0 : i32
    %c0_i32_2 = arith.constant 0 : i32
    return %c0_i32, %c0_i32_0, %c0_i32_1 : i32, i32, i32
  }
  func.func @transform_27(%arg0: i32) -> (i32, i32) {
    %c0_i32 = arith.constant 0 : i32
    %c0_i32_0 = arith.constant 0 : i32
    %c0_i32_1 = arith.constant 0 : i32
    return %c0_i32, %c0_i32_0 : i32, i32
  }
  func.func @transform_28(%arg0: i32) -> (i32, i32, i32) {
    %c0_i32 = arith.constant 0 : i32
    %c0_i32_0 = arith.constant 0 : i32
    %c0_i32_1 = arith.constant 0 : i32
    %c0_i32_2 = arith.constant 0 : i32
    return %c0_i32, %c0_i32_0, %c0_i32_1 : i32, i32, i32
  }
  func.func @transform_29(%arg0: i32) -> (i32, i32) {
    %c0_i32 = arith.constant 0 : i32
    %c0_i32_0 = arith.constant 0 : i32
    %c0_i32_1 = arith.constant 0 : i32
    return %c0_i32, %c0_i32_0 : i32, i32
  }
  func.func @transform_30(%arg0: i32) -> (i32, i32) {
    %c0_i32 = arith.constant 0 : i32
    %c0_i32_0 = arith.constant 0 : i32
    %c0_i32_1 = arith.constant 0 : i32
    return %c0_i32, %c0_i32_0 : i32, i32
  }
  func.func @transform_31(%arg0: i32) -> (i32, i32) {
    %c0_i32 = arith.constant 0 : i32
    %c0_i32_0 = arith.constant 0 : i32
    %c0_i32_1 = arith.constant 0 : i32
    return %c0_i32, %c0_i32_0 : i32, i32
  }
  func.func @transform_32(%arg0: i32) -> (i32, i32) {
    %c0_i32 = arith.constant 0 : i32
    %c0_i32_0 = arith.constant 0 : i32
    %c0_i32_1 = arith.constant 0 : i32
    return %c0_i32, %c0_i32_0 : i32, i32
  }
  func.func @transform_33(%arg0: i32) -> (i32, i32) {
    %c0_i32 = arith.constant 0 : i32
    %c0_i32_0 = arith.constant 0 : i32
    %c0_i32_1 = arith.constant 0 : i32
    return %c0_i32, %c0_i32_0 : i32, i32
  }
  func.func @transform_34(%arg0: i32) -> (i32, i32) {
    %c0_i32 = arith.constant 0 : i32
    %c0_i32_0 = arith.constant 0 : i32
    %c0_i32_1 = arith.constant 0 : i32
    return %c0_i32, %c0_i32_0 : i32, i32
  }
  func.func @transform_35(%arg0: i32) -> (i32, i32) {
    %c0_i32 = arith.constant 0 : i32
    %c0_i32_0 = arith.constant 0 : i32
    %c0_i32_1 = arith.constant 0 : i32
    return %c0_i32, %c0_i32_0 : i32, i32
  }
  func.func @transform_36(%arg0: i32) -> (i32, i32) {
    %c0_i32 = arith.constant 0 : i32
    %c0_i32_0 = arith.constant 0 : i32
    %c0_i32_1 = arith.constant 0 : i32
    return %c0_i32, %c0_i32_0 : i32, i32
  }
  func.func @transform_37(%arg0: i32) -> (i32, i32) {
    %c0_i32 = arith.constant 0 : i32
    %c0_i32_0 = arith.constant 0 : i32
    %c0_i32_1 = arith.constant 0 : i32
    return %c0_i32, %c0_i32_0 : i32, i32
  }
  func.func @transform_38(%arg0: i32) -> (i32, i32) {
    %c0_i32 = arith.constant 0 : i32
    %c0_i32_0 = arith.constant 0 : i32
    %c0_i32_1 = arith.constant 0 : i32
    return %c0_i32, %c0_i32_0 : i32, i32
  }
  func.func @transform_39(%arg0: i32) -> (i32, i32) {
    %c0_i32 = arith.constant 0 : i32
    %c0_i32_0 = arith.constant 0 : i32
    %c0_i32_1 = arith.constant 0 : i32
    return %c0_i32, %c0_i32_0 : i32, i32
  }
  func.func @transform_40(%arg0: i32) -> (i32, i32) {
    %c0_i32 = arith.constant 0 : i32
    %c0_i32_0 = arith.constant 0 : i32
    %c0_i32_1 = arith.constant 0 : i32
    return %c0_i32, %c0_i32_0 : i32, i32
  }
  func.func @transform_41(%arg0: i32) -> (i32, i32) {
    %c0_i32 = arith.constant 0 : i32
    %c0_i32_0 = arith.constant 0 : i32
    %c0_i32_1 = arith.constant 0 : i32
    return %c0_i32, %c0_i32_0 : i32, i32
  }
  func.func @transform_42(%arg0: i32) -> (i32, i32) {
    %c0_i32 = arith.constant 0 : i32
    %c0_i32_0 = arith.constant 0 : i32
    %c0_i32_1 = arith.constant 0 : i32
    return %c0_i32, %c0_i32_0 : i32, i32
  }
  func.func @transform_43(%arg0: i32) -> (i32, i32) {
    %c0_i32 = arith.constant 0 : i32
    %c0_i32_0 = arith.constant 0 : i32
    %c0_i32_1 = arith.constant 0 : i32
    return %c0_i32, %c0_i32_0 : i32, i32
  }
  func.func @transform_44(%arg0: i32) -> (i32, i32) {
    %c0_i32 = arith.constant 0 : i32
    %c0_i32_0 = arith.constant 0 : i32
    %c0_i32_1 = arith.constant 0 : i32
    return %c0_i32, %c0_i32_0 : i32, i32
  }
  func.func @transform_45(%arg0: i32) -> (i32, i32) {
    %c0_i32 = arith.constant 0 : i32
    %c0_i32_0 = arith.constant 0 : i32
    %c0_i32_1 = arith.constant 0 : i32
    return %c0_i32, %c0_i32_0 : i32, i32
  }
  func.func @transform_46(%arg0: i32) -> (i32, i32) {
    %c0_i32 = arith.constant 0 : i32
    %c0_i32_0 = arith.constant 0 : i32
    %c0_i32_1 = arith.constant 0 : i32
    return %c0_i32, %c0_i32_0 : i32, i32
  }
  func.func @transform_47(%arg0: i32) -> (i32, i32) {
    %c0_i32 = arith.constant 0 : i32
    %c0_i32_0 = arith.constant 0 : i32
    %c0_i32_1 = arith.constant 0 : i32
    return %c0_i32, %c0_i32_0 : i32, i32
  }
  func.func @transform_48(%arg0: i32) -> (i32, i32) {
    %c0_i32 = arith.constant 0 : i32
    %c0_i32_0 = arith.constant 0 : i32
    %c0_i32_1 = arith.constant 0 : i32
    return %c0_i32, %c0_i32_0 : i32, i32
  }
  func.func @transform_49(%arg0: i32) -> (i32, i32) {
    %c0_i32 = arith.constant 0 : i32
    %c0_i32_0 = arith.constant 0 : i32
    %c0_i32_1 = arith.constant 0 : i32
    return %c0_i32, %c0_i32_0 : i32, i32
  }
  func.func @transform_50(%arg0: i32) -> (i32, i32) {
    %c0_i32 = arith.constant 0 : i32
    %c0_i32_0 = arith.constant 0 : i32
    %c0_i32_1 = arith.constant 0 : i32
    return %c0_i32, %c0_i32_0 : i32, i32
  }
  func.func @transform_51(%arg0: i32) -> (i32, i32) {
    %c0_i32 = arith.constant 0 : i32
    %c0_i32_0 = arith.constant 0 : i32
    %c0_i32_1 = arith.constant 0 : i32
    return %c0_i32, %c0_i32_0 : i32, i32
  }
  func.func @transform_52(%arg0: i32) -> (i32, i32) {
    %c0_i32 = arith.constant 0 : i32
    %c0_i32_0 = arith.constant 0 : i32
    %c0_i32_1 = arith.constant 0 : i32
    return %c0_i32, %c0_i32_0 : i32, i32
  }
  func.func @transform_53(%arg0: i32) -> (i32, i32) {
    %c0_i32 = arith.constant 0 : i32
    %c0_i32_0 = arith.constant 0 : i32
    %c0_i32_1 = arith.constant 0 : i32
    return %c0_i32, %c0_i32_0 : i32, i32
  }
  func.func @transform_54(%arg0: i32) -> (i32, i32) {
    %c0_i32 = arith.constant 0 : i32
    %c0_i32_0 = arith.constant 0 : i32
    %c0_i32_1 = arith.constant 0 : i32
    return %c0_i32, %c0_i32_0 : i32, i32
  }
  func.func @transform_55(%arg0: i32) -> (i32, i32) {
    %c0_i32 = arith.constant 0 : i32
    %c0_i32_0 = arith.constant 0 : i32
    %c0_i32_1 = arith.constant 0 : i32
    return %c0_i32, %c0_i32_0 : i32, i32
  }
  func.func @transform_56(%arg0: i32) -> (i32, i32) {
    %c0_i32 = arith.constant 0 : i32
    %c0_i32_0 = arith.constant 0 : i32
    %c0_i32_1 = arith.constant 0 : i32
    return %c0_i32, %c0_i32_0 : i32, i32
  }
  func.func @transform_57(%arg0: i32) -> (i32, i32) {
    %c0_i32 = arith.constant 0 : i32
    %c0_i32_0 = arith.constant 0 : i32
    %c0_i32_1 = arith.constant 0 : i32
    return %c0_i32, %c0_i32_0 : i32, i32
  }
  func.func @transform_58(%arg0: i32) -> (i32, i32) {
    %c0_i32 = arith.constant 0 : i32
    %c0_i32_0 = arith.constant 0 : i32
    %c0_i32_1 = arith.constant 0 : i32
    return %c0_i32, %c0_i32_0 : i32, i32
  }
  func.func @transform_59(%arg0: i32) -> (i32, i32, i32) {
    %c0_i32 = arith.constant 0 : i32
    %c0_i32_0 = arith.constant 0 : i32
    %c0_i32_1 = arith.constant 0 : i32
    return %arg0, %c0_i32, %c0_i32_0 : i32, i32, i32
  }
}

</mosaic_0001>

<bundles_post_ra>
// kernel: enet2_forward.1
= control target key start
LH: loop header
LB: loop body
LE: loop exit
PB: predicated region body
PF: predicated region fallthrough
CT: control target
= control target key end

     0   :  { %s6757_s6 = smov 1   ;;  %s6758_s10 = smov 2   ;;  %s8299_s0 = inlined_call_operand.smem [shape: u32[60], index: -1, kind: input, shape index: {}] }
   0x1   :  { %s6835_s5 = sld [smem:[%s8299_s0]]   ;;  %s6759_s14 = smov 3  }
   0x2   :  { %s6840_s9 = sld [smem:[%s8299_s0 + %s6757_s6]]   ;;  %s6760_s18 = smov 4  }
   0x3   :  { %s6845_s13 = sld [smem:[%s8299_s0 + %s6758_s10]]   ;;  %s6761_s22 = smov 5  }
   0x4   :  { %s6850_s17 = sld [smem:[%s8299_s0 + %s6759_s14]]   ;;  %s6762_s26 = smov 6  }
   0x5   :  { %s6855_s21 = sld [smem:[%s8299_s0 + %s6760_s18]]   ;;  %s6763_s30 = smov 7  }
   0x6   :  { %s6860_s25 = sld [smem:[%s8299_s0 + %s6761_s22]]   ;;  %s6764_s4 = smov 8  }
   0x7   :  { %8325 = sst [smem:[#allocation2_spill]] %s6835_s5  ;;  %s6765_s10 = smov 9  }
   0x8   :  { %8326 = sst [smem:[#allocation3_spill]] %s6840_s9  ;;  %s6766_s15 = smov 10  }
   0x9   :  { %s6865_s29 = sld [smem:[%s8299_s0 + %s6762_s26]]   ;;  %s6767_s20 = smov 11  }
   0xa   :  { %8327 = sst [smem:[#allocation4_spill]] %s6850_s17  ;;  %s6768_s26 = smov 12  }
   0xb   :  { %8328 = sst [smem:[#allocation5_spill]] %s6855_s21  ;;  %s6769_s1 = smov 13  }
   0xc   :  { %8329 = sst [smem:[#allocation6_spill]] %s6860_s25  ;;  %s6770_s7 = smov 14  }
   0xd   :  { %s6870_s3 = sld [smem:[%s8299_s0 + %s6763_s30]]   ;;  %s6772_s22 = smov 16  }
   0xe   :  { %s6875_s8 = sld [smem:[%s8299_s0 + %s6764_s4]]   ;;  %s6773_s28 = smov 17  }
   0xf   :  { %s6880_s14 = sld [smem:[%s8299_s0 + %s6765_s10]]  }
  0x10   :  { %s6885_s19 = sld [smem:[%s8299_s0 + %s6766_s15]]   ;;  %s6771_s15 = smov 15  }
  0x11   :  { %s6890_s24 = sld [smem:[%s8299_s0 + %s6767_s20]]  }
  0x12   :  { %s6895_s30 = sld [smem:[%s8299_s0 + %s6768_s26]]  }
  0x13   :  { %8330 = sst [smem:[#allocation7_spill]] %s6870_s3 }
  0x14   :  { %8331 = sst [smem:[#allocation8_spill]] %s6875_s8 }
  0x15   :  { %s6900_s6 = sld [smem:[%s8299_s0 + %s6769_s1]]  }
  0x16   :  { %s6905_s12 = sld [smem:[%s8299_s0 + %s6770_s7]]   ;;  %s6774_s7 = smov 18  }
  0x17   :  { %s6910_s20 = sld [smem:[%s8299_s0 + %s6771_s15]]   ;;  %s6775_s15 = smov 19  }
  0x18   :  { %s6915_s27 = sld [smem:[%s8299_s0 + %s6772_s22]]   ;;  %s6776_s22 = smov 20  }
  0x19   :  { %s6920_s4 = sld [smem:[%s8299_s0 + %s6773_s28]]   ;;  %s6777_s28 = smov 21  }
  0x1a   :  { %s6925_s25 = sld [smem:[%s8299_s0 + %s6774_s7]]   ;;  %s6778_s7 = smov 22  }
  0x1b   :  { %8332 = sst [smem:[#allocation9_spill]] %s6900_s6 }
  0x1c   :  { %s6930_s21 = sld [smem:[%s8299_s0 + %s6775_s15]]   ;;  %s6779_s15 = smov 23  }
  0x1d   :  { %s6935_s9 = sld [smem:[%s8299_s0 + %s6776_s22]]   ;;  %s6780_s22 = smov 24  }
  0x1e   :  { %s6940_s17 = sld [smem:[%s8299_s0 + %s6777_s28]]   ;;  %s6781_s28 = smov 25  }
  0x1f   :  { %8333 = sst [smem:[#allocation10_spill]] %s6920_s4 }
  0x20   :  { %8334 = sst [smem:[#allocation11_spill]] %s6925_s25 }
  0x21   :  { %s6945_s25 = sld [smem:[%s8299_s0 + %s6778_s7]]   ;;  %s6782_s7 = smov 26  }
  0x22   :  { %8335 = sst [smem:[#allocation12_spill]] %s6930_s21 }
  0x23   :  { %8336 = sst [smem:[#allocation13_spill]] %s6935_s9 }
  0x24   :  { %8337 = sst [smem:[#allocation14_spill]] %s6940_s17 }
  0x25   :  { %s6950_s21 = sld [smem:[%s8299_s0 + %s6779_s15]]   ;;  %s6783_s15 = smov 27  }
  0x26   :  { %s6955_s9 = sld [smem:[%s8299_s0 + %s6780_s22]]   ;;  %s6784_s22 = smov 28  }
  0x27   :  { %8338 = sst [smem:[#allocation15_spill]] %s6945_s25 }
  0x28   :  { %s6960_s17 = sld [smem:[%s8299_s0 + %s6781_s28]]   ;;  %s6785_s28 = smov 29  }
  0x29   :  { %s6965_s25 = sld [smem:[%s8299_s0 + %s6782_s7]]   ;;  %s6786_s7 = smov 30  }
  0x2b   :  { %8339 = sst [smem:[#allocation16_spill]] %s6950_s21 }
  0x2c   :  { %8340 = sst [smem:[#allocation17_spill]] %s6955_s9 }
  0x2d   :  { %s6970_s21 = sld [smem:[%s8299_s0 + %s6783_s15]]   ;;  %s6787_s15 = smov 31  }
  0x2e   :  { %8341 = sst [smem:[#allocation18_spill]] %s6960_s17 }
  0x2f   :  { %8342 = sst [smem:[#allocation19_spill]] %s6965_s25 }
  0x30   :  { %s6975_s9 = sld [smem:[%s8299_s0 + %s6784_s22]]   ;;  %s6788_s22 = smov 32  }
  0x31   :  { %s6980_s17 = sld [smem:[%s8299_s0 + %s6785_s28]]   ;;  %s6789_s28 = smov 33  }
  0x32   :  { %s6985_s25 = sld [smem:[%s8299_s0 + %s6786_s7]]   ;;  %s6790_s7 = smov 34  }
  0x33   :  { %8343 = sst [smem:[#allocation20_spill]] %s6970_s21 }
  0x34   :  { %s6990_s21 = sld [smem:[%s8299_s0 + %s6787_s15]]   ;;  %s6791_s15 = smov 35  }
  0x36   :  { %8344 = sst [smem:[#allocation21_spill]] %s6975_s9 }
  0x37   :  { %8345 = sst [smem:[#allocation22_spill]] %s6980_s17 }
  0x38   :  { %8346 = sst [smem:[#allocation23_spill]] %s6985_s25 }
  0x39   :  { %s6995_s9 = sld [smem:[%s8299_s0 + %s6788_s22]]   ;;  %s6792_s22 = smov 36  }
  0x3a   :  { %8347 = sst [smem:[#allocation24_spill]] %s6990_s21 }
  0x3b   :  { %s7000_s17 = sld [smem:[%s8299_s0 + %s6789_s28]]   ;;  %s6793_s28 = smov 37  }
  0x3c   :  { %s7005_s25 = sld [smem:[%s8299_s0 + %s6790_s7]]   ;;  %s6794_s7 = smov 38  }
  0x3d   :  { %s7010_s21 = sld [smem:[%s8299_s0 + %s6791_s15]]   ;;  %s6795_s15 = smov 39  }
  0x3f   :  { %8348 = sst [smem:[#allocation25_spill]] %s6995_s9 }
  0x40   :  { %s7015_s9 = sld [smem:[%s8299_s0 + %s6792_s22]]   ;;  %s6796_s22 = smov 40  }
  0x41   :  { %8349 = sst [smem:[#allocation26_spill]] %s7000_s17 }
  0x42   :  { %8350 = sst [smem:[#allocation27_spill]] %s7005_s25 }
  0x43   :  { %8351 = sst [smem:[#allocation28_spill]] %s7010_s21 }
  0x44   :  { %s7020_s17 = sld [smem:[%s8299_s0 + %s6793_s28]]   ;;  %s6797_s28 = smov 41  }
  0x45   :  { %s7025_s25 = sld [smem:[%s8299_s0 + %s6794_s7]]   ;;  %s6798_s7 = smov 42  }
  0x46   :  { %8352 = sst [smem:[#allocation29_spill]] %s7015_s9 }
  0x47   :  { %s7030_s21 = sld [smem:[%s8299_s0 + %s6795_s15]]   ;;  %s6799_s15 = smov 43  }
  0x48   :  { %s7035_s9 = sld [smem:[%s8299_s0 + %s6796_s22]]   ;;  %s6800_s22 = smov 44  }
  0x4a   :  { %8353 = sst [smem:[#allocation30_spill]] %s7020_s17 }
  0x4b   :  { %8354 = sst [smem:[#allocation31_spill]] %s7025_s25 }
  0x4c   :  { %s7040_s17 = sld [smem:[%s8299_s0 + %s6797_s28]]   ;;  %s6801_s28 = smov 45  }
  0x4d   :  { %8355 = sst [smem:[#allocation32_spill]] %s7030_s21 }
  0x4e   :  { %8356 = sst [smem:[#allocation33_spill]] %s7035_s9 }
  0x4f   :  { %s7045_s25 = sld [smem:[%s8299_s0 + %s6798_s7]]   ;;  %s6802_s7 = smov 46  }
  0x50   :  { %s7050_s21 = sld [smem:[%s8299_s0 + %s6799_s15]]   ;;  %s6803_s15 = smov 47  }
  0x51   :  { %s7055_s9 = sld [smem:[%s8299_s0 + %s6800_s22]]   ;;  %s6804_s22 = smov 48  }
  0x52   :  { %8357 = sst [smem:[#allocation34_spill]] %s7040_s17 }
  0x53   :  { %s7060_s17 = sld [smem:[%s8299_s0 + %s6801_s28]]   ;;  %s6805_s28 = smov 49  }
  0x55   :  { %8358 = sst [smem:[#allocation35_spill]] %s7045_s25 }
  0x56   :  { %8359 = sst [smem:[#allocation36_spill]] %s7050_s21 }
  0x57   :  { %8360 = sst [smem:[#allocation37_spill]] %s7055_s9 }
  0x58   :  { %s7065_s25 = sld [smem:[%s8299_s0 + %s6802_s7]]   ;;  %s6806_s7 = smov 50  }
  0x59   :  { %8361 = sst [smem:[#allocation38_spill]] %s7060_s17 }
  0x5a   :  { %s7070_s21 = sld [smem:[%s8299_s0 + %s6803_s15]]   ;;  %s6807_s15 = smov 51  }
  0x5b   :  { %s7075_s9 = sld [smem:[%s8299_s0 + %s6804_s22]]   ;;  %s6808_s22 = smov 52  }
  0x5c   :  { %s7080_s17 = sld [smem:[%s8299_s0 + %s6805_s28]]   ;;  %s6809_s28 = smov 53  }
  0x5e   :  { %8362 = sst [smem:[#allocation39_spill]] %s7065_s25 }
  0x5f   :  { %s7085_s25 = sld [smem:[%s8299_s0 + %s6806_s7]]   ;;  %s6810_s7 = smov 54  }
  0x60   :  { %8363 = sst [smem:[#allocation40_spill]] %s7070_s21 }
  0x61   :  { %8364 = sst [smem:[#allocation41_spill]] %s7075_s9 }
  0x62   :  { %8365 = sst [smem:[#allocation42_spill]] %s7080_s17 }
  0x63   :  { %s7090_s21 = sld [smem:[%s8299_s0 + %s6807_s15]]   ;;  %s6811_s15 = smov 55  }
  0x64   :  { %s7095_s9 = sld [smem:[%s8299_s0 + %s6808_s22]]   ;;  %s6812_s22 = smov 56  }
  0x65   :  { %8366 = sst [smem:[#allocation43_spill]] %s7085_s25 }
  0x66   :  { %s7100_s17 = sld [smem:[%s8299_s0 + %s6809_s28]]   ;;  %s6813_s28 = smov 57  }
  0x67   :  { %s7105_s25 = sld [smem:[%s8299_s0 + %s6810_s7]]   ;;  %s6814_s7 = smov 58  }
  0x69   :  { %8367 = sst [smem:[#allocation44_spill]] %s7090_s21 }
  0x6a   :  { %8368 = sst [smem:[#allocation45_spill]] %s7095_s9 }
  0x6b   :  { %s7110_s21 = sld [smem:[%s8299_s0 + %s6811_s15]]   ;;  %s6815_s15 = smov 59  }
  0x6c   :  { %8369 = sst [smem:[#allocation46_spill]] %s7100_s17 }
  0x6d   :  { %8370 = sst [smem:[#allocation47_spill]] %s7105_s25 }
  0x6e   :  { %s7115_s9 = sld [smem:[%s8299_s0 + %s6812_s22]]   ;;  %s7132_s22 = smov 0  }
  0x6f   :  { %s7120_s17 = sld [smem:[%s8299_s0 + %s6813_s28]]  }
  0x70   :  { %s7125_s25 = sld [smem:[%s8299_s0 + %s6814_s7]]  }
  0x71   :  { %8371 = sst [smem:[#allocation48_spill]] %s7110_s21 }
  0x72   :  { %s7130_s21 = sld [smem:[%s8299_s0 + %s6815_s15]]  }
  0x73 LB: > { %s6283_s23 = sadd.s32 4294967295, %s6755_s22   ;;  %p6287_p0 = scmp.ge.s32.totalorder %s6755_s22, 1  ;;  %s6755_s22 = sphi %s7132_s22, %s129_s22  }
  0x74   : > { %p1606_p1 = scmp.lt.s32.totalorder %s6755_s22, 3 }
  0x76   : > { %p1607_p2 = pnand %p6287_p0, %p1606_p1 }
  0x77   : > { %p1746_p3 = scmp.lt.s32.totalorder (!%p1607_p2), %s6283_s23, 1  ;;  %s8372_s5 = sld [smem:[#allocation2_spill]] (!%p1607_p2) }
  0x78   : > { %1610 = sbr.rel (%p1607_p2) target bundleno = 7534 (0x1d6e), region = 256  ;;  %s8318_s28 = smov (!%p1607_p2), 112  }
  0x79   : > { %s8310_s1 = smov (!%p1607_p2), 111   ;;  %s8316_s2 = smov (!%p1607_p2), 113  }
  0x7a   : > { %s8314_s7 = smov (!%p1607_p2), 127   ;;  %s8308_s10 = smov (!%p1607_p2), 1  }
  0x7b   : > { %s8373_s3 = sld [smem:[#allocation7_spill]] (!%p1607_p2)  ;;  %s8306_s11 = smov (!%p1607_p2), 15  }
  0x7c   : > { %s8312_s15 = smov (!%p1607_p2), 16   ;;  %s8321_s16 = smov (!%p1607_p2), 17  }
  0x7d   : > { %s8429_s23 = smov (!%p1746_p3, %s6283_s23), 1  ;;  %v6821_v2 = vmov 0.0   ;;  %v6823_v3 = vmov 0   ;;  %v1782_v5 = vlaneseq  ;;  %v6299_v10 = vld [vmem:[%s6845_s13 + $0x10] sm:$0x3]  ;;  %s8374_s8 = sld [smem:[#allocation8_spill]] }
  0x7e   : > { %s6428_s0 = sshll.u32 %s8429_s23, 4  ;;  %2014 = vmatprep.mubr.f32.mxu0 %v6821_v2  ;;  %2098 = vmatprep.mubr.f32.mxu1 %v6821_v2  ;;  %v6298_v13 = vld [vmem:[%s6845_s13 + $0xe] sm:$0x3]  ;;  %v6297_v14 = vld [vmem:[%s6845_s13 + $0xc] sm:$0x3]  ;;  %vm1946_vm8 = vcmask 588800  }
  0x7f   : > { %s7144_s26 = scalar_lea.vmem %s8372_s5, %s6428_s0  ;;  %6725 = vset.pattern.permute.xlu0 %v6823_v3  ;;  %6726 = vset.pattern.permute.xlu1 %v6823_v3  ;;  %v1789_v6 = vshrl.u32 %v1782_v5, 7  ;;  %v7187_v7 = vand.u32 127, %v1782_v5  ;;  %v6296_v29 = vld [vmem:[%s6845_s13 + $0xa] sm:$0x3]  ;;  %v6295_v40 = vld [vmem:[%s6845_s13 + $0x6] sm:$0x3] }
  0x80   : > { %v7147_v0 = vld [vmem:[%s7144_s26] sm:$0xff]  ;;  %v7154_v1 = vld [vmem:[%s7144_s26 + $0x8] sm:$0xff]  ;;  %vm2030_vm9 = vcmask 64512   ;;  %s8375_s6 = sld [smem:[#allocation9_spill]]  ;;  %vm2342_vm10 = vcmask 7168   ;;  %vm2719_vm11 = vcmask 130048  }
  0x81   : > { %1900 = vrot.lane.b32.xlu1 %v7147_v0, %s8318_s28  ;;  %1920 = vrot.lane.b32.xlu0 %v7147_v0, %s8310_s1  ;;  %v1940_v4 = vld [vmem:[%s8373_s3] sm:$0xff]  ;;  %v7189_v8 = vsub.s32 1, %v1789_v6  ;;  %v7191_v9 = vsub.s32 0, %v1789_v6  ;;  %vm1904_vm0 = vcmp.lt.s32.totalorder %v7187_v7, 112  ;;  %vm1924_vm1 = vcmp.lt.s32.totalorder %v7187_v7, 111  ;;  %s8376_s4 = sld [smem:[#allocation10_spill]] }
  0x82   : > { %vm1884_vm2 = vcmp.lt.s32.totalorder %v7187_v7, 113  ;;  %vm1864_vm3 = vcmp.lt.s32.totalorder %v7187_v7, 127  ;;  %vm1844_vm4 = vcmp.lt.s32.totalorder %v7187_v7, 1  ;;  %v6294_v49 = vld [vmem:[%s6845_s13 + $0x4] sm:$0x3]  ;;  %vm1824_vm5 = vcmp.lt.s32.totalorder %v7187_v7, 15 }
  0x83   : > { %v7199_v15 = vrot.slane %v6299_v10, %v7189_v8  ;;  %v7202_v16 = vrot.slane %v6299_v10, %v7191_v9  ;;  %v7206_v19 = vrot.slane %v6298_v13, %v7189_v8  ;;  %v7209_v20 = vrot.slane %v6297_v14, %v7189_v8  ;;  %v6293_v58 = vld [vmem:[%s6845_s13 + $0x2] sm:$0x3]  ;;  %s8377_s18 = sld [smem:[#allocation12_spill]]  ;;  %s8382_s3 = smov 111  }
  0x84   : > { %v7218_v24 = vrot.slane %v6298_v13, %v7191_v9  ;;  %v7225_v28 = vrot.slane %v6297_v14, %v7191_v9  ;;  %v7238_v38 = vrot.slane %v6296_v29, %v7189_v8  ;;  %v7241_v39 = vrot.slane %v6296_v29, %v7191_v9  ;;  %s8378_s0 = sld [smem:[#allocation20_spill]]  ;;  %s8400_s5 = smov 127  }
  0x85   : > { %1902 = vrot.lane.b32.xlu1 %v7154_v1, %s8318_s28  ;;  %1922 = vrot.lane.b32.xlu0 %v7154_v1, %s8310_s1  ;;  %v7252_v47 = vrot.slane %v6295_v40, %v7189_v8  ;;  %v7255_v48 = vrot.slane %v6295_v40, %v7191_v9  ;;  %v7267_v56 = vrot.slane %v6294_v49, %v7189_v8  ;;  %vm1804_vm6 = vcmp.lt.s32.totalorder %v7187_v7, 16 }
  0x86   : > { %v7270_v57 = vrot.slane %v6294_v49, %v7191_v9  ;;  %v7282_v3 = vrot.slane %v6293_v58, %v7189_v8  ;;  %vm1784_vm7 = vcmp.lt.s32.totalorder %v7187_v7, 17  ;;  %vm6826_vm12 = vmmov 0  }
  0x87   : > { %vm4252_vm13 = vcmask 523264  }
  0x89   : > { %1882 = vrot.lane.b32.xlu1 %v7154_v1, %s8316_s2  ;;  %1880 = vrot.lane.b32.xlu0 %v7147_v0, %s8316_s2 }
  0x8d   : > { %1862 = vrot.lane.b32.xlu1 %v7154_v1, %s8314_s7  ;;  %1860 = vrot.lane.b32.xlu0 %v7147_v0, %s8314_s7 }
  0x91   : > { %1842 = vrot.lane.b32.xlu1 %v7154_v1, %s8308_s10  ;;  %1840 = vrot.lane.b32.xlu0 %v7147_v0, %s8308_s10 }
  0x95   : > { %1822 = vrot.lane.b32.xlu1 %v7154_v1, %s8306_s11  ;;  %1820 = vrot.lane.b32.xlu0 %v7147_v0, %s8306_s11 }
  0x99   : > { %1802 = vrot.lane.b32.xlu1 %v7154_v1, %s8312_s15  ;;  %1800 = vrot.lane.b32.xlu0 %v7147_v0, %s8312_s15 }
  0x9d   : > { %1780 = vrot.lane.b32.xlu1 %v7154_v1, %s8321_s16  ;;  %1778 = vrot.lane.b32.xlu0 %v7147_v0, %s8321_s16 }
  0xa1   : > { %1943 = vperm.xlu0 %6725, %v1940_v4   ;;  %v1760_v4 = vld [vmem:[%s6845_s13] sm:$0x3] }
  0xa2   : > { %v7296_v14 = vrot.slane %v1760_v4, %v7189_v8  ;;  %v1777_v8 = vld [vmem:[%s6865_s29] sm:$0xff] }
  0xf3   : > { %v1901_v11 = vpop.permute.xlu1 %1900  ;;  %v1921_v12 = vpop.permute.xlu0 %1920 }
  0xf7   : > { %v1903_v17 = vpop.permute.xlu1 %1902  ;;  %v1923_v18 = vpop.permute.xlu0 %1922 }
  0xf8   : > { %v1906_v21 = vsel %vm1904_vm0, %v1903_v17, %v1901_v11  ;;  %v1926_v22 = vsel %vm1924_vm1, %v1923_v18, %v1921_v12  ;;  %v1925_v23 = vsel %vm1924_vm1, %v1921_v12, %v1923_v18  ;;  %v1905_v25 = vsel %vm1904_vm0, %v1901_v11, %v1903_v17 }
  0xf9   : > { %v1939_v26 = vmul.f32 %v7199_v15, %v1926_v22  ;;  %v1938_v27 = vmul.f32 %v7202_v16, %v1925_v23  ;;  %v1919_v32 = vmul.f32 %v7206_v19, %v1906_v21  ;;  %v1918_v35 = vmul.f32 %v7218_v24, %v1905_v25 }
  0xfa   : > { %v7299_v17 = vrot.slane %v1760_v4, %v7191_v9 }
  0xfb   : > { %v1883_v30 = vpop.permute.xlu1 %1882  ;;  %1964 = vmatprep.subr.mxu0 %v1939_v26  ;;  %v1881_v31 = vpop.permute.xlu0 %1880 }
  0xfc   : > { %v1885_v33 = vsel %vm1884_vm2, %v1881_v31, %v1883_v30  ;;  %v1886_v34 = vsel %vm1884_vm2, %v1883_v30, %v1881_v31  ;;  %1965 = vmatpush1.msra.mxu0 %v1938_v27 }
  0xfd   : > { %1966 = vmatprep.subr.mxu0 %v1919_v32  ;;  %v1899_v36 = vmul.f32 %v7209_v20, %v1886_v34  ;;  %v1898_v37 = vmul.f32 %v7225_v28, %v1885_v33 }
  0xfe   : > { %1967 = vmatpush1.msra.mxu0 %v1918_v35  ;;  %v2023_v35 = vld [vmem:[%s8374_s8] sm:$0xff]  ;;  %s8404_s8 = sld [smem:[#allocation29_spill]] }
  0xff   : > { %v1863_v41 = vpop.permute.xlu1 %1862  ;;  %1968 = vmatprep.subr.mxu0 %v1899_v36  ;;  %v1861_v42 = vpop.permute.xlu0 %1860 }
 0x100   : > { %v1865_v43 = vsel %vm1864_vm3, %v1861_v42, %v1863_v41  ;;  %v1866_v44 = vsel %vm1864_vm3, %v1863_v41, %v1861_v42  ;;  %1969 = vmatpush1.msra.mxu0 %v1898_v37 }
 0x101   : > { %v1879_v45 = vmul.f32 %v7238_v38, %v1866_v44  ;;  %v1878_v46 = vmul.f32 %v7241_v39, %v1865_v43 }
 0x103   : > { %v1843_v50 = vpop.permute.xlu1 %1842  ;;  %1970 = vmatprep.subr.mxu0 %v1879_v45  ;;  %v1841_v51 = vpop.permute.xlu0 %1840  ;;  %v2172_v45 = vld [vmem:[%s6890_s24] sm:$0xff] }
 0x104   : > { %v1845_v52 = vsel %vm1844_vm4, %v1841_v51, %v1843_v50  ;;  %v1846_v53 = vsel %vm1844_vm4, %v1843_v50, %v1841_v51  ;;  %1971 = vmatpush1.msra.mxu0 %v1878_v46  ;;  %v2255_v46 = vld [vmem:[%s8375_s6] sm:$0xff]  ;;  %s8401_s6 = smov 17  }
 0x105   : > { %1972 = vmatprep.subr.mxu0 %v7154_v1  ;;  %v1859_v54 = vmul.f32 %v7252_v47, %v1845_v52  ;;  %v1858_v55 = vmul.f32 %v7255_v48, %v1846_v53 }
 0x106   : > { %1973 = vmatpush1.msra.mxu0 %v7147_v0  ;;  %v7285_v0 = vrot.slane %v6293_v58, %v7191_v9  ;;  %v2024_v9 = vld [vmem:[%s6880_s14] sm:$0xff] }
 0x107   : > { %v1823_v59 = vpop.permute.xlu1 %1822  ;;  %1974 = vmatprep.subr.mxu0 %v1859_v54  ;;  %v1821_v60 = vpop.permute.xlu0 %1820  ;;  %2027 = vperm.xlu1 %6726, %v2024_v9  }
 0x108   : > { %v1825_v61 = vsel %vm1824_vm5, %v1821_v60, %v1823_v59  ;;  %v1826_v62 = vsel %vm1824_vm5, %v1823_v59, %v1821_v60  ;;  %1975 = vmatpush1.msra.mxu0 %v1858_v55 }
 0x109   : > { %v1839_v63 = vmul.f32 %v7267_v56, %v1825_v61  ;;  %v1838_v1 = vmul.f32 %v7270_v57, %v1826_v62 }
 0x10b   : > { %v1803_v5 = vpop.permute.xlu1 %1802  ;;  %1976 = vmatprep.subr.mxu0 %v1839_v63  ;;  %v1801_v6 = vpop.permute.xlu0 %1800 }
 0x10c   : > { %v1805_v10 = vsel %vm1804_vm6, %v1801_v6, %v1803_v5  ;;  %v1806_v11 = vsel %vm1804_vm6, %v1803_v5, %v1801_v6  ;;  %1977 = vmatpush1.msra.mxu0 %v1838_v1 }
 0x10d   : > { %v1819_v12 = vmul.f32 %v7282_v3, %v1805_v10  ;;  %v1818_v13 = vmul.f32 %v7285_v0, %v1806_v11 }
 0x10f   : > { %v1781_v18 = vpop.permute.xlu1 %1780  ;;  %1978 = vmatprep.subr.mxu0 %v1819_v12  ;;  %v1779_v21 = vpop.permute.xlu0 %1778 }
 0x110   : > { %v1785_v22 = vsel %vm1784_vm7, %v1779_v21, %v1781_v18  ;;  %v1786_v23 = vsel %vm1784_vm7, %v1781_v18, %v1779_v21  ;;  %1979 = vmatpush1.msra.mxu0 %v1818_v13 }
 0x111   : > { %v1799_v25 = vmul.f32 %v7296_v14, %v1785_v22  ;;  %v1798_v26 = vmul.f32 %v7299_v17, %v1786_v23 }
 0x113   : > { %1980 = vmatprep.subr.mxu0 %v1799_v25 }
 0x114   : > { %1981 = vmatpush1.msra.mxu0 %v1798_v26 }
 0x115   : > { %6300 = vmatmul.mubr.msk.f32.vlgmr.msra.gmra.mxu0 %vm1946_vm8, %v1777_v8 }
 0x116   : > { %2328 = vmatprep.mubr.f32.mxu0 %v6821_v2 }
 0x11c   : > { %v1944_v27 = vpop.permute.xlu0 %1943 }
 0x182   : > { %v2028_v36 = vpop.permute.xlu1 %2027 }
 0x1d5   : > { %v2016_v29 = vpop.f32.mrf.mxu0 }
 0x1d6   : > { %v7311_v31 = vadd.f32 %v2016_v29, %v1944_v27 }
 0x1d7   : > { %v2018_v30 = vpop.f32.mrf.mxu0 }
 0x1d8   : > { %v7313_v32 = vadd.f32 %v2018_v30, %v1944_v27  ;;  %v2021_v34 = vmax.f32 %v7311_v31, 0.0 }
 0x1da   : > { %v2022_v33 = vmax.f32 %v7313_v32, 0.0 }
 0x1dc   : > { %2064 = vmatprep.subr.mxu1 %v2022_v33 }
 0x1dd   : > { %2065 = vmatpush1.msra.mxu1 %v2021_v34 }
 0x1de   : > { %6301 = vmatmul.mubr.msk.f32.vlgmr.msra.gmra.mxu1 %vm2030_vm9, %v2023_v35 }
 0x1df   : > { %2245 = vmatprep.mubr.f32.mxu1 %v6821_v2 }
 0x29e   : > { %v2100_v37 = vpop.f32.mrf.mxu1 }
 0x29f   : > { %v2101_v40 = vadd.f32 %v2100_v37, %v2028_v36 }
 0x2a0   : > { %v2102_v41 = vpop.f32.mrf.mxu1 }
 0x2a1   : > { %v7324_v42 = vmax.f32 %v2101_v40, 0.0  ;;  %v2103_v43 = vadd.f32 %v2102_v41, %v2028_v36 }
 0x2a3   : > { %v2106_v44 = vmax.f32 %v2103_v43, 0.0  ;;  %2164 = vrot.lane.b32.xlu1 %v7324_v42, %s8310_s1 }
 0x2a5   : > { %2166 = vrot.lane.b32.xlu0 %v2106_v44, %s8310_s1 }
 0x2a7   : > { %2156 = vrot.lane.b32.xlu1 %v7324_v42, %s8318_s28 }
 0x2a9   : > { %2158 = vrot.lane.b32.xlu0 %v2106_v44, %s8318_s28 }
 0x2ab   : > { %2148 = vrot.lane.b32.xlu1 %v7324_v42, %s8316_s2 }
 0x2ad   : > { %2150 = vrot.lane.b32.xlu0 %v2106_v44, %s8316_s2 }
 0x2af   : > { %2140 = vrot.lane.b32.xlu1 %v7324_v42, %s8314_s7 }
 0x2b1   : > { %2142 = vrot.lane.b32.xlu0 %v2106_v44, %s8314_s7 }
 0x2b3   : > { %2132 = vrot.lane.b32.xlu1 %v7324_v42, %s8308_s10 }
 0x2b5   : > { %2134 = vrot.lane.b32.xlu0 %v2106_v44, %s8308_s10  ;;  %s8380_s10 = sld [smem:[#allocation18_spill]] }
 0x2b7   : > { %2124 = vrot.lane.b32.xlu1 %v7324_v42, %s8306_s11 }
 0x2b9   : > { %2126 = vrot.lane.b32.xlu0 %v2106_v44, %s8306_s11  ;;  %s8379_s11 = sld [smem:[#allocation24_spill]] }
 0x2bb   : > { %2116 = vrot.lane.b32.xlu1 %v7324_v42, %s8312_s15 }
 0x2bd   : > { %2118 = vrot.lane.b32.xlu0 %v2106_v44, %s8312_s15 }
 0x2bf   : > { %2108 = vrot.lane.b32.xlu1 %v7324_v42, %s8321_s16 }
 0x2c1   : > { %2110 = vrot.lane.b32.xlu0 %v2106_v44, %s8321_s16 }
 0x2c3   : > { %2175 = vperm.xlu1 %6726, %v2172_v45  }
 0x2c5   : > { %2258 = vperm.xlu0 %6725, %v2255_v46  }
 0x315   : > { %v2165_v49 = vpop.permute.xlu1 %2164 }
 0x317   : > { %v2167_v50 = vpop.permute.xlu0 %2166 }
 0x318   : > { %v2168_v51 = vsel %vm1924_vm1, %v2165_v49, %v2167_v50  ;;  %v2169_v52 = vsel %vm1924_vm1, %v2167_v50, %v2165_v49 }
 0x319   : > { %v2170_v53 = vmul.f32 %v2168_v51, %v7202_v16  ;;  %v2157_v54 = vpop.permute.xlu1 %2156  ;;  %v2171_v55 = vmul.f32 %v2169_v52, %v7199_v15 }
 0x31b   : > { %v2159_v58 = vpop.permute.xlu0 %2158  ;;  %2195 = vmatprep.subr.mxu1 %v2171_v55  ;;  %v2107_v55 = vld [vmem:[%s6885_s19] sm:$0xff] }
 0x31c   : > { %v2160_v59 = vsel %vm1904_vm0, %v2157_v54, %v2159_v58  ;;  %v2161_v60 = vsel %vm1904_vm0, %v2159_v58, %v2157_v54  ;;  %2196 = vmatpush1.msra.mxu1 %v2170_v53 }
 0x31d   : > { %v2162_v61 = vmul.f32 %v2160_v59, %v7218_v24  ;;  %v2149_v62 = vpop.permute.xlu1 %2148  ;;  %v2163_v63 = vmul.f32 %v2161_v60, %v7206_v19 }
 0x31f   : > { %v2151_v1 = vpop.permute.xlu0 %2150  ;;  %2197 = vmatprep.subr.mxu1 %v2163_v63 }
 0x320   : > { %v2152_v4 = vsel %vm1884_vm2, %v2149_v62, %v2151_v1  ;;  %v2153_v5 = vsel %vm1884_vm2, %v2151_v1, %v2149_v62  ;;  %2198 = vmatpush1.msra.mxu1 %v2162_v61 }
 0x321   : > { %v2154_v6 = vmul.f32 %v2152_v4, %v7225_v28  ;;  %v2141_v10 = vpop.permute.xlu1 %2140  ;;  %v2155_v11 = vmul.f32 %v2153_v5, %v7209_v20  ;;  %v2254_v4 = vld [vmem:[%s6895_s30] sm:$0xff] }
 0x323   : > { %v2143_v12 = vpop.permute.xlu0 %2142  ;;  %2199 = vmatprep.subr.mxu1 %v2155_v11 }
 0x324   : > { %v2144_v13 = vsel %vm1864_vm3, %v2141_v10, %v2143_v12  ;;  %v2145_v18 = vsel %vm1864_vm3, %v2143_v12, %v2141_v10  ;;  %2200 = vmatpush1.msra.mxu1 %v2154_v6 }
 0x325   : > { %v2146_v21 = vmul.f32 %v2144_v13, %v7241_v39  ;;  %v2133_v22 = vpop.permute.xlu1 %2132  ;;  %v2147_v23 = vmul.f32 %v2145_v18, %v7238_v38  ;;  %v2340_v18 = vld [vmem:[%s6905_s12] sm:$0xff] }
 0x327   : > { %v2135_v25 = vpop.permute.xlu0 %2134  ;;  %2201 = vmatprep.subr.mxu1 %v2147_v23 }
 0x328   : > { %v2136_v26 = vsel %vm1844_vm4, %v2133_v22, %v2135_v25  ;;  %v2137_v8 = vsel %vm1844_vm4, %v2135_v25, %v2133_v22  ;;  %2202 = vmatpush1.msra.mxu1 %v2146_v21 }
 0x329   : > { %v2138_v9 = vmul.f32 %v2137_v8, %v7255_v48  ;;  %2203 = vmatprep.subr.mxu1 %v2106_v44  ;;  %v2125_v27 = vpop.permute.xlu1 %2124  ;;  %v2139_v29 = vmul.f32 %v2136_v26, %v7252_v47 }
 0x32a   : > { %2204 = vmatpush1.msra.mxu1 %v7324_v42 }
 0x32b   : > { %v2127_v30 = vpop.permute.xlu0 %2126  ;;  %2205 = vmatprep.subr.mxu1 %v2139_v29 }
 0x32c   : > { %v2128_v35 = vsel %vm1824_vm5, %v2125_v27, %v2127_v30  ;;  %v2129_v36 = vsel %vm1824_vm5, %v2127_v30, %v2125_v27  ;;  %2206 = vmatpush1.msra.mxu1 %v2138_v9 }
 0x32d   : > { %v2130_v37 = vmul.f32 %v2129_v36, %v7270_v57  ;;  %v2117_v40 = vpop.permute.xlu1 %2116  ;;  %v2131_v41 = vmul.f32 %v2128_v35, %v7267_v56  ;;  %v2351_v35 = vld [vmem:[%s6910_s20] sm:$0xff] }
 0x32f   : > { %v2119_v43 = vpop.permute.xlu0 %2118  ;;  %2207 = vmatprep.subr.mxu1 %v2131_v41 }
 0x330   : > { %v2120_v42 = vsel %vm1804_vm6, %v2117_v40, %v2119_v43  ;;  %v2121_v44 = vsel %vm1804_vm6, %v2119_v43, %v2117_v40  ;;  %2208 = vmatpush1.msra.mxu1 %v2130_v37 }
 0x331   : > { %v2122_v45 = vmul.f32 %v2121_v44, %v7285_v0  ;;  %v2123_v46 = vmul.f32 %v2120_v42, %v7282_v3  ;;  %v2109_v49 = vpop.permute.xlu1 %2108  ;;  %v2372_v44 = vld [vmem:[%s8376_s4] sm:$0xff]  ;;  %s8399_s4 = smov 113  }
 0x333   : > { %v2111_v50 = vpop.permute.xlu0 %2110  ;;  %2209 = vmatprep.subr.mxu1 %v2123_v46 }
 0x334   : > { %v2112_v51 = vsel %vm1784_vm7, %v2109_v49, %v2111_v50  ;;  %v2113_v52 = vsel %vm1784_vm7, %v2111_v50, %v2109_v49  ;;  %2210 = vmatpush1.msra.mxu1 %v2122_v45 }
 0x335   : > { %v2114_v53 = vmul.f32 %v2113_v52, %v7299_v17  ;;  %v2115_v54 = vmul.f32 %v2112_v51, %v7296_v14 }
 0x337   : > { %2211 = vmatprep.subr.mxu1 %v2115_v54  ;;  %v2371_v54 = vld [vmem:[%s6915_s27] sm:$0xff] }
 0x338   : > { %2212 = vmatpush1.msra.mxu1 %v2114_v53 }
 0x339   : > { %6302 = vmatmul.mubr.msk.f32.vlgmr.msra.gmra.mxu1 %vm1946_vm8, %v2107_v55  ;;  %6495 = vmatprep.subr.mxu1 %v6821_v2 }
 0x33a   : > { %6499 = vmatprep.mubr.msk.f32.mxu1 %vm6826_vm12, %v6821_v2 }
 0x33e   : > { %v2176_v59 = vpop.permute.xlu1 %2175 }
 0x340   : > { %v2259_v6 = vpop.permute.xlu0 %2258 }
 0x3f9   : > { %v2247_v58 = vpop.f32.mrf.mxu1 }
 0x3fa   : > { %v2248_v60 = vadd.f32 %v2247_v58, %v2176_v59 }
 0x3fb   : > { %v2249_v61 = vpop.f32.mrf.mxu1 }
 0x3fc   : > { %v2250_v62 = vadd.f32 %v2249_v61, %v2176_v59  ;;  %v2252_v1 = vmax.f32 %v2248_v60, 0.0  ;;  %v2519_v60 = vld [vmem:[%s8377_s18] sm:$0xff]  ;;  %s8384_s18 = sld [smem:[#allocation22_spill]] }
 0x3fd   : > { %v4062_v61 = vld [vmem:[%s8378_s0] sm:$0xff]  ;;  %s8386_s0 = smov 15  }
 0x3fe   : > { %v2253_v63 = vmax.f32 %v2250_v62, 0.0  ;;  %v4748_v62 = vld [vmem:[%s8379_s11] sm:$0xff]  ;;  %s8387_s11 = smov 16  }
 0x400   : > { %2294 = vmatprep.subr.mxu0 %v2253_v63  ;;  %v3378_v63 = vld [vmem:[%s8380_s10] sm:$0xff]  ;;  %s8389_s10 = sld [smem:[#allocation13_spill]] }
 0x401   : > { %2295 = vmatpush1.msra.mxu0 %v2252_v1 }
 0x402   : > { %6303 = vmatmul.mubr.msk.f32.vlgmr.msra.gmra.mxu0 %vm2030_vm9, %v2254_v4 }
 0x403   : > { %2445 = vmatprep.mubr.f32.mxu0 %v6821_v2 }
 0x4c2   : > { %v2330_v5 = vpop.f32.mrf.mxu0 }
 0x4c3   : > { %v2331_v11 = vadd.f32 %v2330_v5, %v2259_v6  ;;  %v4737_v5 = vld [vmem:[%s8384_s18] sm:$0xff]  ;;  %s8391_s18 = sld [smem:[#allocation19_spill]] }
 0x4c4   : > { %v2332_v10 = vpop.f32.mrf.mxu0 }
 0x4c5   : > { %v2333_v12 = vadd.f32 %v2332_v10, %v2259_v6 }
 0x4c7   : > { %v2335_v13 = vadd.f32 %v2333_v12, %v2331_v11 }
 0x4c9   : > { %2336 = vadd.xlane.f32.xlu1 %v2335_v13 }
 0x552   : > { %v2337_v21 = vpop.xlane.xlu1 %2336 }
 0x553   : > { %v2339_v22 = vmul.f32 0.00390625, %v2337_v21 }
 0x555   : > { %v2341_v23 = vmul.f32 %v2340_v18, %v2339_v22 }
 0x557   : > { %v2343_v25 = vsel %vm2342_vm10, %v2341_v23, 0.0 }
 0x558   : > { %v2344_v26 = vrot.slane %v2343_v25, 4 }
 0x55a   : > { %v2345_v8 = vadd.f32 %v2344_v26, %v2343_v25 }
 0x55c   : > { %v2346_v9 = vrot.slane %v2345_v8, 2 }
 0x55e   : > { %v2347_v27 = vadd.f32 %v2346_v9, %v2345_v8 }
 0x560   : > { %v2348_v29 = vrot.slane %v2347_v27, 1 }
 0x562   : > { %v2349_v30 = vadd.f32 %v2348_v29, %v2347_v27 }
 0x564   : > { %v2350_v36 = vmax.f32 %v2349_v30, 0.0 }
 0x566   : > { %v2352_v37 = vmul.f32 %v2351_v35, %v2350_v36 }
 0x568   : > { %v6304_v40 = vmul.f32 -1.442695, %v2352_v37 }
 0x56a   : > { %6727 = vpow2.f32 %v6304_v40 }
 0x577   : > { %v6728_v41 = vpop.eup %6727 }
 0x578   : > { %v2357_v43 = vadd.f32 1.0, %v6728_v41 }
 0x57a   : > { %6729 = vrcp.f32 %v2357_v43 }
 0x587   : > { %v6730_v42 = vpop.eup %6729 }
 0x588   : > { %2362 = vperm.xlu0 %6725, %v6730_v42  }
 0x58c   : > { %2375 = vperm.xlu0 %6725, %v2372_v44  }
 0x603   : > { %v2363_v45 = vpop.permute.xlu0 %2362 }
 0x604   : > { %v2365_v46 = vmul.f32 %v2363_v45, %v2331_v11  ;;  %v2366_v49 = vmul.f32 %v2363_v45, %v2333_v12 }
 0x606   : > { %v7413_v50 = vadd.f32 %v2365_v46, %v2021_v34  ;;  %v7417_v51 = vadd.f32 %v2366_v49, %v2022_v33 }
 0x607   : > { %v2376_v31 = vpop.permute.xlu0 %2375 }
 0x608   : > { %v2369_v52 = vmax.f32 %v7413_v50, 0.0  ;;  %v2370_v53 = vmax.f32 %v7417_v51, 0.0 }
 0x60a   : > { %2411 = vmatprep.subr.mxu0 %v2370_v53 }
 0x60b   : > { %2412 = vmatpush1.msra.mxu0 %v2369_v52 }
 0x60c   : > { %6305 = vmatmul.mubr.msk.f32.vlgmr.msra.gmra.mxu0 %vm2030_vm9, %v2371_v54 }
 0x60d   : > { %2592 = vmatprep.mubr.f32.mxu0 %v6821_v2 }
 0x6cc   : > { %v2447_v32 = vpop.f32.mrf.mxu0 }
 0x6cd   : > { %v2448_v33 = vadd.f32 %v2447_v32, %v2376_v31 }
 0x6ce   : > { %v2449_v34 = vpop.f32.mrf.mxu0 }
 0x6cf   : > { %v7428_v55 = vmax.f32 %v2448_v33, 0.0  ;;  %v2450_v58 = vadd.f32 %v2449_v34, %v2376_v31 }
 0x6d1   : > { %v7430_v59 = vmax.f32 %v2450_v58, 0.0  ;;  %2511 = vrot.lane.b32.xlu0 %v7428_v55, %s8310_s1  ;;  %s8381_s1 = sld [smem:[#allocation4_spill]] }
 0x6d3   : > { %2489 = vrot.lane.b32.xlu1 %v7430_v59, %s8314_s7 }
 0x6d5   : > { %2503 = vrot.lane.b32.xlu0 %v7428_v55, %s8318_s28 }
 0x6d7   : > { %2463 = vrot.lane.b32.xlu1 %v7428_v55, %s8312_s15  ;;  %s8383_s15 = sld [smem:[#allocation3_spill]]  ;;  %v2718_v1 = vld [vmem:[%s8381_s1 + $0x8] sm:$0xff]  ;;  %v2717_v4 = vld [vmem:[%s8381_s1] sm:$0xff]  ;;  %v6311_v10 = vld [vmem:[%s8381_s1 + $0x18] sm:$0xff] }
 0x6d8   : > { %6496 = vmatpush3.msra.mxu1 %v2718_v1 }
 0x6d9   : > { %2495 = vrot.lane.b32.xlu0 %v7428_v55, %s8316_s2  ;;  %6497 = vmatprep.subr.mxu1 %v6821_v2 }
 0x6da   : > { %6498 = vmatpush3.msra.mxu1 %v2717_v4 }
 0x6db   : > { %2455 = vrot.lane.b32.xlu1 %v7428_v55, %s8321_s16  ;;  %6502 = vmatprep.subr.mxu1 %v6821_v2 }
 0x6dd   : > { %2487 = vrot.lane.b32.xlu0 %v7428_v55, %s8314_s7  ;;  %s8385_s7 = smov 1  }
 0x6df   : > { %2522 = vperm.xlu1 %6726, %v2519_v60  }
 0x6e1   : > { %2513 = vrot.lane.b32.xlu0 %v7430_v59, %s8382_s3 }
 0x6e3   : > { %4065 = vperm.xlu1 %6726, %v4062_v61  }
 0x6e5   : > { %2505 = vrot.lane.b32.xlu0 %v7430_v59, %s8318_s28 }
 0x6e7   : > { %4751 = vperm.xlu1 %6726, %v4748_v62  }
 0x6e9   : > { %2497 = vrot.lane.b32.xlu0 %v7430_v59, %s8316_s2  ;;  %s8320_s2 = sshll.u32 %s8429_s23, 3 }
 0x6ea   : > { %s1754_s28 = scalar_lea.vmem %s8383_s15, %s8320_s2  ;;  %s8390_s15 = sld [smem:[#allocation17_spill]] }
 0x6eb   : > { %v7478_v6 = vld [vmem:[%s1754_s28] sm:$0xff]  ;;  %s8388_s28 = sld [smem:[#allocation11_spill]] }
 0x6ec   : > { %6500 = vmatmul.mubr.msk.f32.vlgmr.msra.gmra.mxu1 %vm2719_vm11, %v7478_v6  ;;  %s8395_s2 = sld [smem:[#allocation23_spill]] }
 0x6ed   : > { %2479 = vrot.lane.b32.xlu0 %v7428_v55, %s8385_s7  ;;  %6503 = vmatpush3.msra.mxu1 %v6311_v10 }
 0x6ee   : > { %6504 = vmatprep.subr.mxu1 %v6821_v2  ;;  %6506 = vmatprep.mubr.msk.f32.mxu1 %vm6826_vm12, %v6821_v2 }
 0x6f1   : > { %2471 = vrot.lane.b32.xlu0 %v7428_v55, %s8386_s0 }
 0x6f5   : > { %2481 = vrot.lane.b32.xlu0 %v7430_v59, %s8385_s7 }
 0x6f9   : > { %2473 = vrot.lane.b32.xlu0 %v7430_v59, %s8386_s0 }
 0x6fd   : > { %2465 = vrot.lane.b32.xlu0 %v7430_v59, %s8387_s11 }
 0x701   : > { %2457 = vrot.lane.b32.xlu0 %v7430_v59, %s8321_s16  ;;  %s8397_s16 = smov 112  }
 0x705   : > { %3381 = vperm.xlu0 %6725, %v3378_v63  }
 0x709   : > { %4740 = vperm.xlu0 %6725, %v4737_v5  }
 0x743   : > { %v2512_v11 = vpop.permute.xlu0 %2511 }
 0x745   : > { %v2490_v35 = vpop.permute.xlu1 %2489 }
 0x747   : > { %v2504_v12 = vpop.permute.xlu0 %2503 }
 0x74b   : > { %v2496_v13 = vpop.permute.xlu0 %2495 }
 0x74f   : > { %v2488_v18 = vpop.permute.xlu0 %2487 }
 0x750   : > { %v2492_v37 = vsel %vm1864_vm3, %v2490_v35, %v2488_v18  ;;  %v2491_v43 = vsel %vm1864_vm3, %v2488_v18, %v2490_v35  ;;  %v6325_v35 = vld [vmem:[%s8381_s1 + $0x60] sm:$0xff] }
 0x751   : > { %v2494_v46 = vmul.f32 %v2492_v37, %v7238_v38  ;;  %v2493_v49 = vmul.f32 %v2491_v43, %v7241_v39  ;;  %v6331_v37 = vld [vmem:[%s8381_s1 + $0x80] sm:$0xff] }
 0x753   : > { %v2514_v21 = vpop.permute.xlu0 %2513 }
 0x754   : > { %v2515_v22 = vsel %vm1924_vm1, %v2512_v11, %v2514_v21  ;;  %v2516_v23 = vsel %vm1924_vm1, %v2514_v21, %v2512_v11 }
 0x755   : > { %v2517_v25 = vmul.f32 %v2515_v22, %v7202_v16  ;;  %v2518_v26 = vmul.f32 %v2516_v23, %v7199_v15 }
 0x757   : > { %2542 = vmatprep.subr.mxu0 %v2518_v26  ;;  %v2506_v8 = vpop.permute.xlu0 %2505  ;;  %v6310_v26 = vld [vmem:[%s8381_s1 + $0x10] sm:$0xff] }
 0x758   : > { %v2507_v9 = vsel %vm1904_vm0, %v2504_v12, %v2506_v8  ;;  %v2508_v27 = vsel %vm1904_vm0, %v2506_v8, %v2504_v12  ;;  %2543 = vmatpush1.msra.mxu0 %v2517_v25  ;;  %v2454_v25 = vld [vmem:[%s8388_s28] sm:$0xff]  ;;  %6505 = vmatpush3.msra.mxu1 %v6310_v26  ;;  %v6314_v8 = vld [vmem:[%s8381_s1 + $0x28] sm:$0xff]  ;;  %s8392_s28 = sld [smem:[#allocation5_spill]] }
 0x759   : > { %v2509_v29 = vmul.f32 %v2507_v9, %v7218_v24  ;;  %v2510_v30 = vmul.f32 %v2508_v27, %v7206_v19  ;;  %6507 = vmatmul.mubr.msk.f32.vlgmr.msra.gmra.mxu1 %vm2719_vm11, %v7478_v6  ;;  %6509 = vmatprep.subr.mxu1 %v6821_v2  ;;  %v6313_v9 = vld [vmem:[%s8381_s1 + $0x20] sm:$0xff]  ;;  %v6320_v27 = vld [vmem:[%s8381_s1 + $0x48] sm:$0xff] }
 0x75a   : > { %6510 = vmatpush3.msra.mxu1 %v6314_v8  ;;  %6513 = vmatprep.mubr.msk.f32.mxu1 %vm6826_vm12, %v6821_v2  ;;  %v3377_v8 = vld [vmem:[%s8390_s15] sm:$0xff]  ;;  %s8394_s15 = sld [smem:[#allocation6_spill]] }
 0x75b   : > { %2544 = vmatprep.subr.mxu0 %v2510_v30  ;;  %v2498_v36 = vpop.permute.xlu0 %2497  ;;  %6511 = vmatprep.subr.mxu1 %v6821_v2  ;;  %v6326_v30 = vld [vmem:[%s8381_s1 + $0x68] sm:$0xff] }
 0x75c   : > { %v2499_v40 = vsel %vm1884_vm2, %v2496_v13, %v2498_v36  ;;  %v2500_v41 = vsel %vm1884_vm2, %v2498_v36, %v2496_v13  ;;  %2545 = vmatpush1.msra.mxu0 %v2509_v29  ;;  %6512 = vmatpush3.msra.mxu1 %v6313_v9  ;;  %v6319_v29 = vld [vmem:[%s8381_s1 + $0x40] sm:$0xff]  ;;  %v6332_v36 = vld [vmem:[%s8381_s1 + $0x88] sm:$0xff] }
 0x75d   : > { %v2501_v42 = vmul.f32 %v2499_v40, %v7225_v28  ;;  %v2502_v44 = vmul.f32 %v2500_v41, %v7209_v20  ;;  %6514 = vmatmul.mubr.msk.f32.vlgmr.msra.gmra.mxu1 %vm2719_vm11, %v7478_v6  ;;  %6523 = vmatprep.subr.mxu1 %v6821_v2 }
 0x75e   : > { %6524 = vmatpush3.msra.mxu1 %v6320_v27  ;;  %6527 = vmatprep.mubr.msk.f32.mxu1 %vm6826_vm12, %v6821_v2 }
 0x75f   : > { %2546 = vmatprep.subr.mxu0 %v2502_v44  ;;  %v2480_v45 = vpop.permute.xlu0 %2479  ;;  %6525 = vmatprep.subr.mxu1 %v6821_v2 }
 0x760   : > { %2547 = vmatpush1.msra.mxu0 %v2501_v42  ;;  %6526 = vmatpush3.msra.mxu1 %v6319_v29 }
 0x761   : > { %2548 = vmatprep.subr.mxu0 %v2494_v46  ;;  %6528 = vmatmul.mubr.msk.f32.vlgmr.msra.gmra.mxu1 %vm2719_vm11, %v7478_v6 }
 0x762   : > { %2549 = vmatpush1.msra.mxu0 %v2493_v49  ;;  %6537 = vmatprep.subr.mxu1 %v6821_v2 }
 0x763   : > { %2550 = vmatprep.subr.mxu0 %v7430_v59  ;;  %v2472_v54 = vpop.permute.xlu0 %2471  ;;  %6538 = vmatpush3.msra.mxu1 %v6326_v30 }
 0x764   : > { %2551 = vmatpush1.msra.mxu0 %v7428_v55  ;;  %v2464_v55 = vpop.permute.xlu1 %2463  ;;  %6541 = vmatprep.mubr.msk.f32.mxu1 %vm6826_vm12, %v6821_v2 }
 0x765   : > { %6539 = vmatprep.subr.mxu1 %v6821_v2 }
 0x766   : > { %6540 = vmatpush3.msra.mxu1 %v6325_v35 }
 0x767   : > { %v2482_v31 = vpop.permute.xlu0 %2481  ;;  %6542 = vmatmul.mubr.msk.f32.vlgmr.msra.gmra.mxu1 %vm2719_vm11, %v7478_v6  ;;  %6551 = vmatprep.subr.mxu1 %v6821_v2 }
 0x768   : > { %v2483_v32 = vsel %vm1844_vm4, %v2480_v45, %v2482_v31  ;;  %v2484_v33 = vsel %vm1844_vm4, %v2482_v31, %v2480_v45  ;;  %v2456_v12 = vpop.permute.xlu1 %2455  ;;  %6552 = vmatpush3.msra.mxu1 %v6332_v36  ;;  %6555 = vmatprep.mubr.msk.f32.mxu1 %vm6826_vm12, %v6821_v2  ;;  %v2601_v31 = vld [vmem:[%s8389_s10] sm:$0xff]  ;;  %s8393_s10 = sld [smem:[#allocation21_spill]] }
 0x769   : > { %v2485_v34 = vmul.f32 %v2484_v33, %v7255_v48  ;;  %v2486_v58 = vmul.f32 %v2483_v32, %v7252_v47  ;;  %6553 = vmatprep.subr.mxu1 %v6821_v2  ;;  %v6317_v32 = vld [vmem:[%s8381_s1 + $0x38] sm:$0xff]  ;;  %v6316_v33 = vld [vmem:[%s8381_s1 + $0x30] sm:$0xff]  ;;  %v3458_v36 = vld [vmem:[%s8391_s18] sm:$0xff] }
 0x76a   : > { %6554 = vmatpush3.msra.mxu1 %v6331_v37  ;;  %v6336_v37 = vld [vmem:[%s8391_s18 + $0x8] sm:$0xff] }
 0x76b   : > { %2552 = vmatprep.subr.mxu0 %v2486_v58  ;;  %v2474_v60 = vpop.permute.xlu0 %2473  ;;  %6556 = vmatmul.mubr.msk.f32.vlgmr.msra.gmra.mxu1 %vm2719_vm11, %v7478_v6  ;;  %v6322_v58 = vld [vmem:[%s8381_s1 + $0x50] sm:$0xff] }
 0x76c   : > { %v2475_v61 = vsel %vm1824_vm5, %v2472_v54, %v2474_v60  ;;  %v2476_v59 = vsel %vm1824_vm5, %v2474_v60, %v2472_v54  ;;  %2553 = vmatpush1.msra.mxu0 %v2485_v34  ;;  %6579 = vmatprep.subr.mxu1 %v6821_v2  ;;  %v2523_v42 = vpop.permute.xlu1 %2522  ;;  %v6323_v34 = vld [vmem:[%s8381_s1 + $0x58] sm:$0xff] }
 0x76d   : > { %v2477_v62 = vmul.f32 %v2476_v59, %v7270_v57  ;;  %v2478_v63 = vmul.f32 %v2475_v61, %v7267_v56  ;;  %6581 = vmatprep.mubr.msk.f32.mxu1 %vm6826_vm12, %v6821_v2  ;;  %v6329_v60 = vld [vmem:[%s8381_s1 + $0x78] sm:$0xff]  ;;  %v6328_v61 = vld [vmem:[%s8381_s1 + $0x70] sm:$0xff]  ;;  %s8398_s1 = sld [smem:[#allocation28_spill]] }
 0x76f   : > { %2554 = vmatprep.subr.mxu0 %v2478_v63  ;;  %v2466_v1 = vpop.permute.xlu0 %2465 }
 0x770   : > { %v2467_v4 = vsel %vm1804_vm6, %v2464_v55, %v2466_v1  ;;  %v2468_v5 = vsel %vm1804_vm6, %v2466_v1, %v2464_v55  ;;  %2555 = vmatpush1.msra.mxu0 %v2477_v62 }
 0x771   : > { %v2469_v10 = vmul.f32 %v2468_v5, %v7285_v0  ;;  %v2470_v11 = vmul.f32 %v2467_v4, %v7282_v3 }
 0x773   : > { %2556 = vmatprep.subr.mxu0 %v2470_v11  ;;  %v2458_v13 = vpop.permute.xlu0 %2457 }
 0x774   : > { %v2459_v18 = vsel %vm1784_vm7, %v2456_v12, %v2458_v13  ;;  %v2460_v21 = vsel %vm1784_vm7, %v2458_v13, %v2456_v12  ;;  %2557 = vmatpush1.msra.mxu0 %v2469_v10 }
 0x775   : > { %v2461_v22 = vmul.f32 %v2460_v21, %v7299_v17  ;;  %v2462_v23 = vmul.f32 %v2459_v18, %v7296_v14 }
 0x777   : > { %2558 = vmatprep.subr.mxu0 %v2462_v23 }
 0x778   : > { %2559 = vmatpush1.msra.mxu0 %v2461_v22 }
 0x779   : > { %6306 = vmatmul.mubr.msk.f32.vlgmr.msra.gmra.mxu0 %vm1946_vm8, %v2454_v25 }
 0x77a   : > { %2675 = vmatprep.mubr.f32.mxu0 %v6821_v2 }
 0x780   : > { %v3382_v9 = vpop.permute.xlu0 %3381 }
 0x7ac   : > { %v7578_v40 = vpop.f32.mrf.mxu1 }
 0x7ae   : > { %v6501_v41 = vpop.f32.mrf.mxu1 }
 0x7af   : > { %v6338_v41 = vld [vmem:[%s8392_s28 + $0x10] sm:$0xff] }
 0x819   : > { %v2862_v59 = vpop.f32.mrf.mxu1 }
 0x81b   : > { %v6508_v55 = vpop.f32.mrf.mxu1 }
 0x81c   : > { %v6350_v55 = vld [vmem:[%s8392_s28 + $0x38] sm:$0xff] }
 0x81d   : > { %v2935_v62 = vpop.f32.mrf.mxu1 }
 0x81f   : > { %v6515_v63 = vpop.f32.mrf.mxu1 }
 0x820   : > { %v6349_v63 = vld [vmem:[%s8392_s28 + $0x30] sm:$0xff] }
 0x821   : > { %v3081_v1 = vpop.f32.mrf.mxu1 }
 0x823   : > { %v6529_v4 = vpop.f32.mrf.mxu1 }
 0x827   : > { %v3227_v5 = vpop.f32.mrf.mxu1 }
 0x829   : > { %v6543_v10 = vpop.f32.mrf.mxu1 }
 0x82b   : > { %v3373_v11 = vpop.f32.mrf.mxu1 }
 0x82d   : > { %v6557_v12 = vpop.f32.mrf.mxu1 }
 0x839   : > { %v2594_v43 = vpop.f32.mrf.mxu0 }
 0x83a   : > { %v2595_v44 = vadd.f32 %v2594_v43, %v2523_v42 }
 0x83b   : > { %v2596_v45 = vpop.f32.mrf.mxu0 }
 0x83c   : > { %v2597_v46 = vadd.f32 %v2596_v45, %v2523_v42  ;;  %v2599_v54 = vmax.f32 %v2595_v44, 0.0  ;;  %v3533_v44 = vld [vmem:[%s8392_s28 + $0x8] sm:$0xff] }
 0x83e   : > { %v2600_v49 = vmax.f32 %v2597_v46, 0.0  ;;  %v3532_v46 = vld [vmem:[%s8392_s28] sm:$0xff] }
 0x840   : > { %2641 = vmatprep.subr.mxu0 %v2600_v49 }
 0x841   : > { %2642 = vmatpush1.msra.mxu0 %v2599_v54  ;;  %v6342_v54 = vld [vmem:[%s8391_s18 + $0x10] sm:$0xff] }
 0x842   : > { %6307 = vmatmul.mubr.msk.f32.vlgmr.msra.gmra.mxu0 %vm2030_vm9, %v2601_v31  ;;  %6516 = vmatprep.subr.mxu0 %v6821_v2  ;;  %v6347_v31 = vld [vmem:[%s8391_s18 + $0x18] sm:$0xff] }
 0x843   : > { %6517 = vmatpush3.msra.mxu0 %v6317_v32  ;;  %6520 = vmatprep.mubr.msk.f32.mxu0 %vm6826_vm12, %v6821_v2  ;;  %v6345_v32 = vld [vmem:[%s8392_s28 + $0x28] sm:$0xff] }
 0x844   : > { %6518 = vmatprep.subr.mxu0 %v6821_v2 }
 0x845   : > { %6519 = vmatpush3.msra.mxu0 %v6316_v33  ;;  %v6344_v33 = vld [vmem:[%s8392_s28 + $0x20] sm:$0xff] }
 0x846   : > { %6521 = vmatmul.mubr.msk.f32.vlgmr.msra.gmra.mxu0 %vm2719_vm11, %v7478_v6  ;;  %6530 = vmatprep.subr.mxu0 %v6821_v2 }
 0x847   : > { %6531 = vmatpush3.msra.mxu0 %v6323_v34  ;;  %6534 = vmatprep.mubr.msk.f32.mxu0 %vm6826_vm12, %v6821_v2 }
 0x848   : > { %6532 = vmatprep.subr.mxu0 %v6821_v2 }
 0x849   : > { %6533 = vmatpush3.msra.mxu0 %v6322_v58 }
 0x84a   : > { %6535 = vmatmul.mubr.msk.f32.vlgmr.msra.gmra.mxu0 %vm2719_vm11, %v7478_v6  ;;  %6544 = vmatprep.subr.mxu0 %v6821_v2 }
 0x84b   : > { %6545 = vmatpush3.msra.mxu0 %v6329_v60  ;;  %6548 = vmatprep.mubr.msk.f32.mxu0 %vm6826_vm12, %v6821_v2 }
 0x84c   : > { %6546 = vmatprep.subr.mxu0 %v6821_v2 }
 0x84d   : > { %6547 = vmatpush3.msra.mxu0 %v6328_v61 }
 0x84e   : > { %6549 = vmatmul.mubr.msk.f32.vlgmr.msra.gmra.mxu0 %vm2719_vm11, %v7478_v6  ;;  %6558 = vmatprep.subr.mxu0 %v6821_v2 }
 0x84f   : > { %6576 = vmatprep.mubr.msk.f32.mxu0 %vm6826_vm12, %v6821_v2  ;;  %6559 = vmatpush3.msra.mxu0 %v3373_v11 }
 0x850   : > { %6560 = vmatprep.subr.mxu0 %v6821_v2 }
 0x902   : > { %v7610_v13 = vpop.f32.mrf.mxu0 }
 0x904   : > { %v7612_v6 = vpop.f32.mrf.mxu0 }
 0x906   : > { %v3008_v18 = vpop.f32.mrf.mxu0 }
 0x908   : > { %v6522_v21 = vpop.f32.mrf.mxu0 }
 0x90a   : > { %v3154_v22 = vpop.f32.mrf.mxu0 }
 0x90c   : > { %v6536_v23 = vpop.f32.mrf.mxu0 }
 0x90e   : > { %v3300_v25 = vpop.f32.mrf.mxu0 }
 0x90f   : > { %6561 = vmatpush3.msra.mxu0 %v3300_v25 }
 0x910   : > { %v6550_v26 = vpop.f32.mrf.mxu0  ;;  %6562 = vmatprep.subr.mxu0 %v6821_v2 }
 0x911   : > { %6563 = vmatpush3.msra.mxu0 %v3227_v5 }
 0x912   : > { %6564 = vmatprep.subr.mxu0 %v6821_v2 }
 0x913   : > { %6565 = vmatpush3.msra.mxu0 %v3154_v22  ;;  %v4066_v22 = vpop.permute.xlu1 %4065 }
 0x914   : > { %6566 = vmatprep.subr.mxu0 %v6821_v2 }
 0x915   : > { %6567 = vmatpush3.msra.mxu0 %v3081_v1 }
 0x916   : > { %6568 = vmatprep.subr.mxu0 %v6821_v2 }
 0x917   : > { %6569 = vmatpush3.msra.mxu0 %v3008_v18 }
 0x918   : > { %6570 = vmatprep.subr.mxu0 %v6821_v2 }
 0x919   : > { %6571 = vmatpush3.msra.mxu0 %v2935_v62 }
 0x91a   : > { %6572 = vmatprep.subr.mxu0 %v6821_v2 }
 0x91b   : > { %6573 = vmatpush3.msra.mxu0 %v2862_v59 }
 0x91c   : > { %6574 = vmatprep.subr.mxu0 %v6821_v2 }
 0x91d   : > { %6575 = vmatpush3.msra.mxu0 %v7578_v40  ;;  %v6339_v40 = vld [vmem:[%s8392_s28 + $0x18] sm:$0xff] }
 0x91e   : > { %6577 = vmatmul.mubr.msk.f32.vlgmr.msra.gmra.mxu0 %vm1946_vm8, %v3377_v8  ;;  %6608 = vmatprep.subr.mxu0 %v6821_v2  ;;  %v4070_v8 = vld [vmem:[%s8393_s10] sm:$0xff] }
 0x91f   : > { %6612 = vmatprep.mubr.msk.f32.mxu0 %vm6826_vm12, %v6821_v2  ;;  %6609 = vmatpush3.msra.mxu0 %v6345_v32  ;;  %v6362_v32 = vld [vmem:[%s8394_s15 + $0xb8] sm:$0xff] }
 0x920   : > { %6610 = vmatprep.subr.mxu0 %v6821_v2 }
 0x921   : > { %6611 = vmatpush3.msra.mxu0 %v6344_v33  ;;  %v4151_v33 = vld [vmem:[%s8394_s15 + $0x38] sm:$0xff] }
 0x922   : > { %6620 = vmatprep.subr.mxu0 %v6821_v2 }
 0x9de   : > { %v3453_v27 = vpop.f32.mrf.mxu0 }
 0x9df   : > { %v3454_v29 = vadd.f32 %v3453_v27, %v3382_v9  ;;  %v6353_v9 = vld [vmem:[%s8393_s10 + $0x8] sm:$0xff]  ;;  %v6370_v27 = vld [vmem:[%s8394_s15 + $0xf8] sm:$0xff] }
 0x9e0   : > { %v6578_v30 = vpop.f32.mrf.mxu0 }
 0x9e1   : > { %v3457_v35 = vmax.f32 %v3454_v29, 0.0  ;;  %v4159_v29 = vld [vmem:[%s8394_s15 + $0x78] sm:$0xff]  ;;  %v6369_v30 = vld [vmem:[%s8394_s15 + $0xf0] sm:$0xff] }
 0x9e3   : > { %6580 = vmatpush3.msra.mxu1 %v3457_v35 }
 0x9e4   : > { %6582 = vmatmul.mubr.msk.f32.vlgmr.msra.gmra.mxu1 %vm2030_vm9, %v3458_v36  ;;  %6584 = vmatprep.subr.mxu1 %v6821_v2  ;;  %v6368_v36 = vld [vmem:[%s8394_s15 + $0xe8] sm:$0xff] }
 0x9e5   : > { %6585 = vmatpush3.msra.mxu1 %v3457_v35  ;;  %6586 = vmatprep.mubr.msk.f32.mxu1 %vm6826_vm12, %v6821_v2 }
 0x9e6   : > { %6589 = vmatprep.subr.mxu1 %v6821_v2 }
 0x9e8   : > { %6587 = vmatmul.mubr.msk.f32.vlgmr.msra.gmra.mxu1 %vm2030_vm9, %v6336_v37  ;;  %v4157_v37 = vld [vmem:[%s8394_s15 + $0x68] sm:$0xff] }
 0x9e9   : > { %6593 = vmatprep.mubr.msk.f32.mxu1 %vm6826_vm12, %v6821_v2  ;;  %6590 = vmatpush3.msra.mxu1 %v6339_v40  ;;  %v6367_v40 = vld [vmem:[%s8394_s15 + $0xe0] sm:$0xff] }
 0x9ea   : > { %6591 = vmatprep.subr.mxu1 %v6821_v2 }
 0x9eb   : > { %6592 = vmatpush3.msra.mxu1 %v6338_v41  ;;  %v4156_v41 = vld [vmem:[%s8394_s15 + $0x60] sm:$0xff] }
 0x9ec   : > { %6596 = vmatprep.subr.mxu1 %v6821_v2 }
 0xaa4   : > { %v3528_v43 = vpop.f32.mrf.mxu1 }
 0xaa6   : > { %v6583_v42 = vpop.f32.mrf.mxu1 }
 0xaa7   : > { %v4155_v42 = vld [vmem:[%s8394_s15 + $0x58] sm:$0xff] }
 0xaa8   : > { %v3605_v45 = vpop.f32.mrf.mxu1 }
 0xaa9   : > { %6594 = vmatmul.mubr.msk.f32.vlgmr.msra.gmra.mxu1 %vm2719_vm11, %v3605_v45  ;;  %v4154_v45 = vld [vmem:[%s8394_s15 + $0x50] sm:$0xff] }
 0xaaa   : > { %6597 = vmatpush3.msra.mxu1 %v3533_v44  ;;  %v6588_v49 = vpop.f32.mrf.mxu1  ;;  %6600 = vmatprep.mubr.msk.f32.mxu1 %vm6826_vm12, %v6821_v2  ;;  %v6365_v44 = vld [vmem:[%s8394_s15 + $0xd0] sm:$0xff] }
 0xaab   : > { %6598 = vmatprep.subr.mxu1 %v6821_v2  ;;  %v4153_v49 = vld [vmem:[%s8394_s15 + $0x48] sm:$0xff] }
 0xaac   : > { %6599 = vmatpush3.msra.mxu1 %v3532_v46  ;;  %v6364_v46 = vld [vmem:[%s8394_s15 + $0xc8] sm:$0xff] }
 0xaad   : > { %6603 = vmatprep.subr.mxu1 %v6821_v2  ;;  %6601 = vmatmul.mubr.msk.f32.vlgmr.msra.gmra.mxu1 %vm2719_vm11, %v3528_v43  ;;  %v6366_v43 = vld [vmem:[%s8394_s15 + $0xd8] sm:$0xff] }
 0xaae   : > { %6604 = vmatpush3.msra.mxu1 %v3457_v35  ;;  %6605 = vmatprep.mubr.msk.f32.mxu1 %vm6826_vm12, %v6821_v2 }
 0xaaf   : > { %6615 = vmatprep.subr.mxu1 %v6821_v2 }
 0xab1   : > { %6606 = vmatmul.mubr.msk.f32.vlgmr.msra.gmra.mxu1 %vm2030_vm9, %v6342_v54  ;;  %v6363_v54 = vld [vmem:[%s8394_s15 + $0xc0] sm:$0xff] }
 0xab2   : > { %6616 = vmatpush3.msra.mxu1 %v3457_v35  ;;  %6617 = vmatprep.mubr.msk.f32.mxu1 %vm6826_vm12, %v6821_v2  ;;  %v4158_v35 = vld [vmem:[%s8394_s15 + $0x70] sm:$0xff] }
 0xab3   : > { %6627 = vmatprep.subr.mxu1 %v6821_v2 }
 0xab5   : > { %6618 = vmatmul.mubr.msk.f32.vlgmr.msra.gmra.mxu1 %vm2030_vm9, %v6347_v31  ;;  %v4152_v31 = vld [vmem:[%s8394_s15 + $0x40] sm:$0xff] }
 0xab6   : > { %6629 = vmatprep.mubr.msk.f32.mxu1 %vm6826_vm12, %v6821_v2 }
 0xb69   : > { %v3681_v34 = vpop.f32.mrf.mxu1 }
 0xb6b   : > { %v6595_v58 = vpop.f32.mrf.mxu1 }
 0xb6c   : > { %v4150_v58 = vld [vmem:[%s8394_s15 + $0x30] sm:$0xff] }
 0xb6d   : > { %v3754_v60 = vpop.f32.mrf.mxu1 }
 0xb6e   : > { %v3755_v61 = vadd.f32 %v3754_v60, %v3681_v34  ;;  %v6361_v34 = vld [vmem:[%s8394_s15 + $0xb0] sm:$0xff]  ;;  %v6360_v60 = vld [vmem:[%s8394_s15 + $0xa8] sm:$0xff] }
 0xb6f   : > { %v6602_v59 = vpop.f32.mrf.mxu1 }
 0xb70   : > { %v6359_v59 = vld [vmem:[%s8394_s15 + $0xa0] sm:$0xff] }
 0xb71   : > { %v3829_v62 = vpop.f32.mrf.mxu1 }
 0xb72   : > { %6613 = vmatmul.mubr.msk.f32.vlgmr.msra.gmra.mxu0 %vm2719_vm11, %v3829_v62  ;;  %v6358_v62 = vld [vmem:[%s8394_s15 + $0x98] sm:$0xff] }
 0xb73   : > { %v6607_v1 = vpop.f32.mrf.mxu1  ;;  %6621 = vmatpush3.msra.mxu0 %v6350_v55  ;;  %6624 = vmatprep.mubr.msk.f32.mxu0 %vm6826_vm12, %v6821_v2  ;;  %v4148_v55 = vld [vmem:[%s8394_s15 + $0x20] sm:$0xff] }
 0xb74   : > { %6622 = vmatprep.subr.mxu0 %v6821_v2  ;;  %v6357_v1 = vld [vmem:[%s8394_s15 + $0x90] sm:$0xff] }
 0xb75   : > { %v3981_v4 = vpop.f32.mrf.mxu1  ;;  %6623 = vmatpush3.msra.mxu0 %v6349_v63  ;;  %v4147_v63 = vld [vmem:[%s8394_s15 + $0x18] sm:$0xff] }
 0xb76   : > { %6625 = vmatmul.mubr.msk.f32.vlgmr.msra.gmra.mxu0 %vm2719_vm11, %v3981_v4  ;;  %6632 = vmatprep.subr.mxu0 %v6821_v2  ;;  %v4146_v4 = vld [vmem:[%s8394_s15 + $0x10] sm:$0xff] }
 0xb77   : > { %v6619_v5 = vpop.f32.mrf.mxu1  ;;  %6634 = vmatprep.mubr.msk.f32.mxu0 %vm6826_vm12, %v6821_v2 }
 0xb78   : > { %v6356_v5 = vld [vmem:[%s8394_s15 + $0x88] sm:$0xff] }
 0xc32   : > { %v3905_v10 = vpop.f32.mrf.mxu0 }
 0xc33   : > { %v3909_v12 = vadd.f32 %v3905_v10, %v3755_v61  ;;  %v4149_v61 = vld [vmem:[%s8394_s15 + $0x28] sm:$0xff] }
 0xc34   : > { %v6614_v11 = vpop.f32.mrf.mxu0  ;;  %v4145_v10 = vld [vmem:[%s8394_s15 + $0x8] sm:$0xff] }
 0xc35   : > { %v6355_v11 = vld [vmem:[%s8394_s15 + $0x80] sm:$0xff] }
 0xc36   : > { %v4057_v18 = vpop.f32.mrf.mxu0 }
 0xc37   : > { %v4061_v21 = vadd.f32 %v4057_v18, %v3909_v12  ;;  %v4144_v12 = vld [vmem:[%s8394_s15] sm:$0xff]  ;;  %v6390_v18 = vld [vmem:[%s8394_s15 + $0x178] sm:$0xff] }
 0xc38   : > { %v6626_v23 = vpop.f32.mrf.mxu0 }
 0xc39   : > { %v4068_v25 = vadd.f32 %v4066_v22, %v4061_v21  ;;  %v6389_v23 = vld [vmem:[%s8394_s15 + $0x170] sm:$0xff] }
 0xc3b   : > { %v7675_v26 = vmax.f32 %v4068_v25, 0.0  ;;  %v6388_v25 = vld [vmem:[%s8394_s15 + $0x168] sm:$0xff] }
 0xc3d   : > { %6628 = vmatpush3.msra.mxu1 %v7675_v26  ;;  %6633 = vmatpush3.msra.mxu0 %v7675_v26 }
 0xc3e   : > { %6630 = vmatmul.mubr.msk.f32.vlgmr.msra.gmra.mxu1 %vm2030_vm9, %v4070_v8  ;;  %6635 = vmatmul.mubr.msk.f32.vlgmr.msra.gmra.mxu0 %vm2030_vm9, %v6353_v9  ;;  %v6373_v9 = vld [vmem:[%s8393_s10 + $0x10] sm:$0xff] }
 0xc3f   : > { %4272 = vmatprep.subr.mxu1 %v6370_v27  ;;  %4346 = vmatprep.subr.mxu0 %v4159_v29  ;;  %v6387_v29 = vld [vmem:[%s8394_s15 + $0x160] sm:$0xff] }
 0xc40   : > { %4273 = vmatpush1.msra.mxu1 %v6369_v30  ;;  %4347 = vmatpush1.msra.mxu0 %v4158_v35  ;;  %v6386_v30 = vld [vmem:[%s8394_s15 + $0x158] sm:$0xff] }
 0xc41   : > { %4274 = vmatprep.subr.mxu1 %v6368_v36  ;;  %4348 = vmatprep.subr.mxu0 %v4157_v37  ;;  %v6409_v35 = vld [vmem:[%s8394_s15 + $0x1f8] sm:$0xff]  ;;  %v6385_v36 = vld [vmem:[%s8394_s15 + $0x150] sm:$0xff] }
 0xc42   : > { %4275 = vmatpush1.msra.mxu1 %v6367_v40  ;;  %4349 = vmatpush1.msra.mxu0 %v4156_v41  ;;  %v6392_v37 = vld [vmem:[%s8393_s10 + $0x18] sm:$0xff]  ;;  %v6384_v40 = vld [vmem:[%s8394_s15 + $0x148] sm:$0xff]  ;;  %v6408_v41 = vld [vmem:[%s8394_s15 + $0x1f0] sm:$0xff]  ;;  %s8407_s10 = sld [smem:[#allocation31_spill]] }
 0xc43   : > { %4276 = vmatprep.subr.mxu1 %v6366_v43  ;;  %4350 = vmatprep.subr.mxu0 %v4155_v42  ;;  %v6383_v43 = vld [vmem:[%s8394_s15 + $0x140] sm:$0xff]  ;;  %v6407_v42 = vld [vmem:[%s8394_s15 + $0x1e8] sm:$0xff] }
 0xc44   : > { %4277 = vmatpush1.msra.mxu1 %v6365_v44  ;;  %4351 = vmatpush1.msra.mxu0 %v4154_v45  ;;  %v6382_v44 = vld [vmem:[%s8394_s15 + $0x138] sm:$0xff]  ;;  %v6381_v45 = vld [vmem:[%s8394_s15 + $0x130] sm:$0xff] }
 0xc45   : > { %4278 = vmatprep.subr.mxu1 %v6364_v46  ;;  %4352 = vmatprep.subr.mxu0 %v4153_v49  ;;  %v6405_v46 = vld [vmem:[%s8394_s15 + $0x1d8] sm:$0xff]  ;;  %v6380_v49 = vld [vmem:[%s8394_s15 + $0x128] sm:$0xff] }
 0xc46   : > { %4279 = vmatpush1.msra.mxu1 %v6363_v54  ;;  %4353 = vmatpush1.msra.mxu0 %v4152_v31  ;;  %v6404_v54 = vld [vmem:[%s8394_s15 + $0x1d0] sm:$0xff]  ;;  %v6403_v31 = vld [vmem:[%s8394_s15 + $0x1c8] sm:$0xff] }
 0xc47   : > { %4280 = vmatprep.subr.mxu1 %v6362_v32  ;;  %4354 = vmatprep.subr.mxu0 %v4151_v33  ;;  %v6379_v32 = vld [vmem:[%s8394_s15 + $0x120] sm:$0xff] }
 0xc48   : > { %4281 = vmatpush1.msra.mxu1 %v6361_v34  ;;  %4355 = vmatpush1.msra.mxu0 %v4150_v58  ;;  %v6402_v33 = vld [vmem:[%s8394_s15 + $0x1c0] sm:$0xff]  ;;  %v6378_v34 = vld [vmem:[%s8394_s15 + $0x118] sm:$0xff] }
 0xc49   : > { %4282 = vmatprep.subr.mxu1 %v6360_v60  ;;  %4356 = vmatprep.subr.mxu0 %v4149_v61  ;;  %v6401_v58 = vld [vmem:[%s8394_s15 + $0x1b8] sm:$0xff]  ;;  %v6377_v60 = vld [vmem:[%s8394_s15 + $0x110] sm:$0xff] }
 0xc4a   : > { %4283 = vmatpush1.msra.mxu1 %v6359_v59  ;;  %4357 = vmatpush1.msra.mxu0 %v4148_v55  ;;  %v6400_v61 = vld [vmem:[%s8394_s15 + $0x1b0] sm:$0xff]  ;;  %v6376_v59 = vld [vmem:[%s8394_s15 + $0x108] sm:$0xff] }
 0xc4b   : > { %4284 = vmatprep.subr.mxu1 %v6358_v62  ;;  %4358 = vmatprep.subr.mxu0 %v4147_v63  ;;  %v6399_v55 = vld [vmem:[%s8394_s15 + $0x1a8] sm:$0xff]  ;;  %v6375_v62 = vld [vmem:[%s8394_s15 + $0x100] sm:$0xff] }
 0xc4c   : > { %4285 = vmatpush1.msra.mxu1 %v6357_v1  ;;  %4359 = vmatpush1.msra.mxu0 %v4146_v4  ;;  %v6398_v63 = vld [vmem:[%s8394_s15 + $0x1a0] sm:$0xff]  ;;  %v6397_v1 = vld [vmem:[%s8394_s15 + $0x198] sm:$0xff]  ;;  %v6396_v4 = vld [vmem:[%s8394_s15 + $0x190] sm:$0xff] }
 0xc4d   : > { %4286 = vmatprep.subr.mxu1 %v6356_v5  ;;  %4360 = vmatprep.subr.mxu0 %v4145_v10  ;;  %v6395_v5 = vld [vmem:[%s8394_s15 + $0x188] sm:$0xff]  ;;  %v6394_v10 = vld [vmem:[%s8394_s15 + $0x180] sm:$0xff] }
 0xc4e   : > { %4287 = vmatpush1.msra.mxu1 %v6355_v11  ;;  %4320 = vmatprep.mubr.f32.mxu1 %v6821_v2 }
 0xc4f   : > { %4394 = vmatprep.mubr.f32.mxu0 %v6821_v2  ;;  %6637 = vmatprep.subr.mxu1 %v6821_v2 }
 0xc50   : > { %4361 = vmatpush1.msra.mxu0 %v4144_v12 }
 0xc51   : > { %4512 = vmatprep.subr.mxu0 %v6390_v18 }
 0xcfe   : > { %v4140_v21 = vpop.f32.mrf.mxu1  ;;  %v4231_v22 = vpop.f32.mrf.mxu0 }
 0xcff   : > { %6371 = vmatmul.mubr.msk.f32.vlgmr.msra.gmra.mxu1 %vm4252_vm13, %v4231_v22  ;;  %6372 = vmatmul.mubr.msk.f32.vlgmr.msra.gmra.mxu0 %vm4252_vm13, %v4140_v21 }
 0xd00   : > { %6638 = vmatpush3.msra.mxu1 %v7675_v26  ;;  %v6636_v8 = vpop.f32.mrf.mxu0  ;;  %6639 = vmatprep.mubr.msk.f32.mxu1 %vm6826_vm12, %v6821_v2  ;;  %v6631_v27 = vpop.f32.mrf.mxu1 }
 0xd01   : > { %6642 = vmatprep.subr.mxu1 %v6821_v2  ;;  %4513 = vmatpush1.msra.mxu0 %v6389_v23 }
 0xd02   : > { %4514 = vmatprep.subr.mxu0 %v6388_v25  ;;  %4560 = vmatprep.mubr.f32.mxu0 %v6821_v2 }
 0xd03   : > { %6640 = vmatmul.mubr.msk.f32.vlgmr.msra.gmra.mxu1 %vm2030_vm9, %v6373_v9  ;;  %4515 = vmatpush1.msra.mxu0 %v6387_v29 }
 0xd04   : > { %6643 = vmatpush3.msra.mxu1 %v7675_v26  ;;  %6644 = vmatprep.mubr.msk.f32.mxu1 %vm6826_vm12, %v6821_v2  ;;  %v6406_v26 = vld [vmem:[%s8394_s15 + $0x1e0] sm:$0xff] }
 0xd05   : > { %4516 = vmatprep.subr.mxu0 %v6386_v30  ;;  %4680 = vmatprep.subr.mxu1 %v6409_v35 }
 0xd06   : > { %4517 = vmatpush1.msra.mxu0 %v6385_v36 }
 0xd07   : > { %6645 = vmatmul.mubr.msk.f32.vlgmr.msra.gmra.mxu1 %vm2030_vm9, %v6392_v37  ;;  %4518 = vmatprep.subr.mxu0 %v6384_v40 }
 0xd08   : > { %4681 = vmatpush1.msra.mxu1 %v6408_v41  ;;  %4519 = vmatpush1.msra.mxu0 %v6383_v43  ;;  %v4741_v43 = vpop.permute.xlu0 %4740 }
 0xd09   : > { %4682 = vmatprep.subr.mxu1 %v6407_v42  ;;  %4520 = vmatprep.subr.mxu0 %v6382_v44 }
 0xd0a   : > { %4683 = vmatpush1.msra.mxu1 %v6406_v26  ;;  %4521 = vmatpush1.msra.mxu0 %v6381_v45 }
 0xd0b   : > { %4684 = vmatprep.subr.mxu1 %v6405_v46  ;;  %4522 = vmatprep.subr.mxu0 %v6380_v49  ;;  %v4747_v49 = vld [vmem:[%s8395_s2] sm:$0xff]  ;;  %s8396_s2 = sld [smem:[#allocation26_spill]] }
 0xd0c   : > { %4685 = vmatpush1.msra.mxu1 %v6404_v54  ;;  %4728 = vmatprep.mubr.f32.mxu1 %v6821_v2  ;;  %v4752_v54 = vpop.permute.xlu1 %4751 }
 0xd0d   : > { %4686 = vmatprep.subr.mxu1 %v6403_v31  ;;  %4523 = vmatpush1.msra.mxu0 %v6379_v32 }
 0xd0e   : > { %4687 = vmatpush1.msra.mxu1 %v6402_v33  ;;  %4524 = vmatprep.subr.mxu0 %v6378_v34 }
 0xd0f   : > { %4688 = vmatprep.subr.mxu1 %v6401_v58  ;;  %4525 = vmatpush1.msra.mxu0 %v6377_v60 }
 0xd10   : > { %4689 = vmatpush1.msra.mxu1 %v6400_v61  ;;  %4526 = vmatprep.subr.mxu0 %v6376_v59  ;;  %v4978_v59 = vld [vmem:[%s8398_s1] sm:$0xff]  ;;  %s8402_s1 = sld [smem:[#allocation25_spill]] }
 0xd11   : > { %4690 = vmatprep.subr.mxu1 %v6399_v55  ;;  %4527 = vmatpush1.msra.mxu0 %v6375_v62  ;;  %v4895_v61 = vld [vmem:[%s8396_s2] sm:$0xff]  ;;  %s8403_s2 = sld [smem:[#allocation27_spill]] }
 0xd12   : > { %4691 = vmatpush1.msra.mxu1 %v6398_v63 }
 0xd13   : > { %4692 = vmatprep.subr.mxu1 %v6397_v1 }
 0xd14   : > { %4693 = vmatpush1.msra.mxu1 %v6396_v4 }
 0xd15   : > { %4694 = vmatprep.subr.mxu1 %v6395_v5 }
 0xd16   : > { %4695 = vmatpush1.msra.mxu1 %v6394_v10 }
 0xdbf   : > { %v4322_v11 = vpop.f32.mrf.mxu1  ;;  %v4396_v25 = vpop.f32.mrf.mxu0 }
 0xdc0   : > { %v4397_v27 = vadd.f32 %v4396_v25, %v4322_v11 }
 0xdc1   : > { %v4324_v12 = vpop.f32.mrf.mxu1  ;;  %v4398_v8 = vpop.f32.mrf.mxu0 }
 0xdc2   : > { %v4399_v30 = vadd.f32 %v4398_v8, %v4324_v12 }
 0xdc3   : > { %v4472_v18 = vpop.f32.mrf.mxu1 }
 0xdc4   : > { %6391 = vmatmul.mubr.msk.f32.vlgmr.msra.gmra.mxu0 %vm4252_vm13, %v4472_v18 }
 0xdc5   : > { %v6641_v21 = vpop.f32.mrf.mxu1  ;;  %4821 = vmatprep.mubr.f32.mxu0 %v6821_v2 }
 0xdc7   : > { %v4640_v22 = vpop.f32.mrf.mxu1 }
 0xdc8   : > { %6410 = vmatmul.mubr.msk.f32.vlgmr.msra.gmra.mxu1 %vm4252_vm13, %v4640_v22 }
 0xdc9   : > { %v6646_v23 = vpop.f32.mrf.mxu1  ;;  %5051 = vmatprep.mubr.f32.mxu1 %v6821_v2 }
 0xe84   : > { %v4562_v9 = vpop.f32.mrf.mxu0 }
 0xe85   : > { %v4567_v35 = vadd.f32 %v4562_v9, %v4397_v27 }
 0xe86   : > { %v4564_v29 = vpop.f32.mrf.mxu0 }
 0xe87   : > { %v4568_v37 = vadd.f32 %v4564_v29, %v4399_v30 }
 0xe88   : > { %v4730_v36 = vpop.f32.mrf.mxu1 }
 0xe89   : > { %v4735_v40 = vadd.f32 %v4730_v36, %v4567_v35 }
 0xe8a   : > { %v4732_v41 = vpop.f32.mrf.mxu1 }
 0xe8b   : > { %v4736_v42 = vadd.f32 %v4732_v41, %v4568_v37  ;;  %v7769_v44 = vadd.f32 %v4741_v43, %v4735_v40 }
 0xe8d   : > { %v7771_v26 = vadd.f32 %v4741_v43, %v4736_v42  ;;  %v4745_v46 = vmax.f32 %v7769_v44, 0.0 }
 0xe8f   : > { %v4746_v45 = vmax.f32 %v7771_v26, 0.0 }
 0xe91   : > { %4787 = vmatprep.subr.mxu0 %v4746_v45 }
 0xe92   : > { %4788 = vmatpush1.msra.mxu0 %v4745_v46 }
 0xe93   : > { %6411 = vmatmul.mubr.msk.f32.vlgmr.msra.gmra.mxu0 %vm2030_vm9, %v4747_v49 }
 0xe94   : > { %4968 = vmatprep.mubr.f32.mxu0 %v6821_v2 }
 0xf53   : > { %v4823_v31 = vpop.f32.mrf.mxu0 }
 0xf54   : > { %v4824_v32 = vadd.f32 %v4823_v31, %v4752_v54 }
 0xf55   : > { %v4825_v33 = vpop.f32.mrf.mxu0 }
 0xf56   : > { %v7782_v34 = vmax.f32 %v4824_v32, 0.0  ;;  %v4826_v58 = vadd.f32 %v4825_v33, %v4752_v54 }
 0xf58   : > { %v4829_v60 = vmax.f32 %v4826_v58, 0.0  ;;  %4887 = vrot.lane.b32.xlu0 %v7782_v34, %s8382_s3 }
 0xf5a   : > { %4889 = vrot.lane.b32.xlu1 %v4829_v60, %s8382_s3 }
 0xf5c   : > { %4879 = vrot.lane.b32.xlu0 %v7782_v34, %s8397_s16 }
 0xf5e   : > { %4881 = vrot.lane.b32.xlu1 %v4829_v60, %s8397_s16 }
 0xf60   : > { %4871 = vrot.lane.b32.xlu0 %v7782_v34, %s8399_s4 }
 0xf62   : > { %4873 = vrot.lane.b32.xlu1 %v4829_v60, %s8399_s4 }
 0xf64   : > { %4863 = vrot.lane.b32.xlu0 %v7782_v34, %s8400_s5 }
 0xf66   : > { %4865 = vrot.lane.b32.xlu1 %v4829_v60, %s8400_s5 }
 0xf68   : > { %4855 = vrot.lane.b32.xlu0 %v7782_v34, %s8385_s7 }
 0xf6a   : > { %4857 = vrot.lane.b32.xlu1 %v4829_v60, %s8385_s7 }
 0xf6c   : > { %4847 = vrot.lane.b32.xlu0 %v7782_v34, %s8386_s0 }
 0xf6e   : > { %4849 = vrot.lane.b32.xlu1 %v4829_v60, %s8386_s0 }
 0xf70   : > { %4839 = vrot.lane.b32.xlu0 %v7782_v34, %s8387_s11 }
 0xf72   : > { %4841 = vrot.lane.b32.xlu1 %v4829_v60, %s8387_s11 }
 0xf74   : > { %4831 = vrot.lane.b32.xlu0 %v7782_v34, %s8401_s6 }
 0xf76   : > { %4833 = vrot.lane.b32.xlu1 %v4829_v60, %s8401_s6 }
 0xf78   : > { %4898 = vperm.xlu0 %6725, %v4895_v61  }
 0xf7a   : > { %4981 = vperm.xlu1 %6726, %v4978_v59  }
 0xfca   : > { %v4888_v55 = vpop.permute.xlu0 %4887 }
 0xfcc   : > { %v4890_v62 = vpop.permute.xlu1 %4889 }
 0xfcd   : > { %v4891_v63 = vsel %vm1924_vm1, %v4888_v55, %v4890_v62  ;;  %v4892_v1 = vsel %vm1924_vm1, %v4890_v62, %v4888_v55 }
 0xfce   : > { %v4893_v4 = vmul.f32 %v4891_v63, %v7202_v16  ;;  %v4880_v5 = vpop.permute.xlu0 %4879  ;;  %v4894_v10 = vmul.f32 %v4892_v1, %v7199_v15 }
 0xfd0   : > { %v4882_v11 = vpop.permute.xlu1 %4881  ;;  %4918 = vmatprep.subr.mxu0 %v4894_v10 }
 0xfd1   : > { %v4883_v12 = vsel %vm1904_vm0, %v4880_v5, %v4882_v11  ;;  %v4884_v18 = vsel %vm1904_vm0, %v4882_v11, %v4880_v5  ;;  %4919 = vmatpush1.msra.mxu0 %v4893_v4 }
 0xfd2   : > { %v4885_v21 = vmul.f32 %v4883_v12, %v7218_v24  ;;  %v4872_v22 = vpop.permute.xlu0 %4871  ;;  %v4886_v23 = vmul.f32 %v4884_v18, %v7206_v19 }
 0xfd4   : > { %v4874_v25 = vpop.permute.xlu1 %4873  ;;  %4920 = vmatprep.subr.mxu0 %v4886_v23  ;;  %v4830_v23 = vld [vmem:[%s8402_s1] sm:$0xff]  ;;  %s8405_s1 = sld [smem:[#allocation30_spill]] }
 0xfd5   : > { %v4875_v8 = vsel %vm1884_vm2, %v4872_v22, %v4874_v25  ;;  %v4876_v9 = vsel %vm1884_vm2, %v4874_v25, %v4872_v22  ;;  %4921 = vmatpush1.msra.mxu0 %v4885_v21 }
 0xfd6   : > { %v4877_v27 = vmul.f32 %v4875_v8, %v7225_v28  ;;  %v4864_v29 = vpop.permute.xlu0 %4863  ;;  %v4878_v30 = vmul.f32 %v4876_v9, %v7209_v20 }
 0xfd8   : > { %v4866_v35 = vpop.permute.xlu1 %4865  ;;  %4922 = vmatprep.subr.mxu0 %v4878_v30 }
 0xfd9   : > { %v4867_v36 = vsel %vm1864_vm3, %v4864_v29, %v4866_v35  ;;  %v4868_v37 = vsel %vm1864_vm3, %v4866_v35, %v4864_v29  ;;  %4923 = vmatpush1.msra.mxu0 %v4877_v27 }
 0xfda   : > { %v4869_v40 = vmul.f32 %v4867_v36, %v7241_v39  ;;  %v4856_v41 = vpop.permute.xlu0 %4855  ;;  %v4870_v43 = vmul.f32 %v4868_v37, %v7238_v38  ;;  %v4977_v36 = vld [vmem:[%s8403_s2] sm:$0xff]  ;;  %s8406_s2 = sld [smem:[#allocation32_spill]] }
 0xfdc   : > { %v4858_v42 = vpop.permute.xlu1 %4857  ;;  %4924 = vmatprep.subr.mxu0 %v4870_v43 }
 0xfdd   : > { %v4859_v49 = vsel %vm1844_vm4, %v4856_v41, %v4858_v42  ;;  %v4860_v54 = vsel %vm1844_vm4, %v4858_v42, %v4856_v41  ;;  %4925 = vmatpush1.msra.mxu0 %v4869_v40 }
 0xfde   : > { %v4861_v31 = vmul.f32 %v4860_v54, %v7255_v48  ;;  %4926 = vmatprep.subr.mxu0 %v4829_v60  ;;  %v4848_v32 = vpop.permute.xlu0 %4847  ;;  %v4862_v33 = vmul.f32 %v4859_v49, %v7252_v47  ;;  %v5062_v54 = vld [vmem:[%s8404_s8] sm:$0xff]  ;;  %s8408_s8 = sld [smem:[#allocation34_spill]] }
 0xfdf   : > { %4927 = vmatpush1.msra.mxu0 %v7782_v34 }
 0xfe0   : > { %v4850_v58 = vpop.permute.xlu1 %4849  ;;  %4928 = vmatprep.subr.mxu0 %v4862_v33 }
 0xfe1   : > { %v4851_v61 = vsel %vm1824_vm5, %v4848_v32, %v4850_v58  ;;  %v4852_v59 = vsel %vm1824_vm5, %v4850_v58, %v4848_v32  ;;  %4929 = vmatpush1.msra.mxu0 %v4861_v31 }
 0xfe2   : > { %v4853_v55 = vmul.f32 %v4852_v59, %v7270_v57  ;;  %v4840_v62 = vpop.permute.xlu0 %4839  ;;  %v4854_v63 = vmul.f32 %v4851_v61, %v7267_v56 }
 0xfe4   : > { %v4842_v60 = vpop.permute.xlu1 %4841  ;;  %4930 = vmatprep.subr.mxu0 %v4854_v63 }
 0xfe5   : > { %v4843_v34 = vsel %vm1804_vm6, %v4840_v62, %v4842_v60  ;;  %v4844_v1 = vsel %vm1804_vm6, %v4842_v60, %v4840_v62  ;;  %4931 = vmatpush1.msra.mxu0 %v4853_v55 }
 0xfe6   : > { %v4845_v4 = vmul.f32 %v4844_v1, %v7285_v0  ;;  %v4846_v5 = vmul.f32 %v4843_v34, %v7282_v3  ;;  %v4832_v10 = vpop.permute.xlu0 %4831  ;;  %v5072_v34 = vld [vmem:[%s8405_s1] sm:$0xff]  ;;  %s8410_s1 = sld [smem:[#allocation33_spill]] }
 0xfe8   : > { %v4834_v11 = vpop.permute.xlu1 %4833  ;;  %4932 = vmatprep.subr.mxu0 %v4846_v5 }
 0xfe9   : > { %v4835_v12 = vsel %vm1784_vm7, %v4832_v10, %v4834_v11  ;;  %v4836_v18 = vsel %vm1784_vm7, %v4834_v11, %v4832_v10  ;;  %4933 = vmatpush1.msra.mxu0 %v4845_v4 }
 0xfea   : > { %v4837_v21 = vmul.f32 %v4836_v18, %v7299_v17  ;;  %v4838_v22 = vmul.f32 %v4835_v12, %v7296_v14  ;;  %v5093_v18 = vld [vmem:[%s8406_s2] sm:$0xff]  ;;  %s8411_s2 = sld [smem:[#allocation35_spill]] }
 0xfec   : > { %4934 = vmatprep.subr.mxu0 %v4838_v22 }
 0xfed   : > { %4935 = vmatpush1.msra.mxu0 %v4837_v21 }
 0xfee   : > { %6412 = vmatmul.mubr.msk.f32.vlgmr.msra.gmra.mxu0 %vm1946_vm8, %v4830_v23 }
 0xfef   : > { %5396 = vmatprep.mubr.f32.mxu0 %v6821_v2 }
 0xff3   : > { %v4899_v8 = vpop.permute.xlu0 %4898 }
 0xff5   : > { %v4982_v40 = vpop.permute.xlu1 %4981 }
0x10ae   : > { %v4970_v25 = vpop.f32.mrf.mxu0 }
0x10af   : > { %v4971_v9 = vadd.f32 %v4970_v25, %v4899_v8 }
0x10b0   : > { %v4972_v27 = vpop.f32.mrf.mxu0 }
0x10b1   : > { %v4973_v29 = vadd.f32 %v4972_v27, %v4899_v8  ;;  %v4975_v35 = vmax.f32 %v4971_v9, 0.0 }
0x10b3   : > { %v4976_v30 = vmax.f32 %v4973_v29, 0.0  ;;  %v5092_v29 = vld [vmem:[%s8407_s10] sm:$0xff]  ;;  %s8409_s10 = sld [smem:[#allocation36_spill]] }
0x10b5   : > { %5017 = vmatprep.subr.mxu1 %v4976_v30  ;;  %v5240_v30 = vld [vmem:[%s8408_s8] sm:$0xff]  ;;  %s8412_s8 = sld [smem:[#allocation37_spill]] }
0x10b6   : > { %5018 = vmatpush1.msra.mxu1 %v4975_v35 }
0x10b7   : > { %6413 = vmatmul.mubr.msk.f32.vlgmr.msra.gmra.mxu1 %vm2030_vm9, %v4977_v36 }
0x10b8   : > { %5166 = vmatprep.mubr.f32.mxu1 %v6821_v2 }
0x1177   : > { %v5053_v37 = vpop.f32.mrf.mxu1 }
0x1178   : > { %v5054_v43 = vadd.f32 %v5053_v37, %v4982_v40 }
0x1179   : > { %v5055_v41 = vpop.f32.mrf.mxu1 }
0x117a   : > { %v5056_v42 = vadd.f32 %v5055_v41, %v4982_v40  ;;  %v5323_v40 = vld [vmem:[%s8409_s10] sm:$0xff]  ;;  %s8413_s10 = sld [smem:[#allocation38_spill]] }
0x117c   : > { %v5058_v49 = vadd.f32 %v5056_v42, %v5054_v43 }
0x117e   : > { %5059 = vadd.xlane.f32.xlu0 %v5058_v49 }
0x1207   : > { %v5060_v31 = vpop.xlane.xlu0 %5059 }
0x1208   : > { %v5061_v32 = vmul.f32 0.00390625, %v5060_v31 }
0x120a   : > { %v5063_v33 = vmul.f32 %v5062_v54, %v5061_v32 }
0x120c   : > { %v5064_v58 = vsel %vm2342_vm10, %v5063_v33, 0.0 }
0x120d   : > { %v5065_v61 = vrot.slane %v5064_v58, 4 }
0x120f   : > { %v5066_v59 = vadd.f32 %v5065_v61, %v5064_v58 }
0x1211   : > { %v5067_v55 = vrot.slane %v5066_v59, 2 }
0x1213   : > { %v5068_v62 = vadd.f32 %v5067_v55, %v5066_v59 }
0x1215   : > { %v5069_v63 = vrot.slane %v5068_v62, 1 }
0x1217   : > { %v5070_v60 = vadd.f32 %v5069_v63, %v5068_v62 }
0x1219   : > { %v5071_v1 = vmax.f32 %v5070_v60, 0.0 }
0x121b   : > { %v5073_v4 = vmul.f32 %v5072_v34, %v5071_v1 }
0x121d   : > { %v6414_v5 = vmul.f32 -1.442695, %v5073_v4 }
0x121f   : > { %6731 = vpow2.f32 %v6414_v5 }
0x122c   : > { %v6732_v10 = vpop.eup %6731 }
0x122d   : > { %v5078_v11 = vadd.f32 1.0, %v6732_v10 }
0x122f   : > { %6733 = vrcp.f32 %v5078_v11 }
0x123c   : > { %v6734_v12 = vpop.eup %6733 }
0x123d   : > { %5083 = vperm.xlu1 %6726, %v6734_v12  }
0x1241   : > { %5096 = vperm.xlu1 %6726, %v5093_v18  }
0x12b8   : > { %v5084_v21 = vpop.permute.xlu1 %5083 }
0x12b9   : > { %v5086_v22 = vmul.f32 %v5084_v21, %v5054_v43  ;;  %v5087_v23 = vmul.f32 %v5084_v21, %v5056_v42 }
0x12bb   : > { %v7871_v25 = vadd.f32 %v5086_v22, %v4745_v46  ;;  %v7875_v8 = vadd.f32 %v5087_v23, %v4746_v45 }
0x12bc   : > { %v5097_v44 = vpop.permute.xlu1 %5096 }
0x12bd   : > { %v5090_v9 = vmax.f32 %v7871_v25, 0.0  ;;  %v5091_v27 = vmax.f32 %v7875_v8, 0.0 }
0x12bf   : > { %5132 = vmatprep.subr.mxu1 %v5091_v27 }
0x12c0   : > { %5133 = vmatpush1.msra.mxu1 %v5090_v9 }
0x12c1   : > { %6415 = vmatmul.mubr.msk.f32.vlgmr.msra.gmra.mxu1 %vm2030_vm9, %v5092_v29 }
0x12c2   : > { %5313 = vmatprep.mubr.f32.mxu1 %v6821_v2 }
0x1381   : > { %v5168_v26 = vpop.f32.mrf.mxu1 }
0x1382   : > { %v5169_v45 = vadd.f32 %v5168_v26, %v5097_v44 }
0x1383   : > { %v5170_v35 = vpop.f32.mrf.mxu1 }
0x1384   : > { %v7886_v46 = vmax.f32 %v5169_v45, 0.0  ;;  %v5171_v36 = vadd.f32 %v5170_v35, %v5097_v44 }
0x1386   : > { %5208 = vrot.lane.b32.xlu0 %v7886_v46, %s8400_s5  ;;  %5232 = vrot.lane.b32.xlu1 %v7886_v46, %s8382_s3  ;;  %v5174_v37 = vmax.f32 %v5171_v36, 0.0 }
0x138a   : > { %5184 = vrot.lane.b32.xlu0 %v7886_v46, %s8387_s11  ;;  %5224 = vrot.lane.b32.xlu1 %v7886_v46, %s8397_s16 }
0x138e   : > { %5176 = vrot.lane.b32.xlu0 %v7886_v46, %s8401_s6  ;;  %5216 = vrot.lane.b32.xlu1 %v7886_v46, %s8399_s4 }
0x1392   : > { %5243 = vperm.xlu0 %6725, %v5240_v30   ;;  %5200 = vrot.lane.b32.xlu1 %v7886_v46, %s8385_s7 }
0x1396   : > { %5192 = vrot.lane.b32.xlu1 %v7886_v46, %s8386_s0 }
0x139a   : > { %5234 = vrot.lane.b32.xlu1 %v5174_v37, %s8382_s3 }
0x139e   : > { %5226 = vrot.lane.b32.xlu1 %v5174_v37, %s8397_s16 }
0x13a2   : > { %5218 = vrot.lane.b32.xlu1 %v5174_v37, %s8399_s4 }
0x13a6   : > { %5210 = vrot.lane.b32.xlu1 %v5174_v37, %s8400_s5 }
0x13aa   : > { %5202 = vrot.lane.b32.xlu1 %v5174_v37, %s8385_s7 }
0x13ae   : > { %5194 = vrot.lane.b32.xlu1 %v5174_v37, %s8386_s0 }
0x13b2   : > { %5186 = vrot.lane.b32.xlu1 %v5174_v37, %s8387_s11 }
0x13b6   : > { %5178 = vrot.lane.b32.xlu1 %v5174_v37, %s8401_s6 }
0x13ba   : > { %5326 = vperm.xlu1 %6726, %v5323_v40  }
0x13f8   : > { %v5233_v41 = vpop.permute.xlu1 %5232  ;;  %v5209_v11 = vpop.permute.xlu0 %5208 }
0x13fc   : > { %v5225_v43 = vpop.permute.xlu1 %5224 }
0x1400   : > { %v5217_v42 = vpop.permute.xlu1 %5216 }
0x1404   : > { %v5201_v49 = vpop.permute.xlu1 %5200 }
0x1408   : > { %v5193_v54 = vpop.permute.xlu1 %5192 }
0x140c   : > { %v5235_v31 = vpop.permute.xlu1 %5234 }
0x140d   : > { %v5236_v32 = vsel %vm1924_vm1, %v5233_v41, %v5235_v31  ;;  %v5237_v33 = vsel %vm1924_vm1, %v5235_v31, %v5233_v41  ;;  %v5185_v41 = vpop.permute.xlu0 %5184 }
0x140e   : > { %v5238_v58 = vmul.f32 %v5236_v32, %v7202_v16  ;;  %v5239_v61 = vmul.f32 %v5237_v33, %v7199_v15 }
0x1410   : > { %5263 = vmatprep.subr.mxu1 %v5239_v61  ;;  %v5227_v59 = vpop.permute.xlu1 %5226 }
0x1411   : > { %v5228_v55 = vsel %vm1904_vm0, %v5225_v43, %v5227_v59  ;;  %v5229_v62 = vsel %vm1904_vm0, %v5227_v59, %v5225_v43  ;;  %5264 = vmatpush1.msra.mxu1 %v5238_v58  ;;  %v5177_v32 = vpop.permute.xlu0 %5176 }
0x1412   : > { %v5230_v63 = vmul.f32 %v5228_v55, %v7218_v24  ;;  %v5231_v60 = vmul.f32 %v5229_v62, %v7206_v19  ;;  %v5175_v62 = vld [vmem:[%s8410_s1] sm:$0xff]  ;;  %s8414_s1 = sld [smem:[#allocation40_spill]] }
0x1414   : > { %5265 = vmatprep.subr.mxu1 %v5231_v60  ;;  %v5219_v34 = vpop.permute.xlu1 %5218 }
0x1415   : > { %v5220_v1 = vsel %vm1884_vm2, %v5217_v42, %v5219_v34  ;;  %v5221_v4 = vsel %vm1884_vm2, %v5219_v34, %v5217_v42  ;;  %5266 = vmatpush1.msra.mxu1 %v5230_v63  ;;  %v5244_v60 = vpop.permute.xlu0 %5243 }
0x1416   : > { %v5222_v5 = vmul.f32 %v5220_v1, %v7225_v28  ;;  %v5223_v10 = vmul.f32 %v5221_v4, %v7209_v20 }
0x1418   : > { %5267 = vmatprep.subr.mxu1 %v5223_v10  ;;  %v5211_v12 = vpop.permute.xlu1 %5210 }
0x1419   : > { %v5212_v18 = vsel %vm1864_vm3, %v5209_v11, %v5211_v12  ;;  %v5213_v21 = vsel %vm1864_vm3, %v5211_v12, %v5209_v11  ;;  %5268 = vmatpush1.msra.mxu1 %v5222_v5  ;;  %v5322_v11 = vld [vmem:[%s8411_s2] sm:$0xff]  ;;  %s8415_s2 = sld [smem:[#allocation39_spill]] }
0x141a   : > { %v5214_v22 = vmul.f32 %v5212_v18, %v7241_v39  ;;  %v5215_v23 = vmul.f32 %v5213_v21, %v7238_v38 }
0x141c   : > { %5269 = vmatprep.subr.mxu1 %v5215_v23  ;;  %v5203_v29 = vpop.permute.xlu1 %5202 }
0x141d   : > { %v5204_v44 = vsel %vm1844_vm4, %v5201_v49, %v5203_v29  ;;  %v5205_v26 = vsel %vm1844_vm4, %v5203_v29, %v5201_v49  ;;  %5270 = vmatpush1.msra.mxu1 %v5214_v22 }
0x141e   : > { %v5206_v45 = vmul.f32 %v5205_v26, %v7255_v48  ;;  %v5207_v30 = vmul.f32 %v5204_v44, %v7252_v47  ;;  %5271 = vmatprep.subr.mxu1 %v5174_v37  ;;  %v5407_v44 = vld [vmem:[%s8412_s8] sm:$0xff]  ;;  %s8416_s8 = sld [smem:[#allocation44_spill]] }
0x141f   : > { %5272 = vmatpush1.msra.mxu1 %v7886_v46 }
0x1420   : > { %5273 = vmatprep.subr.mxu1 %v5207_v30  ;;  %v5195_v35 = vpop.permute.xlu1 %5194 }
0x1421   : > { %v5196_v36 = vsel %vm1824_vm5, %v5193_v54, %v5195_v35  ;;  %v5197_v40 = vsel %vm1824_vm5, %v5195_v35, %v5193_v54  ;;  %5274 = vmatpush1.msra.mxu1 %v5206_v45 }
0x1422   : > { %v5198_v43 = vmul.f32 %v5197_v40, %v7270_v57  ;;  %v5199_v42 = vmul.f32 %v5196_v36, %v7267_v56 }
0x1424   : > { %5275 = vmatprep.subr.mxu1 %v5199_v42  ;;  %v5187_v49 = vpop.permute.xlu1 %5186 }
0x1425   : > { %v5188_v46 = vsel %vm1804_vm6, %v5185_v41, %v5187_v49  ;;  %v5189_v37 = vsel %vm1804_vm6, %v5187_v49, %v5185_v41  ;;  %5276 = vmatpush1.msra.mxu1 %v5198_v43 }
0x1426   : > { %v5190_v31 = vmul.f32 %v5189_v37, %v7285_v0  ;;  %v5191_v54 = vmul.f32 %v5188_v46, %v7282_v3  ;;  %v5417_v46 = vld [vmem:[%s8413_s10] sm:$0xff]  ;;  %s8417_s10 = sld [smem:[#allocation42_spill]] }
0x1428   : > { %5277 = vmatprep.subr.mxu1 %v5191_v54  ;;  %v5179_v33 = vpop.permute.xlu1 %5178 }
0x1429   : > { %v5180_v58 = vsel %vm1784_vm7, %v5177_v32, %v5179_v33  ;;  %v5181_v61 = vsel %vm1784_vm7, %v5179_v33, %v5177_v32  ;;  %5278 = vmatpush1.msra.mxu1 %v5190_v31 }
0x142a   : > { %v5182_v59 = vmul.f32 %v5181_v61, %v7299_v17  ;;  %v5183_v55 = vmul.f32 %v5180_v58, %v7296_v14  ;;  %v5438_v61 = vld [vmem:[%s8414_s1] sm:$0xff]  ;;  %s8418_s1 = sld [smem:[#allocation14_spill]] }
0x142c   : > { %5279 = vmatprep.subr.mxu1 %v5183_v55 }
0x142d   : > { %5280 = vmatpush1.msra.mxu1 %v5182_v59 }
0x142e   : > { %6416 = vmatmul.mubr.msk.f32.vlgmr.msra.gmra.mxu1 %vm1946_vm8, %v5175_v62 }
0x142f   : > { %5741 = vmatprep.mubr.f32.mxu1 %v6821_v2 }
0x1435   : > { %v5327_v18 = vpop.permute.xlu1 %5326 }
0x14ee   : > { %v5315_v63 = vpop.f32.mrf.mxu1 }
0x14ef   : > { %v5316_v34 = vadd.f32 %v5315_v63, %v5244_v60 }
0x14f0   : > { %v5317_v1 = vpop.f32.mrf.mxu1 }
0x14f1   : > { %v5318_v4 = vadd.f32 %v5317_v1, %v5244_v60  ;;  %v5320_v10 = vmax.f32 %v5316_v34, 0.0 }
0x14f3   : > { %v5321_v5 = vmax.f32 %v5318_v4, 0.0  ;;  %v5437_v4 = vld [vmem:[%s8415_s2] sm:$0xff]  ;;  %s8419_s2 = sld [smem:[#allocation41_spill]] }
0x14f5   : > { %5362 = vmatprep.subr.mxu0 %v5321_v5 }
0x14f6   : > { %5363 = vmatpush1.msra.mxu0 %v5320_v10 }
0x14f7   : > { %6417 = vmatmul.mubr.msk.f32.vlgmr.msra.gmra.mxu0 %vm2030_vm9, %v5322_v11 }
0x14f8   : > { %5511 = vmatprep.mubr.f32.mxu0 %v6821_v2 }
0x15b7   : > { %v5398_v12 = vpop.f32.mrf.mxu0 }
0x15b8   : > { %v5399_v22 = vadd.f32 %v5398_v12, %v5327_v18  ;;  %v5668_v12 = vld [vmem:[%s8416_s8] sm:$0xff]  ;;  %s8420_s8 = sld [smem:[#allocation15_spill]] }
0x15b9   : > { %v5400_v21 = vpop.f32.mrf.mxu0 }
0x15ba   : > { %v5401_v23 = vadd.f32 %v5400_v21, %v5327_v18  ;;  %v5585_v18 = vld [vmem:[%s8417_s10] sm:$0xff]  ;;  %s8421_s10 = sld [smem:[#allocation16_spill]] }
0x15bb   : > { %v2602_v21 = vld [vmem:[%s8418_s1] sm:$0xff]  ;;  %s8423_s1 = sld [smem:[#allocation45_spill]] }
0x15bc   : > { %v5403_v29 = vadd.f32 %v5401_v23, %v5399_v22 }
0x15be   : > { %5404 = vadd.xlane.f32.xlu0 %v5403_v29 }
0x1647   : > { %v5405_v26 = vpop.xlane.xlu0 %5404 }
0x1648   : > { %v5406_v45 = vmul.f32 0.00390625, %v5405_v26 }
0x164a   : > { %v5408_v30 = vmul.f32 %v5407_v44, %v5406_v45 }
0x164c   : > { %v5409_v35 = vsel %vm2342_vm10, %v5408_v30, 0.0 }
0x164d   : > { %v5410_v36 = vrot.slane %v5409_v35, 4 }
0x164f   : > { %v5411_v40 = vadd.f32 %v5410_v36, %v5409_v35 }
0x1651   : > { %v5412_v41 = vrot.slane %v5411_v40, 2 }
0x1653   : > { %v5413_v43 = vadd.f32 %v5412_v41, %v5411_v40 }
0x1655   : > { %v5414_v42 = vrot.slane %v5413_v43, 1 }
0x1657   : > { %v5415_v49 = vadd.f32 %v5414_v42, %v5413_v43 }
0x1659   : > { %v5416_v37 = vmax.f32 %v5415_v49, 0.0 }
0x165b   : > { %v5418_v31 = vmul.f32 %v5417_v46, %v5416_v37 }
0x165d   : > { %v6418_v54 = vmul.f32 -1.442695, %v5418_v31 }
0x165f   : > { %6735 = vpow2.f32 %v6418_v54 }
0x166c   : > { %v6736_v32 = vpop.eup %6735 }
0x166d   : > { %v5423_v33 = vadd.f32 1.0, %v6736_v32 }
0x166f   : > { %6737 = vrcp.f32 %v5423_v33 }
0x167c   : > { %v6738_v58 = vpop.eup %6737 }
0x167d   : > { %5428 = vperm.xlu1 %6726, %v6738_v58  }
0x1681   : > { %5441 = vperm.xlu1 %6726, %v5438_v61  }
0x16f8   : > { %v5429_v59 = vpop.permute.xlu1 %5428 }
0x16f9   : > { %v5431_v55 = vmul.f32 %v5429_v59, %v5399_v22  ;;  %v5432_v62 = vmul.f32 %v5429_v59, %v5401_v23 }
0x16fb   : > { %v7975_v63 = vadd.f32 %v5431_v55, %v5090_v9  ;;  %v7979_v60 = vadd.f32 %v5432_v62, %v5091_v27 }
0x16fc   : > { %v5442_v25 = vpop.permute.xlu1 %5441 }
0x16fd   : > { %v5435_v34 = vmax.f32 %v7975_v63, 0.0  ;;  %v5436_v1 = vmax.f32 %v7979_v60, 0.0  ;;  %v6144_v60 = vld [vmem:[%s7125_s25] sm:$0x7] }
0x16ff   : > { %5477 = vmatprep.subr.mxu0 %v5436_v1 }
0x1700   : > { %5478 = vmatpush1.msra.mxu0 %v5435_v34 }
0x1701   : > { %6419 = vmatmul.mubr.msk.f32.vlgmr.msra.gmra.mxu0 %vm2030_vm9, %v5437_v4 }
0x1702   : > { %5658 = vmatprep.mubr.f32.mxu0 %v6821_v2 }
0x17c1   : > { %v5513_v8 = vpop.f32.mrf.mxu0 }
0x17c2   : > { %v5514_v9 = vadd.f32 %v5513_v8, %v5442_v25 }
0x17c3   : > { %v5515_v27 = vpop.f32.mrf.mxu0 }
0x17c4   : > { %v7990_v5 = vmax.f32 %v5514_v9, 0.0  ;;  %v5516_v10 = vadd.f32 %v5515_v27, %v5442_v25 }
0x17c6   : > { %5553 = vrot.lane.b32.xlu0 %v7990_v5, %s8400_s5  ;;  %5577 = vrot.lane.b32.xlu1 %v7990_v5, %s8382_s3  ;;  %v5519_v11 = vmax.f32 %v5516_v10, 0.0 }
0x17ca   : > { %5531 = vrot.lane.b32.xlu0 %v5519_v11, %s8387_s11  ;;  %5569 = vrot.lane.b32.xlu1 %v7990_v5, %s8397_s16 }
0x17ce   : > { %5523 = vrot.lane.b32.xlu0 %v5519_v11, %s8401_s6  ;;  %5561 = vrot.lane.b32.xlu1 %v7990_v5, %s8399_s4 }
0x17d2   : > { %5671 = vperm.xlu0 %6725, %v5668_v12   ;;  %5545 = vrot.lane.b32.xlu1 %v7990_v5, %s8385_s7 }
0x17d6   : > { %5537 = vrot.lane.b32.xlu1 %v7990_v5, %s8386_s0 }
0x17da   : > { %5529 = vrot.lane.b32.xlu1 %v7990_v5, %s8387_s11 }
0x17de   : > { %5579 = vrot.lane.b32.xlu1 %v5519_v11, %s8382_s3 }
0x17e2   : > { %5571 = vrot.lane.b32.xlu1 %v5519_v11, %s8397_s16 }
0x17e6   : > { %5563 = vrot.lane.b32.xlu1 %v5519_v11, %s8399_s4 }
0x17ea   : > { %5555 = vrot.lane.b32.xlu1 %v5519_v11, %s8400_s5 }
0x17ee   : > { %5547 = vrot.lane.b32.xlu1 %v5519_v11, %s8385_s7 }
0x17f2   : > { %5539 = vrot.lane.b32.xlu1 %v5519_v11, %s8386_s0 }
0x17f6   : > { %5521 = vrot.lane.b32.xlu1 %v7990_v5, %s8401_s6 }
0x17fa   : > { %5588 = vperm.xlu1 %6726, %v5585_v18  }
0x17fe   : > { %2605 = vperm.xlu1 %6726, %v2602_v21  }
0x1838   : > { %v5578_v22 = vpop.permute.xlu1 %5577  ;;  %v5554_v61 = vpop.permute.xlu0 %5553 }
0x183c   : > { %v5570_v23 = vpop.permute.xlu1 %5569  ;;  %v5532_v10 = vpop.permute.xlu0 %5531 }
0x1840   : > { %v5562_v29 = vpop.permute.xlu1 %5561 }
0x1844   : > { %v5546_v44 = vpop.permute.xlu1 %5545 }
0x1848   : > { %v5538_v26 = vpop.permute.xlu1 %5537 }
0x184c   : > { %v5530_v45 = vpop.permute.xlu1 %5529 }
0x1850   : > { %v5580_v30 = vpop.permute.xlu1 %5579 }
0x1851   : > { %v5581_v35 = vsel %vm1924_vm1, %v5578_v22, %v5580_v30  ;;  %v5582_v36 = vsel %vm1924_vm1, %v5580_v30, %v5578_v22  ;;  %v5533_v22 = vsel %vm1804_vm6, %v5530_v45, %v5532_v10  ;;  %v5524_v30 = vpop.permute.xlu0 %5523 }
0x1852   : > { %v5583_v40 = vmul.f32 %v5581_v35, %v7202_v16  ;;  %v5584_v41 = vmul.f32 %v5582_v36, %v7199_v15  ;;  %v5536_v35 = vmul.f32 %v5533_v22, %v7282_v3 }
0x1854   : > { %5608 = vmatprep.subr.mxu0 %v5584_v41  ;;  %v5572_v43 = vpop.permute.xlu1 %5571 }
0x1855   : > { %v5573_v42 = vsel %vm1904_vm0, %v5570_v23, %v5572_v43  ;;  %v5574_v49 = vsel %vm1904_vm0, %v5572_v43, %v5570_v23  ;;  %5609 = vmatpush1.msra.mxu0 %v5583_v40 }
0x1856   : > { %v5575_v46 = vmul.f32 %v5573_v42, %v7218_v24  ;;  %v5576_v37 = vmul.f32 %v5574_v49, %v7206_v19  ;;  %v5520_v42 = vld [vmem:[%s8419_s2] sm:$0xff]  ;;  %v6747_v49 = vld [vmem:[%s7144_s26 + $0x8] sm:$0xff]  ;;  %s8424_s2 = sld [smem:[#allocation46_spill]] }
0x1858   : > { %5610 = vmatprep.subr.mxu0 %v5576_v37  ;;  %v5564_v31 = vpop.permute.xlu1 %5563 }
0x1859   : > { %v5565_v54 = vsel %vm1884_vm2, %v5562_v29, %v5564_v31  ;;  %v5566_v32 = vsel %vm1884_vm2, %v5564_v31, %v5562_v29  ;;  %5611 = vmatpush1.msra.mxu0 %v5575_v46  ;;  %v6748_v46 = vld [vmem:[%s7144_s26] sm:$0xff]  ;;  %s8422_s26 = sld [smem:[#allocation43_spill]] }
0x185a   : > { %v5567_v33 = vmul.f32 %v5565_v54, %v7225_v28  ;;  %v5568_v58 = vmul.f32 %v5566_v32, %v7209_v20 }
0x185c   : > { %5612 = vmatprep.subr.mxu0 %v5568_v58  ;;  %v5556_v59 = vpop.permute.xlu1 %5555  ;;  %v2686_v58 = vld [vmem:[%s8420_s8] sm:$0xff]  ;;  %s8425_s8 = sld [smem:[#allocation47_spill]] }
0x185d   : > { %v5557_v55 = vsel %vm1864_vm3, %v5554_v61, %v5556_v59  ;;  %v5558_v62 = vsel %vm1864_vm3, %v5556_v59, %v5554_v61  ;;  %5613 = vmatpush1.msra.mxu0 %v5567_v33 }
0x185e   : > { %v5559_v4 = vmul.f32 %v5557_v55, %v7241_v39  ;;  %v5560_v25 = vmul.f32 %v5558_v62, %v7238_v38 }
0x1860   : > { %5614 = vmatprep.subr.mxu0 %v5560_v25  ;;  %v5548_v8 = vpop.permute.xlu1 %5547 }
0x1861   : > { %v5549_v9 = vsel %vm1844_vm4, %v5546_v44, %v5548_v8  ;;  %v5550_v27 = vsel %vm1844_vm4, %v5548_v8, %v5546_v44  ;;  %5615 = vmatpush1.msra.mxu0 %v5559_v4  ;;  %v5534_v44 = vsel %vm1804_vm6, %v5532_v10, %v5530_v45 }
0x1862   : > { %v5551_v12 = vmul.f32 %v5550_v27, %v7255_v48  ;;  %v5552_v18 = vmul.f32 %v5549_v9, %v7252_v47  ;;  %5616 = vmatprep.subr.mxu0 %v5519_v11  ;;  %v5535_v40 = vmul.f32 %v5534_v44, %v7285_v0  ;;  %v5783_v63 = vld [vmem:[%s8425_s8 + $0x8] sm:$0xff] }
0x1863   : > { %5617 = vmatpush1.msra.mxu0 %v7990_v5 }
0x1864   : > { %5618 = vmatprep.subr.mxu0 %v5552_v18  ;;  %v5540_v21 = vpop.permute.xlu1 %5539 }
0x1865   : > { %v5541_v23 = vsel %vm1824_vm5, %v5538_v26, %v5540_v21  ;;  %v5542_v29 = vsel %vm1824_vm5, %v5540_v21, %v5538_v26  ;;  %5619 = vmatpush1.msra.mxu0 %v5551_v12 }
0x1866   : > { %v5543_v11 = vmul.f32 %v5542_v29, %v7270_v57  ;;  %v5544_v5 = vmul.f32 %v5541_v23, %v7267_v56 }
0x1868   : > { %5620 = vmatprep.subr.mxu0 %v5544_v5  ;;  %v5522_v36 = vpop.permute.xlu1 %5521 }
0x1869   : > { %v5525_v26 = vsel %vm1784_vm7, %v5522_v36, %v5524_v30  ;;  %v5526_v41 = vsel %vm1784_vm7, %v5524_v30, %v5522_v36  ;;  %5621 = vmatpush1.msra.mxu0 %v5543_v11 }
0x186a   : > { %v5527_v45 = vmul.f32 %v5526_v41, %v7299_v17  ;;  %v5528_v43 = vmul.f32 %v5525_v26, %v7296_v14  ;;  %5622 = vmatprep.subr.mxu0 %v5536_v35  ;;  %v5667_v35 = vld [vmem:[%s8422_s26] sm:$0xff] }
0x186b   : > { %5623 = vmatpush1.msra.mxu0 %v5535_v40 }
0x186c   : > { %5624 = vmatprep.subr.mxu0 %v5528_v43 }
0x186d   : > { %5625 = vmatpush1.msra.mxu0 %v5527_v45 }
0x186e   : > { %6420 = vmatmul.mubr.msk.f32.vlgmr.msra.gmra.mxu0 %vm1946_vm8, %v5520_v42  ;;  %6029 = vmatprep.subr.mxu0 %v6747_v49 }
0x186f   : > { %6030 = vmatpush1.msra.mxu0 %v6748_v46  ;;  %6063 = vmatprep.mubr.f32.mxu0 %v6821_v2 }
0x1875   : > { %v5589_v37 = vpop.permute.xlu1 %5588 }
0x1879   : > { %v2606_v31 = vpop.permute.xlu1 %2605 }
0x187a   : > { %v8074_v54 = vadd.f32 %v7610_v13, %v2606_v31  ;;  %v2680_v32 = vadd.f32 %v7612_v6, %v2606_v31  ;;  %v2696_v13 = vld [vmem:[%s8421_s10] sm:$0xff] }
0x187c   : > { %v2682_v33 = vadd.f32 %v2680_v32, %v8074_v54 }
0x187e   : > { %2683 = vadd.xlane.f32.xlu1 %v2682_v33 }
0x1907   : > { %v2684_v61 = vpop.xlane.xlu1 %2683 }
0x1908   : > { %v2685_v59 = vmul.f32 0.00390625, %v2684_v61 }
0x190a   : > { %v2687_v55 = vmul.f32 %v2686_v58, %v2685_v59 }
0x190c   : > { %v2688_v62 = vsel %vm2342_vm10, %v2687_v55, 0.0 }
0x190d   : > { %v2689_v4 = vrot.slane %v2688_v62, 4 }
0x190f   : > { %v2690_v25 = vadd.f32 %v2689_v4, %v2688_v62 }
0x1911   : > { %v2691_v8 = vrot.slane %v2690_v25, 2 }
0x1913   : > { %v2692_v9 = vadd.f32 %v2691_v8, %v2690_v25  ;;  %v5762_v8 = vld [vmem:[%s8424_s2] sm:$0xff] }
0x1915   : > { %v2693_v27 = vrot.slane %v2692_v9, 1 }
0x1917   : > { %v2694_v10 = vadd.f32 %v2693_v27, %v2692_v9 }
0x1919   : > { %v2695_v12 = vmax.f32 %v2694_v10, 0.0 }
0x191b   : > { %v2697_v18 = vmul.f32 %v2696_v13, %v2695_v12 }
0x191d   : > { %v6308_v6 = vmul.f32 -1.442695, %v2697_v18 }
0x191f   : > { %6739 = vpow2.f32 %v6308_v6 }
0x192c   : > { %v6740_v21 = vpop.eup %6739 }
0x192d   : > { %v2702_v22 = vadd.f32 1.0, %v6740_v21 }
0x192e   : > { %v5660_v23 = vpop.f32.mrf.mxu0 }
0x192f   : > { %6741 = vrcp.f32 %v2702_v22  ;;  %v5661_v29 = vadd.f32 %v5660_v23, %v5589_v37 }
0x1930   : > { %v5662_v44 = vpop.f32.mrf.mxu0 }
0x1931   : > { %v5663_v11 = vadd.f32 %v5662_v44, %v5589_v37  ;;  %v5665_v30 = vmax.f32 %v5661_v29, 0.0  ;;  %v5752_v37 = vld [vmem:[%s8423_s1] sm:$0xff] }
0x1933   : > { %v5666_v5 = vmax.f32 %v5663_v11, 0.0 }
0x1935   : > { %5707 = vmatprep.subr.mxu1 %v5666_v5 }
0x1936   : > { %5708 = vmatpush1.msra.mxu1 %v5665_v30 }
0x1937   : > { %6421 = vmatmul.mubr.msk.f32.vlgmr.msra.gmra.mxu1 %vm2030_vm9, %v5667_v35 }
0x1938   : > { %6423 = vmatprep.mubr.msk.f32.mxu1 %vm2719_vm11, %v5783_v63 }
0x193c   : > { %v6742_v36 = vpop.eup %6741 }
0x193d   : > { %2707 = vperm.xlu1 %6726, %v6742_v36  }
0x19b8   : > { %v2708_v40 = vpop.permute.xlu1 %2707 }
0x19b9   : > { %v2711_v26 = vmul.f32 %v2708_v40, %v2680_v32  ;;  %v2710_v18 = vmul.f32 %v2708_v40, %v8074_v54 }
0x19bb   : > { %v2713_v41 = vadd.f32 %v2711_v26, %v2370_v53  ;;  %v5672_v53 = vpop.permute.xlu0 %5671  ;;  %v2712_v6 = vadd.f32 %v2710_v18, %v2369_v52 }
0x19bd   : > { %v8085_v45 = vmax.f32 %v2713_v41, 0.0  ;;  %v8105_v22 = vmax.f32 %v2712_v6, 0.0 }
0x19bf   : > { %5884 = vrot.lane.b32.xlu1 %v8085_v45, %s8397_s16 }
0x19c3   : > { %5868 = vrot.lane.b32.xlu1 %v8085_v45, %s8399_s4 }
0x19c7   : > { %5852 = vrot.lane.b32.xlu1 %v8085_v45, %s8400_s5 }
0x19cb   : > { %5836 = vrot.lane.b32.xlu1 %v8085_v45, %s8385_s7 }
0x19cf   : > { %5820 = vrot.lane.b32.xlu1 %v8085_v45, %s8386_s0 }
0x19d3   : > { %5804 = vrot.lane.b32.xlu1 %v8085_v45, %s8387_s11 }
0x19f7   : > { %v5743_v51 = vpop.f32.mrf.mxu1 }
0x19f8   : > { %v5744_v42 = vadd.f32 %v5743_v51, %v5672_v53 }
0x19f9   : > { %v5745_v43 = vpop.f32.mrf.mxu1 }
0x19fa   : > { %v5746_v49 = vadd.f32 %v5745_v43, %v5672_v53 }
0x19fc   : > { %v5748_v46 = vadd.f32 %v5746_v49, %v5744_v42 }
0x19fe   : > { %5749 = vadd.xlane.f32.xlu0 %v5748_v46 }
0x1a87   : > { %v5750_v31 = vpop.xlane.xlu0 %5749 }
0x1a88   : > { %v5751_v32 = vmul.f32 0.00390625, %v5750_v31 }
0x1a8a   : > { %v5753_v33 = vmul.f32 %v5752_v37, %v5751_v32 }
0x1a8c   : > { %v5754_v58 = vsel %vm2342_vm10, %v5753_v33, 0.0 }
0x1a8d   : > { %v5755_v61 = vrot.slane %v5754_v58, 4 }
0x1a8f   : > { %v5756_v59 = vadd.f32 %v5755_v61, %v5754_v58 }
0x1a91   : > { %v5757_v55 = vrot.slane %v5756_v59, 2 }
0x1a93   : > { %v5758_v62 = vadd.f32 %v5757_v55, %v5756_v59 }
0x1a95   : > { %v5759_v4 = vrot.slane %v5758_v62, 1 }
0x1a97   : > { %v5760_v25 = vadd.f32 %v5759_v4, %v5758_v62 }
0x1a99   : > { %v5761_v9 = vmax.f32 %v5760_v25, 0.0 }
0x1a9b   : > { %v5763_v27 = vmul.f32 %v5762_v8, %v5761_v9 }
0x1a9d   : > { %v6422_v10 = vmul.f32 -1.442695, %v5763_v27 }
0x1a9f   : > { %6743 = vpow2.f32 %v6422_v10 }
0x1aac   : > { %v6744_v13 = vpop.eup %6743 }
0x1aad   : > { %v5768_v12 = vadd.f32 1.0, %v6744_v13 }
0x1aaf   : > { %6745 = vrcp.f32 %v5768_v12 }
0x1abc   : > { %v6746_v21 = vpop.eup %6745 }
0x1abd   : > { %5773 = vperm.xlu0 %6725, %v6746_v21  }
0x1ac1   : > { %5880 = vrot.lane.b32.xlu0 %v8105_v22, %s8397_s16 }
0x1ac5   : > { %5864 = vrot.lane.b32.xlu0 %v8105_v22, %s8399_s4 }
0x1ac9   : > { %5848 = vrot.lane.b32.xlu0 %v8105_v22, %s8400_s5 }
0x1acd   : > { %5832 = vrot.lane.b32.xlu0 %v8105_v22, %s8385_s7 }
0x1ad1   : > { %5816 = vrot.lane.b32.xlu0 %v8105_v22, %s8386_s0 }
0x1ad5   : > { %5800 = vrot.lane.b32.xlu0 %v8105_v22, %s8387_s11 }
0x1b38   : > { %v5774_v50 = vpop.permute.xlu0 %5773 }
0x1b39   : > { %v5776_v52 = vmul.f32 %v5774_v50, %v5744_v42  ;;  %v5777_v54 = vmul.f32 %v5774_v50, %v5746_v49 }
0x1b3b   : > { %v5778_v23 = vadd.f32 %v5776_v52, %v5435_v34  ;;  %v5779_v29 = vadd.f32 %v5777_v54, %v5436_v1  ;;  %v5885_v1 = vpop.permute.xlu1 %5884 }
0x1b3c   : > { %v5881_v5 = vpop.permute.xlu0 %5880 }
0x1b3d   : > { %v8123_v44 = vmax.f32 %v5778_v23, 0.0  ;;  %v8125_v11 = vmax.f32 %v5779_v29, 0.0  ;;  %v5890_v37 = vsel %vm1904_vm0, %v5885_v1, %v5881_v5  ;;  %v5888_v33 = vsel %vm1904_vm0, %v5881_v5, %v5885_v1 }
0x1b3e   : > { %v5893_v59 = vmul.f32 %v5890_v37, %v7206_v19  ;;  %v5892_v4 = vmul.f32 %v5888_v33, %v7218_v24 }
0x1b3f   : > { %5886 = vrot.lane.b32.xlu1 %v8125_v11, %s8397_s16  ;;  %5882 = vrot.lane.b32.xlu0 %v8123_v44, %s8397_s16  ;;  %s8426_s16 = sld [smem:[#allocation48_spill]]  ;;  %v5869_v30 = vpop.permute.xlu1 %5868 }
0x1b40   : > { %v5865_v35 = vpop.permute.xlu0 %5864 }
0x1b41   : > { %v5874_v25 = vsel %vm1884_vm2, %v5869_v30, %v5865_v35  ;;  %v5872_v27 = vsel %vm1884_vm2, %v5865_v35, %v5869_v30 }
0x1b42   : > { %v5876_v18 = vmul.f32 %v5872_v27, %v7225_v28 }
0x1b43   : > { %5870 = vrot.lane.b32.xlu1 %v8125_v11, %s8399_s4  ;;  %5866 = vrot.lane.b32.xlu0 %v8123_v44, %s8399_s4  ;;  %v5853_v36 = vpop.permute.xlu1 %5852 }
0x1b44   : > { %v5849_v40 = vpop.permute.xlu0 %5848 }
0x1b45   : > { %v5912_v34 = vld [vmem:[%s8426_s16] sm:$0xff]  ;;  %v5858_v6 = vsel %vm1864_vm3, %v5853_v36, %v5849_v40  ;;  %v5856_v52 = vsel %vm1864_vm3, %v5849_v40, %v5853_v36 }
0x1b46   : > { %v5860_v63 = vmul.f32 %v5856_v52, %v7241_v39  ;;  %v5995_v52 = vld [vmem:[%s7120_s17] sm:$0x7] }
0x1b47   : > { %5854 = vrot.lane.b32.xlu1 %v8125_v11, %s8400_s5  ;;  %5850 = vrot.lane.b32.xlu0 %v8123_v44, %s8400_s5  ;;  %v5837_v26 = vpop.permute.xlu1 %5836  ;;  %s8427_s5 = sshll.u32 %s8429_s23, 3 }
0x1b48   : > { %v5833_v41 = vpop.permute.xlu0 %5832  ;;  %6424 = vmatmul.mubr.msk.f32.vlgmr.msra.gmra.mxu0 %vm2030_vm9, %v5995_v52 }
0x1b49   : > { %v5840_v1 = vsel %vm1844_vm4, %v5833_v41, %v5837_v26  ;;  %6137 = vmatprep.mubr.f32.mxu0 %v6821_v2 }
0x1b4b   : > { %5788 = vrot.lane.b32.xlu1 %v8085_v45, %s8401_s6  ;;  %5784 = vrot.lane.b32.xlu0 %v8105_v22, %s8401_s6  ;;  %v8171_v51 = vpop.permute.xlu1 %5820 }
0x1b4c   : > { %v8173_v53 = vpop.permute.xlu0 %5816 }
0x1b4f   : > { %5838 = vrot.lane.b32.xlu1 %v8125_v11, %s8385_s7  ;;  %5834 = vrot.lane.b32.xlu0 %v8123_v44, %s8385_s7  ;;  %v8175_v43 = vpop.permute.xlu1 %5804 }
0x1b50   : > { %v8177_v42 = vpop.permute.xlu0 %5800 }
0x1b53   : > { %5822 = vrot.lane.b32.xlu1 %v8125_v11, %s8386_s0  ;;  %5818 = vrot.lane.b32.xlu0 %v8123_v44, %s8386_s0 }
0x1b57   : > { %5806 = vrot.lane.b32.xlu1 %v8125_v11, %s8387_s11  ;;  %5802 = vrot.lane.b32.xlu0 %v8123_v44, %s8387_s11 }
0x1b5b   : > { %5790 = vrot.lane.b32.xlu1 %v8125_v11, %s8401_s6  ;;  %5786 = vrot.lane.b32.xlu0 %v8123_v44, %s8401_s6 }
0x1b5f   : > { %5902 = vrot.lane.b32.xlu1 %v8125_v11, %s8382_s3  ;;  %5898 = vrot.lane.b32.xlu0 %v8123_v44, %s8382_s3 }
0x1b63   : > { %5900 = vrot.lane.b32.xlu1 %v8085_v45, %s8382_s3  ;;  %5896 = vrot.lane.b32.xlu0 %v8105_v22, %s8382_s3  ;;  %s1759_s3 = scalar_lea.vmem %s7130_s21, %s8427_s5 }
0x1b67   : > { %6147 = vperm.xlu1 %6726, %v6144_v60   ;;  %5915 = vperm.xlu0 %6725, %v5912_v34  }
0x1bb1   : > { %v5887_v49 = vpop.permute.xlu1 %5886  ;;  %v5883_v46 = vpop.permute.xlu0 %5882 }
0x1bb2   : > { %v5889_v31 = vsel %vm1904_vm0, %v5883_v46, %v5887_v49  ;;  %v5891_v32 = vsel %vm1904_vm0, %v5887_v49, %v5883_v46 }
0x1bb3   : > { %v5894_v58 = vmul.f32 %v5889_v31, %v7218_v24  ;;  %v5895_v61 = vmul.f32 %v5891_v32, %v7206_v19  ;;  %v5877_v24 = vmul.f32 %v5874_v25, %v7209_v20  ;;  %v5808_v32 = vsel %vm1804_vm6, %v8177_v42, %v8175_v43 }
0x1bb5   : > { %v5871_v55 = vpop.permute.xlu1 %5870  ;;  %5921 = vmatprep.subr.mxu1 %v5895_v61  ;;  %v5867_v62 = vpop.permute.xlu0 %5866 }
0x1bb6   : > { %v5873_v8 = vsel %vm1884_vm2, %v5867_v62, %v5871_v55  ;;  %v5875_v9 = vsel %vm1884_vm2, %v5871_v55, %v5867_v62  ;;  %5922 = vmatpush1.msra.mxu1 %v5894_v58  ;;  %v5813_v58 = vmul.f32 %v5808_v32, %v7282_v3 }
0x1bb7   : > { %v5878_v19 = vmul.f32 %v5873_v8, %v7225_v28  ;;  %v5879_v10 = vmul.f32 %v5875_v9, %v7209_v20  ;;  %5923 = vmatprep.subr.mxu1 %v5893_v59  ;;  %v5861_v28 = vmul.f32 %v5858_v6, %v7238_v38 }
0x1bb8   : > { %5924 = vmatpush1.msra.mxu1 %v5892_v4 }
0x1bb9   : > { %v5855_v13 = vpop.permute.xlu1 %5854  ;;  %5925 = vmatprep.subr.mxu1 %v5879_v10  ;;  %v5851_v12 = vpop.permute.xlu0 %5850 }
0x1bba   : > { %v5857_v21 = vsel %vm1864_vm3, %v5851_v12, %v5855_v13  ;;  %v5859_v50 = vsel %vm1864_vm3, %v5855_v13, %v5851_v12  ;;  %5926 = vmatpush1.msra.mxu1 %v5878_v19 }
0x1bbb   : > { %v5862_v20 = vmul.f32 %v5857_v21, %v7241_v39  ;;  %v5863_v54 = vmul.f32 %v5859_v50, %v7238_v38  ;;  %5927 = vmatprep.subr.mxu1 %v5877_v24  ;;  %v5842_v39 = vsel %vm1844_vm4, %v5837_v26, %v5833_v41  ;;  %v5782_v50 = vld [vmem:[%s8425_s8] sm:$0xff] }
0x1bbc   : > { %5928 = vmatpush1.msra.mxu1 %v5876_v18  ;;  %v5844_v49 = vmul.f32 %v5842_v39, %v7255_v48 }
0x1bbd   : > { %v5789_v23 = vpop.permute.xlu1 %5788  ;;  %5929 = vmatprep.subr.mxu1 %v5863_v54  ;;  %v5785_v29 = vpop.permute.xlu0 %5784 }
0x1bbe   : > { %5930 = vmatpush1.msra.mxu1 %v5862_v20  ;;  %v5792_v62 = vsel %vm1784_vm7, %v5785_v29, %v5789_v23 }
0x1bbf   : > { %5931 = vmatprep.subr.mxu1 %v5861_v28 }
0x1bc0   : > { %5932 = vmatpush1.msra.mxu1 %v5860_v63  ;;  %v5994_v63 = vld [vmem:[%s7115_s9] sm:$0x7] }
0x1bc1   : > { %v5839_v60 = vpop.permute.xlu1 %5838  ;;  %5933 = vmatprep.subr.mxu1 %v8125_v11  ;;  %v5835_v34 = vpop.permute.xlu0 %5834  ;;  %v5845_v11 = vmul.f32 %v5840_v1, %v7252_v47 }
0x1bc2   : > { %v5841_v5 = vsel %vm1844_vm4, %v5835_v34, %v5839_v60  ;;  %v5843_v38 = vsel %vm1844_vm4, %v5839_v60, %v5835_v34  ;;  %5934 = vmatpush1.msra.mxu1 %v8123_v44  ;;  %v5824_v44 = vsel %vm1824_vm5, %v8173_v53, %v8171_v51 }
0x1bc3   : > { %v5846_v30 = vmul.f32 %v5843_v38, %v7255_v48  ;;  %v5847_v35 = vmul.f32 %v5841_v5, %v7252_v47  ;;  %5935 = vmatprep.subr.mxu1 %v8085_v45  ;;  %v5826_v47 = vsel %vm1824_vm5, %v8171_v51, %v8173_v53  ;;  %v5829_v41 = vmul.f32 %v5824_v44, %v7267_v56 }
0x1bc4   : > { %5936 = vmatpush1.msra.mxu1 %v8105_v22  ;;  %v5828_v31 = vmul.f32 %v5826_v47, %v7270_v57 }
0x1bc5   : > { %v5823_v36 = vpop.permute.xlu1 %5822  ;;  %5937 = vmatprep.subr.mxu1 %v5847_v35  ;;  %v5819_v40 = vpop.permute.xlu0 %5818 }
0x1bc6   : > { %v5825_v26 = vsel %vm1824_vm5, %v5819_v40, %v5823_v36  ;;  %v5827_v45 = vsel %vm1824_vm5, %v5823_v36, %v5819_v40  ;;  %5938 = vmatpush1.msra.mxu1 %v5846_v30 }
0x1bc7   : > { %v5830_v22 = vmul.f32 %v5827_v45, %v7270_v57  ;;  %v5831_v48 = vmul.f32 %v5825_v26, %v7267_v56  ;;  %5939 = vmatprep.subr.mxu1 %v5845_v11  ;;  %v5810_v56 = vsel %vm1804_vm6, %v8175_v43, %v8177_v42  ;;  %v5794_v42 = vsel %vm1784_vm7, %v5789_v23, %v5785_v29 }
0x1bc8   : > { %5940 = vmatpush1.msra.mxu1 %v5844_v49  ;;  %v5812_v55 = vmul.f32 %v5810_v56, %v7285_v0  ;;  %v5796_v27 = vmul.f32 %v5794_v42, %v7299_v17 }
0x1bc9   : > { %v5807_v46 = vpop.permute.xlu1 %5806  ;;  %5941 = vmatprep.subr.mxu1 %v5831_v48  ;;  %v5803_v37 = vpop.permute.xlu0 %5802 }
0x1bca   : > { %v5809_v51 = vsel %vm1804_vm6, %v5803_v37, %v5807_v46  ;;  %v5811_v53 = vsel %vm1804_vm6, %v5807_v46, %v5803_v37  ;;  %5942 = vmatpush1.msra.mxu1 %v5830_v22 }
0x1bcb   : > { %v5814_v33 = vmul.f32 %v5811_v53, %v7285_v0  ;;  %v5815_v57 = vmul.f32 %v5809_v51, %v7282_v3  ;;  %5943 = vmatprep.subr.mxu1 %v5829_v41  ;;  %v5797_v0 = vmul.f32 %v5792_v62, %v7296_v14 }
0x1bcc   : > { %5944 = vmatpush1.msra.mxu1 %v5828_v31 }
0x1bcd   : > { %v5791_v61 = vpop.permute.xlu1 %5790  ;;  %5945 = vmatprep.subr.mxu1 %v5815_v57  ;;  %v5787_v59 = vpop.permute.xlu0 %5786 }
0x1bce   : > { %v5793_v4 = vsel %vm1784_vm7, %v5787_v59, %v5791_v61  ;;  %v5795_v43 = vsel %vm1784_vm7, %v5791_v61, %v5787_v59  ;;  %5946 = vmatpush1.msra.mxu1 %v5814_v33 }
0x1bcf   : > { %v5798_v3 = vmul.f32 %v5795_v43, %v7299_v17  ;;  %v5799_v25 = vmul.f32 %v5793_v4, %v7296_v14  ;;  %5947 = vmatprep.subr.mxu1 %v5813_v58 }
0x1bd0   : > { %5948 = vmatpush1.msra.mxu1 %v5812_v55 }
0x1bd1   : > { %v5903_v8 = vpop.permute.xlu1 %5902  ;;  %5949 = vmatprep.subr.mxu1 %v5799_v25  ;;  %v5899_v9 = vpop.permute.xlu0 %5898 }
0x1bd2   : > { %v5905_v19 = vsel %vm1924_vm1, %v5899_v9, %v5903_v8  ;;  %v5907_v10 = vsel %vm1924_vm1, %v5903_v8, %v5899_v9  ;;  %5950 = vmatpush1.msra.mxu1 %v5798_v3 }
0x1bd3   : > { %v5910_v24 = vmul.f32 %v5905_v19, %v7202_v16  ;;  %v5911_v13 = vmul.f32 %v5907_v10, %v7199_v15  ;;  %5951 = vmatprep.subr.mxu1 %v5797_v0 }
0x1bd4   : > { %5952 = vmatpush1.msra.mxu1 %v5796_v27 }
0x1bd5   : > { %v5901_v14 = vpop.permute.xlu1 %5900  ;;  %5981 = vmatprep.subr.mxu1 %v5911_v13  ;;  %v5897_v12 = vpop.permute.xlu0 %5896 }
0x1bd6   : > { %v5904_v17 = vsel %vm1924_vm1, %v5897_v12, %v5901_v14  ;;  %v5906_v18 = vsel %vm1924_vm1, %v5901_v14, %v5897_v12  ;;  %5982 = vmatpush2.msra.mxu1 %v5910_v24 }
0x1bd7   : > { %v5908_v6 = vmul.f32 %v5904_v17, %v7202_v16  ;;  %v5909_v21 = vmul.f32 %v5906_v18, %v7199_v15 }
0x1bd9   : > { %5983 = vmatprep.subr.mxu1 %v5909_v21 }
0x1bda   : > { %5984 = vmatpush2.msra.mxu1 %v5908_v6 }
0x1bdb   : > { %5986 = vmatmul.mubr.f32.vlgmr.msra.gmra.mxu1 %v5782_v50 }
0x1be2   : > { %v5916_v54 = vpop.permute.xlu0 %5915  ;;  %v6148_v38 = vpop.permute.xlu1 %6147 }
0x1c08   : > { %v6065_v15 = vpop.f32.mrf.mxu0 }
0x1c0a   : > { %v6067_v60 = vpop.f32.mrf.mxu0 }
0x1c9b   : > { %v5987_v20 = vpop.f32.mrf.mxu1 }
0x1c9c   : > { %v5988_v28 = vadd.f32 %v5987_v20, %v5916_v54 }
0x1c9d   : > { %v5989_v7 = vpop.f32.mrf.mxu1 }
0x1c9e   : > { %v5990_v23 = vadd.f32 %v5989_v7, %v5916_v54  ;;  %v5992_v29 = vmax.f32 %v5988_v28, 0.0 }
0x1ca0   : > { %v5993_v16 = vmax.f32 %v5990_v23, 0.0 }
0x1ca2   : > { %6103 = vmatprep.subr.mxu0 %v5993_v16 }
0x1ca3   : > { %6104 = vmatpush1.msra.mxu0 %v5992_v29 }
0x1ca4   : > { %6425 = vmatmul.mubr.msk.f32.vlgmr.msra.gmra.mxu0 %vm2030_vm9, %v5994_v63 }
0x1d64   : > { %v6139_v34 = vpop.f32.mrf.mxu0 }
0x1d65   : > { %v6140_v1 = vadd.f32 %v6139_v34, %v6065_v15 }
0x1d66   : > { %v6141_v5 = vpop.f32.mrf.mxu0 }
0x1d67   : > { %v6142_v2 = vadd.f32 %v6141_v5, %v6067_v60  ;;  %v6150_v39 = vadd.f32 %v6148_v38, %v6140_v1 }
0x1d69   : > { %v6151_v30 = vadd.f32 %v6148_v38, %v6142_v2 }
0x1d6b   : > { %v6154_v35 = vcombine.low %v6150_v39, %v6151_v30 }
0x1d6d   : > { %6156 = vst [vmem:[%s1759_s3] sm:$0x77] %v6154_v35 }
0x1d6e PF: > { %s129_s22 = sadd.s32 1, %s6755_s22  }
0x1d6f   : > { %p126_p4 = scmp.ge.s32.totalorder %s129_s22, 4  }
0x1d71   :  { %128 = sbr.rel (!%p126_p4) target bundleno = 115 (0x73), region = 375 }

</bundles_post_ra>
